<compile_context>
chip_gen: v6e
topology: v6e:2x2x1
jax: 0.10.0
libtpu: 0.0.40
codegen_flags: <defaults>
</compile_context>

<pallas_src>
import functools

import jax
import jax.numpy as jnp
from jax import lax
from jax.experimental import pallas as pl
from jax.experimental.pallas import tpu as pltpu

_EPS = 1e-5          # eps for InPlaceABNSync and BatchNorm1d
_LEAKY_SLOPE = 0.01  # InPlaceABNSync default leaky_relu slope
_PREC = jax.lax.Precision.HIGHEST   # only for the tiny (B,C)x(C,C) GEMMs
_NEG_INF = -1e30


def _round_up(v, m):
    return (v + m - 1) // m * m


def _enc_stats_kernel(x_ref, conv_w_ref, abn_g_ref, abn_b_ref,
                      code_ref, code_bf_ref, c2_ref, cw_scale_ref,
                      bn1_g_ref, bn1_b_ref,
                      fc_w_ref, fc_b_ref, se_w_ref, se_b_ref,
                      gate_ref, se_ref,
                      sum_ref, sumsq_ref, ax_ref, asum_ref,
                      *, n_real, c_real, k_real, tile_n):
    phase = pl.program_id(0)
    t = pl.program_id(1)
    last_t = pl.num_programs(1) - 1

    x = x_ref[...]                                   # (B, TN, Cp) f32
    B, TN, Cp = x.shape
    Kp = code_ref.shape[0]

    @pl.when((phase == 0) & (t == 0))
    def _init():
        sum_ref[...] = jnp.zeros_like(sum_ref)
        sumsq_ref[...] = jnp.zeros_like(sumsq_ref)
        ax_ref[...] = jnp.zeros_like(ax_ref)
        asum_ref[...] = jnp.zeros_like(asum_ref)

    # ---- 1x1 conv (bias=False): bf16 operands, f32 accumulation ------------
    hf = lax.dot_general(
        x.reshape(B * TN, Cp).astype(jnp.bfloat16), conv_w_ref[...],
        dimension_numbers=(((1,), (1,)), ((), ())),
        preferred_element_type=jnp.float32)                         # (B*TN, Cp)
    h = hf.reshape(B, TN, Cp)

    # ---- phase 0: accumulate per-channel BN sum / sumsq ---------------------
    @pl.when(phase == 0)
    def _accum_bn_stats():
        sum_ref[...] += jnp.sum(hf, axis=0, keepdims=True)
        sumsq_ref[...] += jnp.sum(hf * hf, axis=0, keepdims=True)

    # ---- phase 1: normalize + soft assignment + encoding partials -----------
    @pl.when(phase == 1)
    def _encode():
        # InPlaceABNSync: BN (batch stats) + leaky_relu(0.01)
        # TODO(synk): cross-device statistic synchronization of InPlaceABNSync
        # is not replicated (single-device batch statistics are used).
        inv_cnt = 1.0 / float(B * n_real)
        mu = sum_ref[...] * inv_cnt                                 # (1, Cp)
        var = jnp.maximum(sumsq_ref[...] * inv_cnt - mu * mu, 0.0)
        hn = (h - mu[None]) * lax.rsqrt(var + _EPS)[None]
        hn = hn * abn_g_ref[...][None] + abn_b_ref[...][None]
        hn = jnp.where(hn > 0, hn, _LEAKY_SLOPE * hn)               # (B, TN, Cp)
        hn_bf = hn.astype(jnp.bfloat16)                             # cast once

        # Encoding: scaled-L2 soft assignment
        scale = cw_scale_ref[...]                                   # (1, Kp)
        x2 = jnp.sum(hn * hn, axis=-1, keepdims=True)               # (B, TN, 1)
        c2 = c2_ref[...][None]                                      # (1, 1, Kp)
        xc = lax.dot_general(
            hn_bf.reshape(B * TN, Cp), code_bf_ref[...],
            dimension_numbers=(((1,), (1,)), ((), ())),
            preferred_element_type=jnp.float32).reshape(B, TN, Kp)
        sl = scale[None] * (x2 - 2.0 * xc + c2)                     # (B, TN, Kp)

        # mask padded codeword lanes out of the softmax
        k_ids = lax.broadcasted_iota(jnp.int32, (1, 1, Kp), 2)
        sl = jnp.where(k_ids < k_real, sl, _NEG_INF)
        m = jnp.max(sl, axis=-1, keepdims=True)
        e = jnp.exp(sl - m)
        a = e * pl.reciprocal(jnp.sum(e, axis=-1, keepdims=True), approx=True)

        # mask spatial padding rows so they contribute nothing
        if n_real % tile_n != 0:
            r_ids = lax.broadcasted_iota(jnp.int32, (1, TN, 1), 1) + t * tile_n
            a = jnp.where(r_ids < n_real, a, 0.0)

        # residual aggregation partials: batched dot (no explicit transpose),
        # bf16 operands / f32 accumulation into the VMEM accumulator.
        ax_ref[...] += lax.dot_general(
            a.astype(jnp.bfloat16), hn_bf,
            dimension_numbers=(((1,), (1,)), ((0,), (0,))),
            preferred_element_type=jnp.float32)                     # (B, Kp, Cp)
        asum_ref[...] += jnp.sum(a, axis=1)                         # (B, Kp)

    # ---- finalize on the very last grid step --------------------------------
    @pl.when((phase == 1) & (t == last_t))
    def _finalize():
        cw = code_ref[...]                                          # (Kp, Cp) f32
        E = ax_ref[...] - asum_ref[...][:, :, None] * cw[None]      # (B, Kp, Cp)

        # BatchNorm1d over K features (batch stats over (B, C_real)) + ReLU
        inv_cnt = 1.0 / float(E.shape[0] * c_real)
        mu_k = jnp.sum(E, axis=(0, 2), keepdims=True) * inv_cnt     # (1, Kp, 1)
        var_k = jnp.maximum(
            jnp.sum(E * E, axis=(0, 2), keepdims=True) * inv_cnt - mu_k * mu_k,
            0.0)
        En = (E - mu_k) * lax.rsqrt(var_k + _EPS)
        En = En * bn1_g_ref[...][:, :, None] + bn1_b_ref[...][:, :, None]
        En = jnp.maximum(En, 0.0)
        en = jnp.sum(En, axis=1) * (1.0 / float(k_real))            # (B, Cp)

        # fc: Linear + Sigmoid -> channel gates (tiny GEMMs stay f32)
        z = lax.dot_general(en, fc_w_ref[...],
                            dimension_numbers=(((1,), (1,)), ((), ())),
                            preferred_element_type=jnp.float32,
                            precision=_PREC) + fc_b_ref[...]
        gate_ref[...] = 1.0 + 1.0 / (1.0 + jnp.exp(-z))             # (B, Cp)
        se_ref[...] = lax.dot_general(en, se_w_ref[...],
                                      dimension_numbers=(((1,), (1,)), ((), ())),
                                      preferred_element_type=jnp.float32,
                                      precision=_PREC) + se_b_ref[...]


def _gate_kernel(x_ref, gate_ref, out_ref):
    # relu_(x + x*gamma) == relu(x * (1 + gamma)); gate = 1 + gamma
    g = gate_ref[...]                                               # (B, Cp)
    out_ref[...] = jnp.maximum(x_ref[...] * g[:, None, :], 0.0)


def enc_module_forward(x_nchw, params):
    """x_nchw: (B, C, H, W) float32.  Returns (out_nchw, se_logits)."""
    B, C, H, W = x_nchw.shape
    N = H * W
    K = params['codewords'].shape[0]
    nclass = params['se_w'].shape[0]

    # lane-dense padding
    Cp = _round_up(C, 128)
    Kp = _round_up(K, 128)

    # spatial tile: largest (B, TN, Cp) f32 tile <= ~4 MiB (double-buffered),
    # which also fits v7x's smaller 64 MiB VMEM comfortably.
    max_rows = max(8, ((4 << 20) // (B * Cp * 4)) // 8 * 8)
    TN = min(_round_up(N, 8), max_rows)
    Np = _round_up(N, TN)
    NT = Np // TN

    # channels-last, zero-padded layout
    x_bnc = jnp.transpose(x_nchw.reshape(B, C, N), (0, 2, 1))       # (B, N, C)
    x_p = jnp.pad(x_bnc, ((0, 0), (0, Np - N), (0, Cp - C)))        # (B, Np, Cp)

    pad2 = lambda a, r, c: jnp.pad(a, ((0, r - a.shape[0]), (0, c - a.shape[1])))
    conv_w = pad2(params['conv_w'], Cp, Cp).astype(jnp.bfloat16)    # MXU-only
    abn_g = pad2(params['abn_g'], 1, Cp)
    abn_b = pad2(params['abn_b'], 1, Cp)
    codewords = pad2(params['codewords'], Kp, Cp)                   # f32 (finalize)
    codewords_bf = codewords.astype(jnp.bfloat16)                   # MXU operand
    c2 = jnp.sum(codewords * codewords, axis=1)[None, :]            # (1, Kp)
    cw_scale = pad2(params['cw_scale'], 1, Kp)
    bn1_g = pad2(params['bn1_g'], 1, Kp)
    bn1_b = pad2(params['bn1_b'], 1, Kp)
    fc_w = pad2(params['fc_w'], Cp, Cp)
    fc_b = pad2(params['fc_b'], 1, Cp)
    se_w = pad2(params['se_w'], nclass, Cp)
    se_b = params['se_b']

    # VMEM budget estimate (x tile double-buffered + params + scratch + outs)
    est = (2 * B * TN * Cp * 4
           + (Cp * Cp * 2 + 6 * Cp * 4 + Kp * Cp * (4 + 2) + 6 * Kp * 4
              + Cp * Cp * 4 + nclass * Cp * 4 + nclass * 4)
           + (2 * Cp + B * Kp * Cp + B * Kp + B * Cp + B * nclass) * 4)
    vmem_limit = int(min(64 << 20, max(32 << 20, 4 * est)))

    full = lambda shape: pl.BlockSpec(shape, lambda p, t: (0,) * len(shape))
    kernel = functools.partial(_enc_stats_kernel, n_real=N, c_real=C,
                               k_real=K, tile_n=TN)

    cost = pl.CostEstimate(
        flops=int(2 * B * Np * Cp * (2 * Cp + 2 * Kp)),
        transcendentals=int(B * Np * Kp),
        bytes_accessed=int(2 * B * Np * Cp * 4 + (3 * Cp * Cp + 2 * Kp * Cp) * 4))

    gate, se = pl.pallas_call(
        kernel,
        out_shape=(jax.ShapeDtypeStruct((B, Cp), jnp.float32),
                   jax.ShapeDtypeStruct((B, nclass), jnp.float32)),
        grid_spec=pltpu.PrefetchScalarGridSpec(
            num_scalar_prefetch=0,
            grid=(2, NT),
            in_specs=[
                pl.BlockSpec((B, TN, Cp), lambda p, t: (0, t, 0)),
                full((Cp, Cp)), full((1, Cp)), full((1, Cp)),
                full((Kp, Cp)), full((Kp, Cp)), full((1, Kp)), full((1, Kp)),
                full((1, Kp)), full((1, Kp)),
                full((Cp, Cp)), full((1, Cp)),
                full((nclass, Cp)), full((1, nclass)),
            ],
            out_specs=(full((B, Cp)), full((B, nclass))),
            scratch_shapes=[
                pltpu.VMEM((1, Cp), jnp.float32),       # sum(h)  per channel
                pltpu.VMEM((1, Cp), jnp.float32),       # sum(h^2) per channel
                pltpu.VMEM((B, Kp, Cp), jnp.float32),   # ax accumulator
                pltpu.VMEM((B, Kp), jnp.float32),       # asum accumulator
            ]),
        compiler_params=pltpu.CompilerParams(
            dimension_semantics=("arbitrary", "arbitrary"),
            vmem_limit_bytes=vmem_limit),
        cost_estimate=cost,
    )(x_p, conv_w, abn_g, abn_b, codewords, codewords_bf, c2, cw_scale,
      bn1_g, bn1_b, fc_w, fc_b, se_w, se_b)

    # second pass: apply the channel gate, streaming tiles on a parallel grid,
    # aliasing the (padded) input buffer with the output.
    out_p = pl.pallas_call(
        _gate_kernel,
        out_shape=jax.ShapeDtypeStruct((B, Np, Cp), jnp.float32),
        grid_spec=pltpu.PrefetchScalarGridSpec(
            num_scalar_prefetch=0,
            grid=(NT,),
            in_specs=[pl.BlockSpec((B, TN, Cp), lambda t: (0, t, 0)),
                      pl.BlockSpec((B, Cp), lambda t: (0, 0))],
            out_specs=pl.BlockSpec((B, TN, Cp), lambda t: (0, t, 0))),
        compiler_params=pltpu.CompilerParams(
            dimension_semantics=("parallel",),
            vmem_limit_bytes=vmem_limit),
        input_output_aliases={0: 0},
    )(x_p, gate)

    out_nchw = jnp.transpose(out_p[:, :N, :C], (0, 2, 1)).reshape(B, C, H, W)
    return out_nchw, se


def _reference(x_nchw, p):
    """Pure-JAX f32 reference of the same forward pass (sanity check)."""
    B, C, H, W = x_nchw.shape
    N = H * W
    x = jnp.transpose(x_nchw.reshape(B, C, N), (0, 2, 1))
    h = jnp.einsum('bnc,oc->bno', x, p['conv_w'], precision=_PREC)
    mu = h.mean(axis=(0, 1), keepdims=True)
    var = ((h - mu) ** 2).mean(axis=(0, 1), keepdims=True)
    h = (h - mu) / jnp.sqrt(var + _EPS) * p['abn_g'] + p['abn_b']
    h = jnp.where(h > 0, h, _LEAKY_SLOPE * h)
    cw = p['codewords']
    sl = p['cw_scale'][None] * ((h[:, :, None, :] - cw[None, None]) ** 2).sum(-1)
    a = jax.nn.softmax(sl, axis=-1)
    E = (jnp.einsum('bnk,bnd->bkd', a, h, precision=_PREC)
         - a.sum(1)[:, :, None] * cw[None])
    mu_k = E.mean(axis=(0, 2), keepdims=True)
    var_k = ((E - mu_k) ** 2).mean(axis=(0, 2), keepdims=True)
    En = (E - mu_k) / jnp.sqrt(var_k + _EPS) * p['bn1_g'][:, :, None] \
        + p['bn1_b'][:, :, None]
    en = jnp.maximum(En, 0.0).mean(axis=1)
    gamma = jax.nn.sigmoid(
        jnp.einsum('bc,oc->bo', en, p['fc_w'], precision=_PREC) + p['fc_b'])
    out = jnp.maximum(x * (1.0 + gamma[:, None, :]), 0.0)
    out_nchw = jnp.transpose(out, (0, 2, 1)).reshape(B, C, H, W)
    se = jnp.einsum('bc,oc->bo', en, p['se_w'], precision=_PREC) + p['se_b']
    return out_nchw, se


def _init_params(key, in_channels, nclass, ncodes):
    C, K = in_channels, ncodes
    ks = jax.random.split(key, 10)
    std_code = 1.0 / jnp.sqrt(jnp.float32(K * C))
    return {
        'conv_w':    jax.random.normal(ks[0], (C, C), jnp.float32) / jnp.sqrt(jnp.float32(C)),
        'abn_g':     1.0 + 0.1 * jax.random.normal(ks[1], (1, C), jnp.float32),
        'abn_b':     0.1 * jax.random.normal(ks[2], (1, C), jnp.float32),
        'codewords': jax.random.uniform(ks[3], (K, C), jnp.float32, -std_code, std_code),
        'cw_scale':  jax.random.uniform(ks[4], (1, K), jnp.float32, -1.0, 0.0),
        'bn1_g':     1.0 + 0.1 * jax.random.normal(ks[5], (1, K), jnp.float32),
        'bn1_b':     0.1 * jax.random.normal(ks[6], (1, K), jnp.float32),
        'fc_w':      jax.random.normal(ks[7], (C, C), jnp.float32) / jnp.sqrt(jnp.float32(C)),
        'fc_b':      jnp.zeros((1, C), jnp.float32),
        'se_w':      jax.random.normal(ks[8], (nclass, C), jnp.float32) / jnp.sqrt(jnp.float32(C)),
        'se_b':      jnp.zeros((1, nclass), jnp.float32),
    }


if __name__ == "__main__":
    B, C, H, W = 2, 32, 8, 8       # in_channels = 32
    K, NCLASS = 32, 6              # ncodes = 32, nclass = 6

    key = jax.random.PRNGKey(0)
    kx, kp = jax.random.split(key)
    x = jax.random.normal(kx, (B, C, H, W), jnp.float32)
    params = _init_params(kp, C, NCLASS, K)

    out_x, out_se = jax.jit(enc_module_forward)(x, params)
    jax.block_until_ready((out_x, out_se))

    ref_x, ref_se = _reference(x, params)
    assert out_x.shape == (B, C, H, W) and out_se.shape == (B, NCLASS)
    assert bool(jnp.all(jnp.isfinite(out_x))) and bool(jnp.all(jnp.isfinite(out_se)))
    # bf16-in / f32-acc matmuls inside the kernel -> slightly looser tolerance
    assert jnp.allclose(out_x, ref_x, atol=2e-2, rtol=2e-2), \
        float(jnp.max(jnp.abs(out_x - ref_x)))
    assert jnp.allclose(out_se, ref_se, atol=2e-2, rtol=2e-2), \
        float(jnp.max(jnp.abs(out_se - ref_se)))

    print("KERNEL_OK")
</pallas_src>

<mosaic_0001>
module attributes {stable_mosaic.version = 11 : i64} {
  func.func @_gate_kernel(%arg0: i32, %arg1: memref<2x64x128xf32, #tpu.memory_space<vmem>>, %arg2: memref<2x128xf32, #tpu.memory_space<vmem>>, %arg3: memref<2x64x128xf32, #tpu.memory_space<vmem>>) attributes {dimension_semantics = [#tpu.dimension_semantics<parallel>], iteration_bounds = array<i64: 1>, scalar_prefetch = 0 : i64, scratch_operands = 0 : i64, tpu.core_type = #tpu.core_type<tc>, window_params = [{transform_indices = @transform_0, window_bounds = array<i64: 2, 64, 128>}, {pipeline_mode = #tpu.pipeline_mode<synchronous>, transform_indices = @transform_1, window_bounds = array<i64: 2, 128>}, {transform_indices = @transform_2, window_bounds = array<i64: 2, 64, 128>}]} {
    %c0 = arith.constant 0 : index
    %c0_0 = arith.constant 0 : index
    %0 = vector.load %arg2[%c0, %c0_0] : memref<2x128xf32, #tpu.memory_space<vmem>>, vector<2x128xf32>
    %c0_1 = arith.constant 0 : index
    %c0_2 = arith.constant 0 : index
    %c0_3 = arith.constant 0 : index
    %1 = vector.load %arg1[%c0_1, %c0_2, %c0_3] : memref<2x64x128xf32, #tpu.memory_space<vmem>>, vector<2x64x128xf32>
    %2 = vector.shape_cast %0 : vector<2x128xf32> to vector<2x1x128xf32>
    %3 = vector.broadcast %2 : vector<2x1x128xf32> to vector<2x64x128xf32>
    %4 = arith.mulf %1, %3 : vector<2x64x128xf32>
    %cst = arith.constant 0.000000e+00 : f32
    %5 = vector.broadcast %cst : f32 to vector<2x64x128xf32>
    %6 = arith.maximumf %4, %5 : vector<2x64x128xf32>
    %c0_4 = arith.constant 0 : index
    %c0_5 = arith.constant 0 : index
    %c0_6 = arith.constant 0 : index
    %7 = vector.load %arg3[%c0_4, %c0_5, %c0_6] : memref<2x64x128xf32, #tpu.memory_space<vmem>>, vector<2x64x128xf32>
    tpu.vector_store %arg3[%c0_4, %c0_5, %c0_6], %6 {strides = array<i32>} : memref<2x64x128xf32, #tpu.memory_space<vmem>>, vector<2x64x128xf32>,
    return
  }
  func.func @transform_0(%arg0: i32) -> (i32, i32, i32) {
    %c0_i32 = arith.constant 0 : i32
    %c0_i32_0 = arith.constant 0 : i32
    %c0_i32_1 = arith.constant 0 : i32
    return %c0_i32, %arg0, %c0_i32_0 : i32, i32, i32
  }
  func.func @transform_1(%arg0: i32) -> (i32, i32) {
    %c0_i32 = arith.constant 0 : i32
    %c0_i32_0 = arith.constant 0 : i32
    %c0_i32_1 = arith.constant 0 : i32
    return %c0_i32, %c0_i32_0 : i32, i32
  }
  func.func @transform_2(%arg0: i32) -> (i32, i32, i32) {
    %c0_i32 = arith.constant 0 : i32
    %c0_i32_0 = arith.constant 0 : i32
    %c0_i32_1 = arith.constant 0 : i32
    return %c0_i32, %arg0, %c0_i32_0 : i32, i32, i32
  }
}

module attributes {stable_mosaic.version = 11 : i64} {
  func.func @_enc_stats_kernel(%arg0: i32, %arg1: i32, %arg2: memref<2x64x128xf32, #tpu.memory_space<vmem>>, %arg3: memref<128x128xbf16, #tpu.memory_space<vmem>>, %arg4: memref<1x128xf32, #tpu.memory_space<vmem>>, %arg5: memref<1x128xf32, #tpu.memory_space<vmem>>, %arg6: memref<128x128xf32, #tpu.memory_space<vmem>>, %arg7: memref<128x128xbf16, #tpu.memory_space<vmem>>, %arg8: memref<1x128xf32, #tpu.memory_space<vmem>>, %arg9: memref<1x128xf32, #tpu.memory_space<vmem>>, %arg10: memref<1x128xf32, #tpu.memory_space<vmem>>, %arg11: memref<1x128xf32, #tpu.memory_space<vmem>>, %arg12: memref<128x128xf32, #tpu.memory_space<vmem>>, %arg13: memref<1x128xf32, #tpu.memory_space<vmem>>, %arg14: memref<6x128xf32, #tpu.memory_space<vmem>>, %arg15: memref<1x6xf32, #tpu.memory_space<vmem>>, %arg16: memref<2x128xf32, #tpu.memory_space<vmem>>, %arg17: memref<2x6xf32, #tpu.memory_space<vmem>>, %arg18: memref<1x128xf32, #tpu.memory_space<vmem>>, %arg19: memref<1x128xf32, #tpu.memory_space<vmem>>, %arg20: memref<2x128x128xf32, #tpu.memory_space<vmem>>, %arg21: memref<2x128xf32, #tpu.memory_space<vmem>>) attributes {dimension_semantics = [#tpu.dimension_semantics<arbitrary>, #tpu.dimension_semantics<arbitrary>], iteration_bounds = array<i64: 2, 1>, scalar_prefetch = 0 : i64, scratch_operands = 4 : i64, tpu.core_type = #tpu.core_type<tc>, window_params = [{transform_indices = @transform_0, window_bounds = array<i64: 2, 64, 128>}, {pipeline_mode = #tpu.pipeline_mode<synchronous>, transform_indices = @transform_1, window_bounds = array<i64: 128, 128>}, {pipeline_mode = #tpu.pipeline_mode<synchronous>, transform_indices = @transform_2, window_bounds = array<i64: 1, 128>}, {pipeline_mode = #tpu.pipeline_mode<synchronous>, transform_indices = @transform_3, window_bounds = array<i64: 1, 128>}, {pipeline_mode = #tpu.pipeline_mode<synchronous>, transform_indices = @transform_4, window_bounds = array<i64: 128, 128>}, {pipeline_mode = #tpu.pipeline_mode<synchronous>, transform_indices = @transform_5, window_bounds = array<i64: 128, 128>}, {pipeline_mode = #tpu.pipeline_mode<synchronous>, transform_indices = @transform_6, window_bounds = array<i64: 1, 128>}, {pipeline_mode = #tpu.pipeline_mode<synchronous>, transform_indices = @transform_7, window_bounds = array<i64: 1, 128>}, {pipeline_mode = #tpu.pipeline_mode<synchronous>, transform_indices = @transform_8, window_bounds = array<i64: 1, 128>}, {pipeline_mode = #tpu.pipeline_mode<synchronous>, transform_indices = @transform_9, window_bounds = array<i64: 1, 128>}, {pipeline_mode = #tpu.pipeline_mode<synchronous>, transform_indices = @transform_10, window_bounds = array<i64: 128, 128>}, {pipeline_mode = #tpu.pipeline_mode<synchronous>, transform_indices = @transform_11, window_bounds = array<i64: 1, 128>}, {pipeline_mode = #tpu.pipeline_mode<synchronous>, transform_indices = @transform_12, window_bounds = array<i64: 6, 128>}, {pipeline_mode = #tpu.pipeline_mode<synchronous>, transform_indices = @transform_13, window_bounds = array<i64: 1, 6>}, {pipeline_mode = #tpu.pipeline_mode<synchronous>, transform_indices = @transform_14, window_bounds = array<i64: 2, 128>}, {pipeline_mode = #tpu.pipeline_mode<synchronous>, transform_indices = @transform_15, window_bounds = array<i64: 2, 6>}]} {
    %c0 = arith.constant 0 : index
    %c0_0 = arith.constant 0 : index
    %c0_1 = arith.constant 0 : index
    %0 = vector.load %arg2[%c0, %c0_0, %c0_1] : memref<2x64x128xf32, #tpu.memory_space<vmem>>, vector<2x64x128xf32>
    %c0_i32 = arith.constant 0 : i32
    %1 = arith.cmpi eq, %arg0, %c0_i32 : i32
    %c0_i32_2 = arith.constant 0 : i32
    %2 = arith.cmpi eq, %arg1, %c0_i32_2 : i32
    %3 = arith.andi %1, %2 : i1
    %4 = arith.extui %3 : i1 to i32
    %c0_i32_3 = arith.constant 0 : i32
    %5 = arith.cmpi ne, %4, %c0_i32_3 : i32
    scf.if %5 {
      %cst_12 = arith.constant 0.000000e+00 : f32
      %22 = vector.broadcast %cst_12 : f32 to vector<1x128xf32>
      %c0_13 = arith.constant 0 : index
      %c0_14 = arith.constant 0 : index
      %23 = vector.load %arg18[%c0_13, %c0_14] : memref<1x128xf32, #tpu.memory_space<vmem>>, vector<1x128xf32>
      tpu.vector_store %arg18[%c0_13, %c0_14], %22 {strides = array<i32>} : memref<1x128xf32, #tpu.memory_space<vmem>>, vector<1x128xf32>,
      %cst_15 = arith.constant 0.000000e+00 : f32
      %24 = vector.broadcast %cst_15 : f32 to vector<1x128xf32>
      %c0_16 = arith.constant 0 : index
      %c0_17 = arith.constant 0 : index
      %25 = vector.load %arg19[%c0_16, %c0_17] : memref<1x128xf32, #tpu.memory_space<vmem>>, vector<1x128xf32>
      tpu.vector_store %arg19[%c0_16, %c0_17], %24 {strides = array<i32>} : memref<1x128xf32, #tpu.memory_space<vmem>>, vector<1x128xf32>,
      %cst_18 = arith.constant 0.000000e+00 : f32
      %26 = vector.broadcast %cst_18 : f32 to vector<2x128x128xf32>
      %c0_19 = arith.constant 0 : index
      %c0_20 = arith.constant 0 : index
      %c0_21 = arith.constant 0 : index
      %27 = vector.load %arg20[%c0_19, %c0_20, %c0_21] : memref<2x128x128xf32, #tpu.memory_space<vmem>>, vector<2x128x128xf32>
      tpu.vector_store %arg20[%c0_19, %c0_20, %c0_21], %26 {strides = array<i32>} : memref<2x128x128xf32, #tpu.memory_space<vmem>>, vector<2x128x128xf32>,
      %cst_22 = arith.constant 0.000000e+00 : f32
      %28 = vector.broadcast %cst_22 : f32 to vector<2x128xf32>
      %c0_23 = arith.constant 0 : index
      %c0_24 = arith.constant 0 : index
      %29 = vector.load %arg21[%c0_23, %c0_24] : memref<2x128xf32, #tpu.memory_space<vmem>>, vector<2x128xf32>
      tpu.vector_store %arg21[%c0_23, %c0_24], %28 {strides = array<i32>} : memref<2x128xf32, #tpu.memory_space<vmem>>, vector<2x128xf32>,
    } else {
    }
    %6 = vector.shape_cast %0 : vector<2x64x128xf32> to vector<128x128xf32>
    %7 = arith.truncf %6 : vector<128x128xf32> to vector<128x128xbf16>
    %c0_4 = arith.constant 0 : index
    %c0_5 = arith.constant 0 : index
    %8 = vector.load %arg3[%c0_4, %c0_5] : memref<128x128xbf16, #tpu.memory_space<vmem>>, vector<128x128xbf16>
    %cst = arith.constant dense<0.000000e+00> : vector<128x128xf32>
    %9 = tpu.matmul %7, %8, %cst {dimension_numbers = #tpu.dot_dimension_numbers<[1], [1], [0], [0], [0, 0, 1, 0], [], []>} : vector<128x128xbf16>, vector<128x128xbf16>, vector<128x128xf32> -> vector<128x128xf32>
    %10 = vector.shape_cast %9 : vector<128x128xf32> to vector<2x64x128xf32>
    %c0_i32_6 = arith.constant 0 : i32
    %11 = arith.cmpi eq, %arg0, %c0_i32_6 : i32
    %12 = arith.extui %11 : i1 to i32
    %c0_i32_7 = arith.constant 0 : i32
    %13 = arith.cmpi ne, %12, %c0_i32_7 : i32
    scf.if %13 {
      %c0_12 = arith.constant 0 : index
      %c0_13 = arith.constant 0 : index
      %22 = vector.load %arg18[%c0_12, %c0_13] : memref<1x128xf32, #tpu.memory_space<vmem>>, vector<1x128xf32>
      %cst_14 = arith.constant dense<0.000000e+00> : vector<128xf32>
      %23 = vector.multi_reduction <add>, %9, %cst_14 [0] : vector<128x128xf32> to vector<128xf32>
      %24 = vector.shape_cast %23 : vector<128xf32> to vector<1x128xf32>
      %25 = arith.addf %22, %24 : vector<1x128xf32>
      %c0_15 = arith.constant 0 : index
      %c0_16 = arith.constant 0 : index
      %26 = vector.load %arg18[%c0_15, %c0_16] : memref<1x128xf32, #tpu.memory_space<vmem>>, vector<1x128xf32>
      tpu.vector_store %arg18[%c0_15, %c0_16], %25 {strides = array<i32>} : memref<1x128xf32, #tpu.memory_space<vmem>>, vector<1x128xf32>,
      %c0_17 = arith.constant 0 : index
      %c0_18 = arith.constant 0 : index
      %27 = vector.load %arg19[%c0_17, %c0_18] : memref<1x128xf32, #tpu.memory_space<vmem>>, vector<1x128xf32>
      %28 = arith.mulf %9, %9 : vector<128x128xf32>
      %cst_19 = arith.constant dense<0.000000e+00> : vector<128xf32>
      %29 = vector.multi_reduction <add>, %28, %cst_19 [0] : vector<128x128xf32> to vector<128xf32>
      %30 = vector.shape_cast %29 : vector<128xf32> to vector<1x128xf32>
      %31 = arith.addf %27, %30 : vector<1x128xf32>
      %c0_20 = arith.constant 0 : index
      %c0_21 = arith.constant 0 : index
      %32 = vector.load %arg19[%c0_20, %c0_21] : memref<1x128xf32, #tpu.memory_space<vmem>>, vector<1x128xf32>
      tpu.vector_store %arg19[%c0_20, %c0_21], %31 {strides = array<i32>} : memref<1x128xf32, #tpu.memory_space<vmem>>, vector<1x128xf32>,
    } else {
    }
    %c1_i32 = arith.constant 1 : i32
    %14 = arith.cmpi eq, %arg0, %c1_i32 : i32
    %15 = arith.extui %14 : i1 to i32
    %c0_i32_8 = arith.constant 0 : i32
    %16 = arith.cmpi ne, %15, %c0_i32_8 : i32
    scf.if %16 {
      %c0_12 = arith.constant 0 : index
      %c0_13 = arith.constant 0 : index
      %22 = vector.load %arg18[%c0_12, %c0_13] : memref<1x128xf32, #tpu.memory_space<vmem>>, vector<1x128xf32>
      %cst_14 = arith.constant 7.812500e-03 : f32
      %23 = vector.broadcast %cst_14 : f32 to vector<1x128xf32>
      %24 = arith.mulf %22, %23 : vector<1x128xf32>
      %c0_15 = arith.constant 0 : index
      %c0_16 = arith.constant 0 : index
      %25 = vector.load %arg19[%c0_15, %c0_16] : memref<1x128xf32, #tpu.memory_space<vmem>>, vector<1x128xf32>
      %cst_17 = arith.constant 7.812500e-03 : f32
      %26 = vector.broadcast %cst_17 : f32 to vector<1x128xf32>
      %27 = arith.mulf %25, %26 : vector<1x128xf32>
      %28 = arith.mulf %24, %24 : vector<1x128xf32>
      %29 = arith.subf %27, %28 : vector<1x128xf32>
      %cst_18 = arith.constant 0.000000e+00 : f32
      %30 = vector.broadcast %cst_18 : f32 to vector<1x128xf32>
      %31 = arith.maximumf %29, %30 : vector<1x128xf32>
      %32 = vector.shape_cast %24 : vector<1x128xf32> to vector<1x1x128xf32>
      %33 = vector.broadcast %32 : vector<1x1x128xf32> to vector<2x64x128xf32>
      %34 = arith.subf %10, %33 : vector<2x64x128xf32>
      %cst_19 = arith.constant 9.99999974E-6 : f32
      %35 = vector.broadcast %cst_19 : f32 to vector<1x128xf32>
      %36 = arith.addf %31, %35 : vector<1x128xf32>
      %37 = math.rsqrt %36 : vector<1x128xf32>
      %38 = vector.shape_cast %37 : vector<1x128xf32> to vector<1x1x128xf32>
      %39 = vector.broadcast %38 : vector<1x1x128xf32> to vector<2x64x128xf32>
      %40 = arith.mulf %34, %39 : vector<2x64x128xf32>
      %c0_20 = arith.constant 0 : index
      %c0_21 = arith.constant 0 : index
      %41 = vector.load %arg4[%c0_20, %c0_21] : memref<1x128xf32, #tpu.memory_space<vmem>>, vector<1x128xf32>
      %42 = vector.shape_cast %41 : vector<1x128xf32> to vector<1x1x128xf32>
      %43 = vector.broadcast %42 : vector<1x1x128xf32> to vector<2x64x128xf32>
      %44 = arith.mulf %40, %43 : vector<2x64x128xf32>
      %c0_22 = arith.constant 0 : index
      %c0_23 = arith.constant 0 : index
      %45 = vector.load %arg5[%c0_22, %c0_23] : memref<1x128xf32, #tpu.memory_space<vmem>>, vector<1x128xf32>
      %46 = vector.shape_cast %45 : vector<1x128xf32> to vector<1x1x128xf32>
      %47 = vector.broadcast %46 : vector<1x1x128xf32> to vector<2x64x128xf32>
      %48 = arith.addf %44, %47 : vector<2x64x128xf32>
      %cst_24 = arith.constant 0.000000e+00 : f32
      %49 = vector.broadcast %cst_24 : f32 to vector<2x64x128xf32>
      %50 = arith.cmpf ogt, %48, %49 : vector<2x64x128xf32>
      %cst_25 = arith.constant 0.00999999977 : f32
      %51 = vector.broadcast %cst_25 : f32 to vector<2x64x128xf32>
      %52 = arith.mulf %51, %48 : vector<2x64x128xf32>
      %53 = arith.select %50, %48, %52 : vector<2x64x128xi1>, vector<2x64x128xf32>
      %54 = arith.truncf %53 : vector<2x64x128xf32> to vector<2x64x128xbf16>
      %c0_26 = arith.constant 0 : index
      %c0_27 = arith.constant 0 : index
      %55 = vector.load %arg9[%c0_26, %c0_27] : memref<1x128xf32, #tpu.memory_space<vmem>>, vector<1x128xf32>
      %56 = arith.mulf %53, %53 : vector<2x64x128xf32>
      %cst_28 = arith.constant dense<0.000000e+00> : vector<2x64xf32>
      %57 = vector.multi_reduction <add>, %56, %cst_28 [2] : vector<2x64x128xf32> to vector<2x64xf32>
      %58 = vector.shape_cast %57 : vector<2x64xf32> to vector<2x64x1xf32>
      %c0_29 = arith.constant 0 : index
      %c0_30 = arith.constant 0 : index
      %59 = vector.load %arg8[%c0_29, %c0_30] : memref<1x128xf32, #tpu.memory_space<vmem>>, vector<1x128xf32>
      %60 = vector.shape_cast %59 : vector<1x128xf32> to vector<1x1x128xf32>
      %61 = vector.shape_cast %54 : vector<2x64x128xbf16> to vector<128x128xbf16>
      %c0_31 = arith.constant 0 : index
      %c0_32 = arith.constant 0 : index
      %62 = vector.load %arg7[%c0_31, %c0_32] : memref<128x128xbf16, #tpu.memory_space<vmem>>, vector<128x128xbf16>
      %cst_33 = arith.constant dense<0.000000e+00> : vector<128x128xf32>
      %63 = tpu.matmul %61, %62, %cst_33 {dimension_numbers = #tpu.dot_dimension_numbers<[1], [1], [0], [0], [0, 0, 1, 0], [], []>} : vector<128x128xbf16>, vector<128x128xbf16>, vector<128x128xf32> -> vector<128x128xf32>
      %64 = vector.shape_cast %63 : vector<128x128xf32> to vector<2x64x128xf32>
      %65 = vector.shape_cast %55 : vector<1x128xf32> to vector<1x1x128xf32>
      %cst_34 = arith.constant 2.000000e+00 : f32
      %66 = vector.broadcast %cst_34 : f32 to vector<2x64x128xf32>
      %67 = arith.mulf %66, %64 : vector<2x64x128xf32>
      %68 = vector.broadcast %58 : vector<2x64x1xf32> to vector<2x64x128xf32>
      %69 = arith.subf %68, %67 : vector<2x64x128xf32>
      %70 = vector.broadcast %60 : vector<1x1x128xf32> to vector<2x64x128xf32>
      %71 = arith.addf %69, %70 : vector<2x64x128xf32>
      %72 = vector.broadcast %65 : vector<1x1x128xf32> to vector<2x64x128xf32>
      %73 = arith.mulf %72, %71 : vector<2x64x128xf32>
      %74 = tpu.iota {dimensions = array<i32: 2>} : vector<1x1x128xi32>
      %c32_i32 = arith.constant 32 : i32
      %75 = vector.broadcast %c32_i32 : i32 to vector<1x1x128xi32>
      %76 = arith.cmpi slt, %74, %75 : vector<1x1x128xi32>
      %cst_35 = arith.constant -1.000000e+30 : f32
      %77 = vector.shape_cast %76 : vector<1x1x128xi1> to vector<1x1x128xi1>
      %78 = vector.broadcast %77 : vector<1x1x128xi1> to vector<2x64x128xi1>
      %79 = vector.broadcast %cst_35 : f32 to vector<2x64x128xf32>
      %80 = arith.select %78, %73, %79 : vector<2x64x128xi1>, vector<2x64x128xf32>
      %cst_36 = arith.constant dense<0xFF800000> : vector<2x64xf32>
      %81 = vector.multi_reduction <maximumf>, %80, %cst_36 [2] : vector<2x64x128xf32> to vector<2x64xf32>
      %82 = vector.shape_cast %81 : vector<2x64xf32> to vector<2x64x1xf32>
      %83 = vector.broadcast %82 : vector<2x64x1xf32> to vector<2x64x128xf32>
      %84 = arith.subf %80, %83 : vector<2x64x128xf32>
      %85 = math.exp %84 : vector<2x64x128xf32>
      %cst_37 = arith.constant dense<0.000000e+00> : vector<2x64xf32>
      %86 = vector.multi_reduction <add>, %85, %cst_37 [2] : vector<2x64x128xf32> to vector<2x64xf32>
      %87 = vector.shape_cast %86 : vector<2x64xf32> to vector<2x64x1xf32>
      %88 = tpu.reciprocal %87 {approx = true} : vector<2x64x1xf32> -> vector<2x64x1xf32>
      %89 = vector.broadcast %88 : vector<2x64x1xf32> to vector<2x64x128xf32>
      %90 = arith.mulf %85, %89 : vector<2x64x128xf32>
      %c0_38 = arith.constant 0 : index
      %c0_39 = arith.constant 0 : index
      %c0_40 = arith.constant 0 : index
      %91 = vector.load %arg20[%c0_38, %c0_39, %c0_40] : memref<2x128x128xf32, #tpu.memory_space<vmem>>, vector<2x128x128xf32>
      %92 = arith.truncf %90 : vector<2x64x128xf32> to vector<2x64x128xbf16>
      %cst_41 = arith.constant dense<0.000000e+00> : vector<2x128x128xf32>
      %93 = tpu.matmul %92, %54, %cst_41 {dimension_numbers = #tpu.dot_dimension_numbers<[1], [1], [2], [2], [0, 0, 0, 2, 1, 2], [0], [0]>} : vector<2x64x128xbf16>, vector<2x64x128xbf16>, vector<2x128x128xf32> -> vector<2x128x128xf32>
      %94 = arith.addf %91, %93 : vector<2x128x128xf32>
      %c0_42 = arith.constant 0 : index
      %c0_43 = arith.constant 0 : index
      %c0_44 = arith.constant 0 : index
      %95 = vector.load %arg20[%c0_42, %c0_43, %c0_44] : memref<2x128x128xf32, #tpu.memory_space<vmem>>, vector<2x128x128xf32>
      tpu.vector_store %arg20[%c0_42, %c0_43, %c0_44], %94 {strides = array<i32>} : memref<2x128x128xf32, #tpu.memory_space<vmem>>, vector<2x128x128xf32>,
      %c0_45 = arith.constant 0 : index
      %c0_46 = arith.constant 0 : index
      %96 = vector.load %arg21[%c0_45, %c0_46] : memref<2x128xf32, #tpu.memory_space<vmem>>, vector<2x128xf32>
      %cst_47 = arith.constant dense<0.000000e+00> : vector<2x128xf32>
      %97 = vector.multi_reduction <add>, %90, %cst_47 [1] : vector<2x64x128xf32> to vector<2x128xf32>
      %98 = arith.addf %96, %97 : vector<2x128xf32>
      %c0_48 = arith.constant 0 : index
      %c0_49 = arith.constant 0 : index
      %99 = vector.load %arg21[%c0_48, %c0_49] : memref<2x128xf32, #tpu.memory_space<vmem>>, vector<2x128xf32>
      tpu.vector_store %arg21[%c0_48, %c0_49], %98 {strides = array<i32>} : memref<2x128xf32, #tpu.memory_space<vmem>>, vector<2x128xf32>,
    } else {
    }
    %c1_i32_9 = arith.constant 1 : i32
    %17 = arith.cmpi eq, %arg0, %c1_i32_9 : i32
    %c0_i32_10 = arith.constant 0 : i32
    %18 = arith.cmpi eq, %arg1, %c0_i32_10 : i32
    %19 = arith.andi %17, %18 : i1
    %20 = arith.extui %19 : i1 to i32
    %c0_i32_11 = arith.constant 0 : i32
    %21 = arith.cmpi ne, %20, %c0_i32_11 : i32
    scf.if %21 {
      %c0_12 = arith.constant 0 : index
      %c0_13 = arith.constant 0 : index
      %22 = vector.load %arg6[%c0_12, %c0_13] : memref<128x128xf32, #tpu.memory_space<vmem>>, vector<128x128xf32>
      %c0_14 = arith.constant 0 : index
      %c0_15 = arith.constant 0 : index
      %c0_16 = arith.constant 0 : index
      %23 = vector.load %arg20[%c0_14, %c0_15, %c0_16] : memref<2x128x128xf32, #tpu.memory_space<vmem>>, vector<2x128x128xf32>
      %c0_17 = arith.constant 0 : index
      %c0_18 = arith.constant 0 : index
      %24 = vector.load %arg21[%c0_17, %c0_18] : memref<2x128xf32, #tpu.memory_space<vmem>>, vector<2x128xf32>
      %25 = vector.shape_cast %24 : vector<2x128xf32> to vector<2x128x1xf32>
      %26 = vector.shape_cast %22 : vector<128x128xf32> to vector<1x128x128xf32>
      %27 = vector.broadcast %25 : vector<2x128x1xf32> to vector<2x128x128xf32>
      %28 = vector.broadcast %26 : vector<1x128x128xf32> to vector<2x128x128xf32>
      %29 = arith.mulf %27, %28 : vector<2x128x128xf32>
      %30 = arith.subf %23, %29 : vector<2x128x128xf32>
      %cst_19 = arith.constant dense<0.000000e+00> : vector<128xf32>
      %31 = vector.multi_reduction <add>, %30, %cst_19 [0, 2] : vector<2x128x128xf32> to vector<128xf32>
      %32 = vector.shape_cast %31 : vector<128xf32> to vector<1x128x1xf32>
      %cst_20 = arith.constant 1.562500e-02 : f32
      %33 = vector.broadcast %cst_20 : f32 to vector<1x128x1xf32>
      %34 = arith.mulf %32, %33 : vector<1x128x1xf32>
      %35 = arith.mulf %30, %30 : vector<2x128x128xf32>
      %cst_21 = arith.constant dense<0.000000e+00> : vector<128xf32>
      %36 = vector.multi_reduction <add>, %35, %cst_21 [0, 2] : vector<2x128x128xf32> to vector<128xf32>
      %37 = vector.shape_cast %36 : vector<128xf32> to vector<1x128x1xf32>
      %cst_22 = arith.constant 1.562500e-02 : f32
      %38 = vector.broadcast %cst_22 : f32 to vector<1x128x1xf32>
      %39 = arith.mulf %37, %38 : vector<1x128x1xf32>
      %40 = arith.mulf %34, %34 : vector<1x128x1xf32>
      %41 = arith.subf %39, %40 : vector<1x128x1xf32>
      %cst_23 = arith.constant 0.000000e+00 : f32
      %42 = vector.broadcast %cst_23 : f32 to vector<1x128x1xf32>
      %43 = arith.maximumf %41, %42 : vector<1x128x1xf32>
      %44 = vector.broadcast %34 : vector<1x128x1xf32> to vector<2x128x128xf32>
      %45 = arith.subf %30, %44 : vector<2x128x128xf32>
      %cst_24 = arith.constant 9.99999974E-6 : f32
      %46 = vector.broadcast %cst_24 : f32 to vector<1x128x1xf32>
      %47 = arith.addf %43, %46 : vector<1x128x1xf32>
      %48 = math.rsqrt %47 : vector<1x128x1xf32>
      %49 = vector.broadcast %48 : vector<1x128x1xf32> to vector<2x128x128xf32>
      %50 = arith.mulf %45, %49 : vector<2x128x128xf32>
      %c0_25 = arith.constant 0 : index
      %c0_26 = arith.constant 0 : index
      %51 = vector.load %arg10[%c0_25, %c0_26] : memref<1x128xf32, #tpu.memory_space<vmem>>, vector<1x128xf32>
      %52 = vector.shape_cast %51 : vector<1x128xf32> to vector<1x128x1xf32>
      %53 = vector.broadcast %52 : vector<1x128x1xf32> to vector<2x128x128xf32>
      %54 = arith.mulf %50, %53 : vector<2x128x128xf32>
      %c0_27 = arith.constant 0 : index
      %c0_28 = arith.constant 0 : index
      %55 = vector.load %arg11[%c0_27, %c0_28] : memref<1x128xf32, #tpu.memory_space<vmem>>, vector<1x128xf32>
      %56 = vector.shape_cast %55 : vector<1x128xf32> to vector<1x128x1xf32>
      %57 = vector.broadcast %56 : vector<1x128x1xf32> to vector<2x128x128xf32>
      %58 = arith.addf %54, %57 : vector<2x128x128xf32>
      %cst_29 = arith.constant 0.000000e+00 : f32
      %59 = vector.broadcast %cst_29 : f32 to vector<2x128x128xf32>
      %60 = arith.maximumf %58, %59 : vector<2x128x128xf32>
      %cst_30 = arith.constant dense<0.000000e+00> : vector<2x128xf32>
      %61 = vector.multi_reduction <add>, %60, %cst_30 [1] : vector<2x128x128xf32> to vector<2x128xf32>
      %cst_31 = arith.constant 3.125000e-02 : f32
      %62 = vector.broadcast %cst_31 : f32 to vector<2x128xf32>
      %63 = arith.mulf %61, %62 : vector<2x128xf32>
      %c0_32 = arith.constant 0 : index
      %c0_33 = arith.constant 0 : index
      %64 = vector.load %arg12[%c0_32, %c0_33] : memref<128x128xf32, #tpu.memory_space<vmem>>, vector<128x128xf32>
      %cst_34 = arith.constant dense<0.000000e+00> : vector<2x128xf32>
      %65 = tpu.matmul %63, %64, %cst_34 {dimension_numbers = #tpu.dot_dimension_numbers<[1], [1], [0], [0], [0, 0, 1, 0], [], []>, precision = #tpu.contract_precision<fp32>} : vector<2x128xf32>, vector<128x128xf32>, vector<2x128xf32> -> vector<2x128xf32>
      %c0_35 = arith.constant 0 : index
      %c0_36 = arith.constant 0 : index
      %66 = vector.load %arg13[%c0_35, %c0_36] : memref<1x128xf32, #tpu.memory_space<vmem>>, vector<1x128xf32>
      %67 = vector.broadcast %66 : vector<1x128xf32> to vector<2x128xf32>
      %68 = arith.addf %65, %67 : vector<2x128xf32>
      %cst_37 = arith.constant 0.000000e+00 : f32
      %69 = vector.broadcast %cst_37 : f32 to vector<2x128xf32>
      %70 = arith.subf %69, %68 : vector<2x128xf32>
      %71 = math.exp %70 : vector<2x128xf32>
      %cst_38 = arith.constant 1.000000e+00 : f32
      %72 = vector.broadcast %cst_38 : f32 to vector<2x128xf32>
      %73 = arith.addf %72, %71 : vector<2x128xf32>
      %cst_39 = arith.constant 1.000000e+00 : f32
      %74 = vector.broadcast %cst_39 : f32 to vector<2x128xf32>
      %75 = arith.divf %74, %73 : vector<2x128xf32>
      %cst_40 = arith.constant 1.000000e+00 : f32
      %76 = vector.broadcast %cst_40 : f32 to vector<2x128xf32>
      %77 = arith.addf %76, %75 : vector<2x128xf32>
      %c0_41 = arith.constant 0 : index
      %c0_42 = arith.constant 0 : index
      %78 = vector.load %arg16[%c0_41, %c0_42] : memref<2x128xf32, #tpu.memory_space<vmem>>, vector<2x128xf32>
      tpu.vector_store %arg16[%c0_41, %c0_42], %77 {strides = array<i32>} : memref<2x128xf32, #tpu.memory_space<vmem>>, vector<2x128xf32>,
      %c0_43 = arith.constant 0 : index
      %c0_44 = arith.constant 0 : index
      %79 = vector.load %arg14[%c0_43, %c0_44] : memref<6x128xf32, #tpu.memory_space<vmem>>, vector<6x128xf32>
      %cst_45 = arith.constant dense<0.000000e+00> : vector<2x6xf32>
      %80 = tpu.matmul %63, %79, %cst_45 {dimension_numbers = #tpu.dot_dimension_numbers<[1], [1], [0], [0], [0, 0, 1, 0], [], []>, precision = #tpu.contract_precision<fp32>} : vector<2x128xf32>, vector<6x128xf32>, vector<2x6xf32> -> vector<2x6xf32>
      %c0_46 = arith.constant 0 : index
      %c0_47 = arith.constant 0 : index
      %81 = vector.load %arg15[%c0_46, %c0_47] : memref<1x6xf32, #tpu.memory_space<vmem>>, vector<1x6xf32>
      %82 = vector.broadcast %81 : vector<1x6xf32> to vector<2x6xf32>
      %83 = arith.addf %80, %82 : vector<2x6xf32>
      %c0_48 = arith.constant 0 : index
      %c0_49 = arith.constant 0 : index
      %84 = vector.load %arg17[%c0_48, %c0_49] : memref<2x6xf32, #tpu.memory_space<vmem>>, vector<2x6xf32>
      tpu.vector_store %arg17[%c0_48, %c0_49], %83 {strides = array<i32>} : memref<2x6xf32, #tpu.memory_space<vmem>>, vector<2x6xf32>,
    } else {
    }
    return
  }
  func.func @transform_0(%arg0: i32, %arg1: i32) -> (i32, i32, i32) {
    %c0_i32 = arith.constant 0 : i32
    %c0_i32_0 = arith.constant 0 : i32
    %c0_i32_1 = arith.constant 0 : i32
    return %c0_i32, %arg1, %c0_i32_0 : i32, i32, i32
  }
  func.func @transform_1(%arg0: i32, %arg1: i32) -> (i32, i32) {
    %c0_i32 = arith.constant 0 : i32
    %c0_i32_0 = arith.constant 0 : i32
    %c0_i32_1 = arith.constant 0 : i32
    return %c0_i32, %c0_i32_0 : i32, i32
  }
  func.func @transform_2(%arg0: i32, %arg1: i32) -> (i32, i32) {
    %c0_i32 = arith.constant 0 : i32
    %c0_i32_0 = arith.constant 0 : i32
    %c0_i32_1 = arith.constant 0 : i32
    return %c0_i32, %c0_i32_0 : i32, i32
  }
  func.func @transform_3(%arg0: i32, %arg1: i32) -> (i32, i32) {
    %c0_i32 = arith.constant 0 : i32
    %c0_i32_0 = arith.constant 0 : i32
    %c0_i32_1 = arith.constant 0 : i32
    return %c0_i32, %c0_i32_0 : i32, i32
  }
  func.func @transform_4(%arg0: i32, %arg1: i32) -> (i32, i32) {
    %c0_i32 = arith.constant 0 : i32
    %c0_i32_0 = arith.constant 0 : i32
    %c0_i32_1 = arith.constant 0 : i32
    return %c0_i32, %c0_i32_0 : i32, i32
  }
  func.func @transform_5(%arg0: i32, %arg1: i32) -> (i32, i32) {
    %c0_i32 = arith.constant 0 : i32
    %c0_i32_0 = arith.constant 0 : i32
    %c0_i32_1 = arith.constant 0 : i32
    return %c0_i32, %c0_i32_0 : i32, i32
  }
  func.func @transform_6(%arg0: i32, %arg1: i32) -> (i32, i32) {
    %c0_i32 = arith.constant 0 : i32
    %c0_i32_0 = arith.constant 0 : i32
    %c0_i32_1 = arith.constant 0 : i32
    return %c0_i32, %c0_i32_0 : i32, i32
  }
  func.func @transform_7(%arg0: i32, %arg1: i32) -> (i32, i32) {
    %c0_i32 = arith.constant 0 : i32
    %c0_i32_0 = arith.constant 0 : i32
    %c0_i32_1 = arith.constant 0 : i32
    return %c0_i32, %c0_i32_0 : i32, i32
  }
  func.func @transform_8(%arg0: i32, %arg1: i32) -> (i32, i32) {
    %c0_i32 = arith.constant 0 : i32
    %c0_i32_0 = arith.constant 0 : i32
    %c0_i32_1 = arith.constant 0 : i32
    return %c0_i32, %c0_i32_0 : i32, i32
  }
  func.func @transform_9(%arg0: i32, %arg1: i32) -> (i32, i32) {
    %c0_i32 = arith.constant 0 : i32
    %c0_i32_0 = arith.constant 0 : i32
    %c0_i32_1 = arith.constant 0 : i32
    return %c0_i32, %c0_i32_0 : i32, i32
  }
  func.func @transform_10(%arg0: i32, %arg1: i32) -> (i32, i32) {
    %c0_i32 = arith.constant 0 : i32
    %c0_i32_0 = arith.constant 0 : i32
    %c0_i32_1 = arith.constant 0 : i32
    return %c0_i32, %c0_i32_0 : i32, i32
  }
  func.func @transform_11(%arg0: i32, %arg1: i32) -> (i32, i32) {
    %c0_i32 = arith.constant 0 : i32
    %c0_i32_0 = arith.constant 0 : i32
    %c0_i32_1 = arith.constant 0 : i32
    return %c0_i32, %c0_i32_0 : i32, i32
  }
  func.func @transform_12(%arg0: i32, %arg1: i32) -> (i32, i32) {
    %c0_i32 = arith.constant 0 : i32
    %c0_i32_0 = arith.constant 0 : i32
    %c0_i32_1 = arith.constant 0 : i32
    return %c0_i32, %c0_i32_0 : i32, i32
  }
  func.func @transform_13(%arg0: i32, %arg1: i32) -> (i32, i32) {
    %c0_i32 = arith.constant 0 : i32
    %c0_i32_0 = arith.constant 0 : i32
    %c0_i32_1 = arith.constant 0 : i32
    return %c0_i32, %c0_i32_0 : i32, i32
  }
  func.func @transform_14(%arg0: i32, %arg1: i32) -> (i32, i32) {
    %c0_i32 = arith.constant 0 : i32
    %c0_i32_0 = arith.constant 0 : i32
    %c0_i32_1 = arith.constant 0 : i32
    return %c0_i32, %c0_i32_0 : i32, i32
  }
  func.func @transform_15(%arg0: i32, %arg1: i32) -> (i32, i32) {
    %c0_i32 = arith.constant 0 : i32
    %c0_i32_0 = arith.constant 0 : i32
    %c0_i32_1 = arith.constant 0 : i32
    return %c0_i32, %c0_i32_0 : i32, i32
  }
}

</mosaic_0001>

<bundles_post_ra>
// kernel: enc_module_forward.3
= control target key start
LH: loop header
LB: loop body
LE: loop exit
PB: predicated region body
PF: predicated region fallthrough
CT: control target
= control target key end

     0   :  { %v40_v0 = vlaneseq  ;;  %v115_v2 = vmov 1966171168   ;;  %s230_s1 = inlined_call_operand.vmem [shape: f32[2,128], index: 1, kind: input, shape index: {}]   ;;  %s231_s0 = inlined_call_operand.vmem [shape: f32[2,64,128], index: 0, kind: input, shape index: {}, may-alias: {0,2}]   ;;  %s232_s2 = inlined_call_operand.vmem [shape: f32[2,64,128], index: 2, kind: output, shape index: {}, may-alias: {0,2}]  }
   0x1   :  { %v113_v1 = vld.sshfl [vmem:[%s230_s1] sm:$0x11 pattern:$0x75316420]  ;;  %v38_v3 = vunpack.c.l.s4 %v115_v2  ;;  %v13_v11 = vld [vmem:[%s231_s0 + $0x8] sm:$0xff]  ;;  %v14_v13 = vld [vmem:[%s231_s0 + $0x10] sm:$0xff] }
   0x2   :  { %v41_v4 = vshrl.u32 %v40_v0, 7  ;;  %v36_v6 = vcombine.high %v113_v1, %v113_v1  ;;  %v12_v9 = vld [vmem:[%s231_s0] sm:$0xff]  ;;  %v15_v14 = vld [vmem:[%s231_s0 + $0x18] sm:$0xff]  ;;  %v17_v17 = vld [vmem:[%s231_s0 + $0x28] sm:$0xff] }
   0x3   :  { %v39_v5 = vunpack.c.0.s8 %v38_v3  ;;  %v16_v15 = vld [vmem:[%s231_s0 + $0x20] sm:$0xff]  ;;  %v18_v18 = vld [vmem:[%s231_s0 + $0x30] sm:$0xff]  ;;  %v19_v19 = vld [vmem:[%s231_s0 + $0x38] sm:$0xff] }
   0x4   :  { %v53_v8 = vsub.s32 0, %v41_v4  ;;  %v20_v25 = vld [vmem:[%s231_s0 + $0x40] sm:$0xff]  ;;  %v21_v26 = vld [vmem:[%s231_s0 + $0x48] sm:$0xff]  ;;  %v22_v27 = vld [vmem:[%s231_s0 + $0x50] sm:$0xff] }
   0x5   :  { %v42_v7 = vsub.s32 %v39_v5, %v41_v4  ;;  %v23_v32 = vld [vmem:[%s231_s0 + $0x58] sm:$0xff]  ;;  %v24_v33 = vld [vmem:[%s231_s0 + $0x60] sm:$0xff]  ;;  %v25_v34 = vld [vmem:[%s231_s0 + $0x68] sm:$0xff] }
   0x6   :  { %v26_v39 = vld [vmem:[%s231_s0 + $0x70] sm:$0xff]  ;;  %v27_v40 = vld [vmem:[%s231_s0 + $0x78] sm:$0xff] }
   0x7   :  { %v43_v10 = vrot.slane %v113_v1, %v42_v7  ;;  %v50_v12 = vrot.slane %v36_v6, %v42_v7 }
   0x9   :  { %v54_v16 = vrot.slane %v43_v10, %v53_v8  ;;  %v58_v20 = vrot.slane %v50_v12, %v53_v8 }
   0xb   :  { %v61_v21 = vmul.f32 %v54_v16, %v12_v9  ;;  %v62_v22 = vmul.f32 %v54_v16, %v13_v11  ;;  %v63_v23 = vmul.f32 %v54_v16, %v14_v13  ;;  %v64_v24 = vmul.f32 %v54_v16, %v15_v14 }
   0xc   :  { %v65_v28 = vmul.f32 %v54_v16, %v16_v15  ;;  %v66_v29 = vmul.f32 %v54_v16, %v17_v17  ;;  %v67_v30 = vmul.f32 %v54_v16, %v18_v18  ;;  %v68_v31 = vmul.f32 %v54_v16, %v19_v19 }
   0xd   :  { %v77_v35 = vmax.f32 %v61_v21, 0.0  ;;  %v78_v36 = vmax.f32 %v62_v22, 0.0  ;;  %v79_v37 = vmax.f32 %v63_v23, 0.0  ;;  %v80_v38 = vmax.f32 %v64_v24, 0.0 }
   0xe   :  { %v81_v41 = vmax.f32 %v65_v28, 0.0  ;;  %v82_v42 = vmax.f32 %v66_v29, 0.0  ;;  %v83_v43 = vmax.f32 %v67_v30, 0.0  ;;  %v84_v44 = vmax.f32 %v68_v31, 0.0 }
   0xf   :  { %93 = vst [vmem:[%s232_s2] sm:$0xff] %v77_v35  ;;  %94 = vst [vmem:[%s232_s2 + $0x8] sm:$0xff] %v78_v36  ;;  %v69_v45 = vmul.f32 %v58_v20, %v20_v25  ;;  %v70_v46 = vmul.f32 %v58_v20, %v21_v26  ;;  %v71_v47 = vmul.f32 %v58_v20, %v22_v27 }
  0x10   :  { %95 = vst [vmem:[%s232_s2 + $0x10] sm:$0xff] %v79_v37  ;;  %96 = vst [vmem:[%s232_s2 + $0x18] sm:$0xff] %v80_v38  ;;  %v72_v48 = vmul.f32 %v58_v20, %v23_v32  ;;  %v73_v49 = vmul.f32 %v58_v20, %v24_v33  ;;  %v74_v50 = vmul.f32 %v58_v20, %v25_v34 }
  0x11   :  { %97 = vst [vmem:[%s232_s2 + $0x20] sm:$0xff] %v81_v41  ;;  %98 = vst [vmem:[%s232_s2 + $0x28] sm:$0xff] %v82_v42  ;;  %v75_v51 = vmul.f32 %v58_v20, %v26_v39  ;;  %v76_v52 = vmul.f32 %v58_v20, %v27_v40  ;;  %v85_v53 = vmax.f32 %v69_v45, 0.0  ;;  %v86_v54 = vmax.f32 %v70_v46, 0.0 }
  0x12   :  { %99 = vst [vmem:[%s232_s2 + $0x30] sm:$0xff] %v83_v43  ;;  %100 = vst [vmem:[%s232_s2 + $0x38] sm:$0xff] %v84_v44  ;;  %v87_v55 = vmax.f32 %v71_v47, 0.0  ;;  %v88_v56 = vmax.f32 %v72_v48, 0.0  ;;  %v89_v57 = vmax.f32 %v73_v49, 0.0  ;;  %v90_v58 = vmax.f32 %v74_v50, 0.0 }
  0x13   :  { %v91_v59 = vmax.f32 %v75_v51, 0.0  ;;  %v92_v60 = vmax.f32 %v76_v52, 0.0  ;;  %101 = vst [vmem:[%s232_s2 + $0x40] sm:$0xff] %v85_v53  ;;  %102 = vst [vmem:[%s232_s2 + $0x48] sm:$0xff] %v86_v54 }
  0x14   :  { %103 = vst [vmem:[%s232_s2 + $0x50] sm:$0xff] %v87_v55  ;;  %104 = vst [vmem:[%s232_s2 + $0x58] sm:$0xff] %v88_v56 }
  0x15   :  { %105 = vst [vmem:[%s232_s2 + $0x60] sm:$0xff] %v89_v57  ;;  %106 = vst [vmem:[%s232_s2 + $0x68] sm:$0xff] %v90_v58 }
  0x16   :  { %107 = vst [vmem:[%s232_s2 + $0x70] sm:$0xff] %v91_v59  ;;  %108 = vst [vmem:[%s232_s2 + $0x78] sm:$0xff] %v92_v60 }

// kernel: enc_module_forward.2
= control target key start
LH: loop header
LB: loop body
LE: loop exit
PB: predicated region body
PF: predicated region fallthrough
CT: control target
= control target key end

     0   :  { %21 = vsyncpa [#allocation7], 0  ;;  %s4720_s18 = smov 0   ;;  %s4722_s19 = smov 0   ;;  %s6291_s0 = inlined_call_operand.vmem [shape: f32[2,64,128], index: 0, kind: input, shape index: {}]   ;;  %s6292_s1 = inlined_call_operand.vmem [shape: bf16[128,128], index: 1, kind: input, shape index: {}]   ;;  %s6293_s2 = inlined_call_operand.vmem [shape: f32[1,128], index: 2, kind: input, shape index: {}]   ;;  %s6294_s3 = inlined_call_operand.vmem [shape: f32[1,128], index: 3, kind: input, shape index: {}]   ;;  %s6295_s4 = inlined_call_operand.vmem [shape: f32[128,128], index: 4, kind: input, shape index: {}]   ;;  %s6296_s5 = inlined_call_operand.vmem [shape: bf16[128,128], index: 5, kind: input, shape index: {}]   ;;  %s6297_s6 = inlined_call_operand.vmem [shape: f32[1,128], index: 6, kind: input, shape index: {}]   ;;  %s6298_s7 = inlined_call_operand.vmem [shape: f32[1,128], index: 7, kind: input, shape index: {}]   ;;  %s6299_s8 = inlined_call_operand.vmem [shape: f32[1,128], index: 8, kind: input, shape index: {}]   ;;  %s6300_s9 = inlined_call_operand.vmem [shape: f32[1,128], index: 9, kind: input, shape index: {}]   ;;  %s6301_s10 = inlined_call_operand.vmem [shape: f32[128,128], index: 10, kind: input, shape index: {}]   ;;  %s6302_s11 = inlined_call_operand.vmem [shape: f32[1,128], index: 11, kind: input, shape index: {}]   ;;  %s6303_s12 = inlined_call_operand.vmem [shape: f32[6,128], index: 12, kind: input, shape index: {}]   ;;  %s6304_s13 = inlined_call_operand.vmem [shape: f32[1,6], index: 13, kind: input, shape index: {}]   ;;  %s6305_s14 = inlined_call_operand.vmem [shape: f32[2,128], index: 14, kind: output, shape index: {0}]   ;;  %s6306_s15 = inlined_call_operand.hbm [shape: f32[2,6], index: 15, kind: output, shape index: {1}]  }
   0x1   :  { %s4724_s20 = smov 0  }
   0x2 LB: > { %s3839_s21 = sadd.s32 4294967295, %s4634_s20   ;;  %s39_s22 = sadd.s32 1, %s4630_s19  ;;  %s4634_s20 = sphi %s4724_s20, %s27_s20   ;;  %s4630_s19 = sphi %s4722_s19, %s6518_s19   ;;  %s4626_s18 = sphi %s4720_s18, %s6517_s18  }
   0x3   : > { %p41_p0 = scmp.ge.s32.totalorder %s39_s22, 2  ;;  %p3842_p1 = scmp.ge.s32.totalorder %s4634_s20, 1 }
   0x4   : > { %p444_p2 = scmp.lt.s32.totalorder %s4634_s20, 3 }
   0x5   : > { %s6520_s22 = smov (%p41_p0, %s39_s22), 0 }
   0x6   : > { %p445_p3 = pnand %p3842_p1, %p444_p2 }
   0x7   : > { %p510_p4 = scmp.eq.s32.totalorder (!%p445_p3), %s4626_s18, 0 }
   0x8   : > { %448 = sbr.rel (%p445_p3) target bundleno = 2119 (0x847), region = 76 }
   0xd   : > { %v4744_v0 = vld [vmem:[%s6291_s0] sm:$0xff]  ;;  %v4749_v1 = vld [vmem:[%s6291_s0 + $0x8] sm:$0xff]  ;;  %v4754_v2 = vld [vmem:[%s6291_s0 + $0x10] sm:$0xff]  ;;  %v4636_v16 = vmov (%p510_p4), 0.0  }
   0xe   : > { %v4760_v3 = vld [vmem:[%s6291_s0 + $0x18] sm:$0xff]  ;;  %v4765_v4 = vld [vmem:[%s6291_s0 + $0x20] sm:$0xff]  ;;  %v4770_v5 = vld [vmem:[%s6291_s0 + $0x28] sm:$0xff]  ;;  %515 = sbr.rel (!%p510_p4) target bundleno = 34 (0x22), region = 80  ;;  %516 = vst [vmem:[#allocation2] sm:$0x1] (%p510_p4), %v4636_v16 }
   0xf   : > { %v4775_v6 = vld [vmem:[%s6291_s0 + $0x30] sm:$0xff]  ;;  %v4780_v7 = vld [vmem:[%s6291_s0 + $0x38] sm:$0xff]  ;;  %v502_v8 = vld [vmem:[%s6291_s0 + $0x40] sm:$0xff]  ;;  %517 = vst [vmem:[#allocation3] sm:$0x1] (%p510_p4), %v4636_v16 }
  0x10   : > { %v503_v9 = vld [vmem:[%s6291_s0 + $0x48] sm:$0xff]  ;;  %v4791_v10 = vld [vmem:[%s6291_s0 + $0x50] sm:$0xff]  ;;  %v4796_v11 = vld [vmem:[%s6291_s0 + $0x58] sm:$0xff]  ;;  %518 = vst [vmem:[#allocation4 + $0xb0] sm:$0xff] (%p510_p4), %v4636_v16 }
  0x11   : > { %v4801_v12 = vld [vmem:[%s6291_s0 + $0x60] sm:$0xff]  ;;  %v4806_v13 = vld [vmem:[%s6291_s0 + $0x68] sm:$0xff]  ;;  %v4811_v14 = vld [vmem:[%s6291_s0 + $0x70] sm:$0xff]  ;;  %519 = vst [vmem:[#allocation4] sm:$0xff] (%p510_p4), %v4636_v16 }
  0x12   : > { %v4816_v15 = vld [vmem:[%s6291_s0 + $0x78] sm:$0xff]  ;;  %520 = vst [vmem:[#allocation4 + $0xd8] sm:$0xff] (%p510_p4), %v4636_v16  ;;  %521 = vst [vmem:[#allocation4 + $0x18] sm:$0xff] (%p510_p4), %v4636_v16 }
  0x13   : > { %522 = vst [vmem:[#allocation4 + $0x50] sm:$0xff] %v4636_v16  ;;  %523 = vst [vmem:[#allocation4 + $0x68] sm:$0xff] %v4636_v16 }
  0x14   : > { %524 = vst [vmem:[#allocation4 + $0x30] sm:$0xff] %v4636_v16  ;;  %525 = vst [vmem:[#allocation4 + $0x48] sm:$0xff] %v4636_v16 }
  0x15   : > { %526 = vst [vmem:[#allocation4 + $0x80] sm:$0xff] %v4636_v16  ;;  %527 = vst [vmem:[#allocation4 + $0x88] sm:$0xff] %v4636_v16 }
  0x16   : > { %528 = vst [vmem:[#allocation4 + $0xe8] sm:$0xff] %v4636_v16  ;;  %529 = vst [vmem:[#allocation4 + $0xb8] sm:$0xff] %v4636_v16 }
  0x17   : > { %530 = vst [vmem:[#allocation4 + $0x60] sm:$0xff] %v4636_v16  ;;  %531 = vst [vmem:[#allocation4 + $0xf0] sm:$0xff] %v4636_v16 }
  0x18   : > { %532 = vst [vmem:[#allocation4 + $0x8] sm:$0xff] %v4636_v16  ;;  %533 = vst [vmem:[#allocation4 + $0x78] sm:$0xff] %v4636_v16 }
  0x19   : > { %534 = vst [vmem:[#allocation4 + $0x38] sm:$0xff] %v4636_v16  ;;  %535 = vst [vmem:[#allocation4 + $0x58] sm:$0xff] %v4636_v16 }
  0x1a   : > { %536 = vst [vmem:[#allocation4 + $0x40] sm:$0xff] %v4636_v16  ;;  %537 = vst [vmem:[#allocation4 + $0xc8] sm:$0xff] %v4636_v16 }
  0x1b   : > { %538 = vst [vmem:[#allocation4 + $0xe0] sm:$0xff] %v4636_v16  ;;  %539 = vst [vmem:[#allocation4 + $0x90] sm:$0xff] %v4636_v16 }
  0x1c   : > { %540 = vst [vmem:[#allocation4 + $0x70] sm:$0xff] %v4636_v16  ;;  %541 = vst [vmem:[#allocation4 + $0xc0] sm:$0xff] %v4636_v16 }
  0x1d   : > { %542 = vst [vmem:[#allocation4 + $0xa8] sm:$0xff] %v4636_v16  ;;  %543 = vst [vmem:[#allocation4 + $0xd0] sm:$0xff] %v4636_v16 }
  0x1e   : > { %544 = vst [vmem:[#allocation4 + $0x10] sm:$0xff] %v4636_v16  ;;  %545 = vst [vmem:[#allocation4 + $0x28] sm:$0xff] %v4636_v16 }
  0x1f   : > { %546 = vst [vmem:[#allocation4 + $0xa0] sm:$0xff] %v4636_v16  ;;  %547 = vst [vmem:[#allocation4 + $0xf8] sm:$0xff] %v4636_v16 }
  0x20   : > { %548 = vst [vmem:[#allocation4 + $0x20] sm:$0xff] %v4636_v16  ;;  %549 = vst [vmem:[#allocation4 + $0x98] sm:$0xff] %v4636_v16 }
  0x21   : > { %550 = vst [vmem:[#allocation5] sm:$0x3] %v4636_v16 }
  0x22 PF: > { %v4466_v17 = vld [vmem:[%s6292_s1 + $0x38] sm:$0xff]   ;;  %v4467_v18 = vld [vmem:[%s6292_s1 + $0x30] sm:$0xff]   ;;  %v551_v19 = vpack.c.bf16 %v4749_v1, %v4744_v0  ;;  %v555_v20 = vpack.c.bf16 %v503_v9, %v502_v8  ;;  %v4468_v21 = vld [vmem:[%s6292_s1 + $0x28] sm:$0xff]   ;;  %v552_v27 = vpack.c.bf16 %v4760_v3, %v4754_v2  ;;  %v556_v28 = vpack.c.bf16 %v4796_v11, %v4791_v10  ;;  %p3852_p5 = scmp.ne.s32.totalorder %s4626_s18, 0 }
  0x23   : > { %4063 = vmatprep.subr.bf16.mxu0 %v4466_v17  ;;  %4415 = vmatprep.subr.bf16.mxu1 %v4466_v17  ;;  %v4469_v22 = vld [vmem:[%s6292_s1 + $0x20] sm:$0xff]   ;;  %v4470_v23 = vld [vmem:[%s6292_s1 + $0x18] sm:$0xff]   ;;  %v4471_v24 = vld [vmem:[%s6292_s1 + $0x10] sm:$0xff]   ;;  %v553_v29 = vpack.c.bf16 %v4770_v5, %v4765_v4  ;;  %v557_v30 = vpack.c.bf16 %v4806_v13, %v4801_v12  ;;  %v554_v31 = vpack.c.bf16 %v4780_v7, %v4775_v6 }
  0x24   : > { %4064 = vmatpush3.bf16.xpose.msra.mxu0 %v4466_v17  ;;  %4423 = vmatpush3.bf16.xpose.msra.mxu1 %v4466_v17  ;;  %v4472_v25 = vld [vmem:[%s6292_s1 + $0x8] sm:$0xff]   ;;  %v4473_v26 = vld [vmem:[%s6292_s1] sm:$0xff]   ;;  %v558_v32 = vpack.c.bf16 %v4816_v15, %v4811_v14 }
  0x25   : > { %4065 = vmatprep.subr.bf16.mxu0 %v4467_v18  ;;  %4416 = vmatprep.subr.bf16.mxu1 %v4467_v18 }
  0x26   : > { %4079 = vmatprep.mubr.bf16.mxu0 %v551_v19  ;;  %4087 = vmatprep.mubr.bf16.mxu1 %v555_v20 }
  0x2c   : > { %4066 = vmatpush3.bf16.xpose.msra.mxu0 %v4467_v18  ;;  %4424 = vmatpush3.bf16.xpose.msra.mxu1 %v4467_v18 }
  0x2d   : > { %4067 = vmatprep.subr.bf16.mxu0 %v4468_v21  ;;  %4417 = vmatprep.subr.bf16.mxu1 %v4468_v21 }
  0x34   : > { %4068 = vmatpush3.bf16.xpose.msra.mxu0 %v4468_v21  ;;  %4425 = vmatpush3.bf16.xpose.msra.mxu1 %v4468_v21 }
  0x35   : > { %4069 = vmatprep.subr.bf16.mxu0 %v4469_v22  ;;  %4418 = vmatprep.subr.bf16.mxu1 %v4469_v22 }
  0x3c   : > { %4070 = vmatpush3.bf16.xpose.msra.mxu0 %v4469_v22  ;;  %4426 = vmatpush3.bf16.xpose.msra.mxu1 %v4469_v22 }
  0x3d   : > { %4071 = vmatprep.subr.bf16.mxu0 %v4470_v23  ;;  %4419 = vmatprep.subr.bf16.mxu1 %v4470_v23 }
  0x44   : > { %4072 = vmatpush3.bf16.xpose.msra.mxu0 %v4470_v23  ;;  %4427 = vmatpush3.bf16.xpose.msra.mxu1 %v4470_v23 }
  0x45   : > { %4073 = vmatprep.subr.bf16.mxu0 %v4471_v24  ;;  %4420 = vmatprep.subr.bf16.mxu1 %v4471_v24 }
  0x4c   : > { %4074 = vmatpush3.bf16.xpose.msra.mxu0 %v4471_v24  ;;  %4428 = vmatpush3.bf16.xpose.msra.mxu1 %v4471_v24 }
  0x4d   : > { %4075 = vmatprep.subr.bf16.mxu0 %v4472_v25  ;;  %4421 = vmatprep.subr.bf16.mxu1 %v4472_v25 }
  0x54   : > { %4076 = vmatpush3.bf16.xpose.msra.mxu0 %v4472_v25  ;;  %4429 = vmatpush3.bf16.xpose.msra.mxu1 %v4472_v25 }
  0x55   : > { %4077 = vmatprep.subr.bf16.mxu0 %v4473_v26  ;;  %4422 = vmatprep.subr.bf16.mxu1 %v4473_v26 }
  0x5c   : > { %4078 = vmatpush3.bf16.xpose.msra.mxu0 %v4473_v26  ;;  %4430 = vmatpush3.bf16.xpose.msra.mxu1 %v4473_v26 }
  0x63   : > { %4080 = vmatmul.mubr.bf16.vlgmr.msra.gmra.mxu0 %v552_v27  ;;  %4088 = vmatmul.mubr.bf16.vlgmr.msra.gmra.mxu1 %v556_v28 }
  0x64   : > { %4083 = vmatprep.mubr.bf16.mxu0 %v553_v29  ;;  %4091 = vmatprep.mubr.bf16.mxu1 %v557_v30 }
  0x6b   : > { %4084 = vmatmul.mubr.bf16.gmra.mxu0 %v554_v31  ;;  %4092 = vmatmul.mubr.bf16.gmra.mxu1 %v558_v32 }
 0x123   : > { %v4858_v33 = vpop.f32.mrf.mxu0  ;;  %v4860_v34 = vpop.f32.mrf.mxu1 }
 0x125   : > { %v4862_v35 = vpop.f32.mrf.mxu0  ;;  %v4864_v36 = vpop.f32.mrf.mxu1 }
 0x127   : > { %v4866_v37 = vpop.f32.mrf.mxu0  ;;  %v4868_v38 = vpop.f32.mrf.mxu1 }
 0x129   : > { %v4870_v39 = vpop.f32.mrf.mxu0  ;;  %v4872_v40 = vpop.f32.mrf.mxu1 }
 0x12b   : > { %v4874_v41 = vpop.f32.mrf.mxu0  ;;  %v4876_v42 = vpop.f32.mrf.mxu1 }
 0x12d   : > { %v4878_v43 = vpop.f32.mrf.mxu0  ;;  %v4880_v44 = vpop.f32.mrf.mxu1  ;;  %722 = sbr.rel (%p3852_p5) target bundleno = 353 (0x161), region = 84 }
 0x12f   : > { %v4882_v45 = vpop.f32.mrf.mxu0  ;;  %v4884_v46 = vpop.f32.mrf.mxu1 }
 0x131   : > { %v4886_v47 = vpop.f32.mrf.mxu0  ;;  %v4888_v48 = vpop.f32.mrf.mxu1 }
 0x132   : > { %v724_v49 = vadd.f32 %v4870_v39, %v4862_v35  ;;  %v748_v50 = vmul.f32 %v4862_v35, %v4862_v35  ;;  %v749_v51 = vmul.f32 %v4870_v39, %v4870_v39  ;;  %v750_v53 = vmul.f32 %v4858_v33, %v4858_v33 }
 0x133   : > { %v751_v55 = vmul.f32 %v4866_v37, %v4866_v37  ;;  %v752_v58 = vmul.f32 %v4878_v43, %v4878_v43  ;;  %v753_v61 = vmul.f32 %v4886_v47, %v4886_v47  ;;  %v754_v0 = vmul.f32 %v4874_v41, %v4874_v41 }
 0x134   : > { %v725_v52 = vadd.f32 %v4858_v33, %v724_v49  ;;  %v764_v56 = vadd.f32 %v749_v51, %v748_v50  ;;  %v755_v3 = vmul.f32 %v4882_v45, %v4882_v45  ;;  %v756_v6 = vmul.f32 %v4864_v36, %v4864_v36 }
 0x135   : > { %v757_v9 = vmul.f32 %v4872_v40, %v4872_v40  ;;  %v758_v12 = vmul.f32 %v4860_v34, %v4860_v34  ;;  %v759_v15 = vmul.f32 %v4868_v38, %v4868_v38  ;;  %v760_v18 = vmul.f32 %v4880_v44, %v4880_v44 }
 0x136   : > { %v726_v54 = vadd.f32 %v4866_v37, %v725_v52  ;;  %v765_v59 = vadd.f32 %v764_v56, %v750_v53  ;;  %v761_v21 = vmul.f32 %v4888_v48, %v4888_v48  ;;  %v762_v24 = vmul.f32 %v4876_v42, %v4876_v42 }
 0x137   : > { %v763_v27 = vmul.f32 %v4884_v46, %v4884_v46 }
 0x138   : > { %v727_v57 = vadd.f32 %v726_v54, %v4878_v43  ;;  %v766_v62 = vadd.f32 %v765_v59, %v751_v55  ;;  %v723_v55 = vld [vmem:[#allocation2] sm:$0x1] }
 0x13a   : > { %v728_v60 = vadd.f32 %v727_v57, %v4886_v47  ;;  %v767_v1 = vadd.f32 %v766_v62, %v752_v58 }
 0x13c   : > { %v729_v63 = vadd.f32 %v4874_v41, %v728_v60  ;;  %v768_v4 = vadd.f32 %v767_v1, %v753_v61  ;;  %v747_v60 = vld [vmem:[#allocation3] sm:$0x1] }
 0x13e   : > { %v730_v2 = vadd.f32 %v4882_v45, %v729_v63  ;;  %v769_v7 = vadd.f32 %v768_v4, %v754_v0 }
 0x140   : > { %v731_v5 = vadd.f32 %v730_v2, %v4864_v36  ;;  %v770_v10 = vadd.f32 %v769_v7, %v755_v3 }
 0x142   : > { %v732_v8 = vadd.f32 %v731_v5, %v4872_v40  ;;  %v771_v13 = vadd.f32 %v770_v10, %v756_v6 }
 0x144   : > { %v733_v11 = vadd.f32 %v4860_v34, %v732_v8  ;;  %v772_v16 = vadd.f32 %v771_v13, %v757_v9 }
 0x146   : > { %v734_v14 = vadd.f32 %v4868_v38, %v733_v11  ;;  %v773_v19 = vadd.f32 %v772_v16, %v758_v12 }
 0x148   : > { %v735_v17 = vadd.f32 %v734_v14, %v4880_v44  ;;  %v774_v22 = vadd.f32 %v773_v19, %v759_v15 }
 0x14a   : > { %v736_v20 = vadd.f32 %v735_v17, %v4888_v48  ;;  %v775_v25 = vadd.f32 %v774_v22, %v760_v18 }
 0x14c   : > { %v737_v23 = vadd.f32 %v4876_v42, %v736_v20  ;;  %v776_v28 = vadd.f32 %v775_v25, %v761_v21 }
 0x14e   : > { %v738_v26 = vadd.f32 %v4884_v46, %v737_v23  ;;  %v777_v30 = vadd.f32 %v776_v28, %v762_v24 }
 0x150   : > { %v739_v29 = vrot.slane %v738_v26, 4  ;;  %v778_v32 = vadd.f32 %v777_v30, %v763_v27 }
 0x152   : > { %v740_v31 = vadd.f32 %v739_v29, %v738_v26  ;;  %v779_v50 = vrot.slane %v778_v32, 4 }
 0x154   : > { %v741_v49 = vrot.slane %v740_v31, 2  ;;  %v780_v52 = vadd.f32 %v779_v50, %v778_v32 }
 0x156   : > { %v742_v51 = vadd.f32 %v741_v49, %v740_v31  ;;  %v781_v54 = vrot.slane %v780_v52, 2 }
 0x158   : > { %v743_v53 = vrot.slane %v742_v51, 1  ;;  %v782_v57 = vadd.f32 %v781_v54, %v780_v52 }
 0x15a   : > { %v744_v56 = vadd.f32 %v743_v53, %v742_v51  ;;  %v783_v59 = vrot.slane %v782_v57, 1 }
 0x15c   : > { %v745_v58 = vadd.f32 %v744_v56, %v723_v55  ;;  %v784_v61 = vadd.f32 %v783_v59, %v782_v57 }
 0x15e   : > { %746 = vst [vmem:[#allocation2] sm:$0x1] %v745_v58  ;;  %v785_v62 = vadd.f32 %v784_v61, %v747_v60 }
 0x160   : > { %786 = vst [vmem:[#allocation3] sm:$0x1] %v785_v62 }
 0x161 PF: > { %p787_p6 = scmp.eq.s32.totalorder %s4626_s18, 1  ;;  %p3853_p7 = scmp.ne.s32.totalorder %s4626_s18, 1 }
 0x163   : > { %790 = sbr.rel (%p3853_p7) target bundleno = 1309 (0x51d), region = 88 }
 0x168   : > { %v4474_v63 = vld [vmem:[%s6296_s5 + $0x38] sm:$0xff]   ;;  %v4475_v0 = vld [vmem:[%s6296_s5 + $0x30] sm:$0xff]   ;;  %v4476_v1 = vld [vmem:[%s6296_s5 + $0x28] sm:$0xff]   ;;  %v799_v9 = vlaneseq }
 0x169   : > { %4095 = vmatprep.subr.bf16.mxu0 %v4474_v63  ;;  %v791_v2 = vld [vmem:[#allocation2] sm:$0x1]  ;;  %v793_v3 = vld [vmem:[#allocation3] sm:$0x1]  ;;  %v4478_v14 = vld [vmem:[%s6296_s5 + $0x18] sm:$0xff]  }
 0x16a   : > { %4096 = vmatpush3.bf16.xpose.msra.mxu0 %v4474_v63  ;;  %v792_v4 = vmul.f32 0.0078125, %v791_v2  ;;  %v794_v5 = vmul.f32 0.0078125, %v793_v3  ;;  %v4477_v10 = vld [vmem:[%s6296_s5 + $0x20] sm:$0xff]   ;;  %v800_v12 = vshrl.u32 %v799_v9, 7  ;;  %v4479_v21 = vld [vmem:[%s6296_s5 + $0x10] sm:$0xff]   ;;  %v4480_v55 = vld [vmem:[%s6296_s5 + $0x8] sm:$0xff]  }
 0x16b   : > { %4097 = vmatprep.subr.bf16.mxu0 %v4475_v0 }
 0x16c   : > { %v795_v6 = vmul.f32 %v792_v4, %v792_v4  ;;  %v801_v13 = vsub.s32 0, %v800_v12 }
 0x16e   : > { %v796_v7 = vsub.f32 %v794_v5, %v795_v6  ;;  %v4957_v15 = vrot.slane %v792_v4, %v801_v13 }
 0x170   : > { %v797_v8 = vmax.f32 %v796_v7, 0.0  ;;  %v804_v16 = vsub.f32 %v4862_v35, %v4957_v15  ;;  %v805_v17 = vsub.f32 %v4870_v39, %v4957_v15  ;;  %v806_v18 = vsub.f32 %v4858_v33, %v4957_v15 }
 0x171   : > { %v807_v19 = vsub.f32 %v4866_v37, %v4957_v15  ;;  %v808_v22 = vsub.f32 %v4878_v43, %v4957_v15  ;;  %v809_v35 = vsub.f32 %v4886_v47, %v4957_v15  ;;  %v810_v39 = vsub.f32 %v4874_v41, %v4957_v15  ;;  %v4983_v37 = vld [vmem:[%s6293_s2] ss:$0 sm:$0xff] }
 0x172   : > { %4098 = vmatpush3.bf16.xpose.msra.mxu0 %v4475_v0  ;;  %v820_v11 = vadd.f32 1e-05, %v797_v8  ;;  %v811_v33 = vsub.f32 %v4882_v45, %v4957_v15  ;;  %v4992_v41 = vld [vmem:[%s6294_s3] ss:$0 sm:$0xff]  ;;  %v812_v3 = vsub.f32 %v4864_v36, %v4957_v15  ;;  %v813_v8 = vsub.f32 %v4872_v40, %v4957_v15 }
 0x173   : > { %4099 = vmatprep.subr.bf16.mxu0 %v4476_v1  ;;  %v4481_v36 = vld [vmem:[%s6296_s5] sm:$0xff]  }
 0x174   : > { %4482 = vrsqrt.f32 %v820_v11  ;;  %v819_v11 = vsub.f32 %v4884_v46, %v4957_v15 }
 0x17a   : > { %4100 = vmatpush3.bf16.xpose.msra.mxu0 %v4476_v1 }
 0x17b   : > { %4101 = vmatprep.subr.bf16.mxu0 %v4477_v10 }
 0x181   : > { %v4483_v20 = vpop.eup %4482 }
 0x182   : > { %4102 = vmatpush3.bf16.xpose.msra.mxu0 %v4477_v10  ;;  %v4978_v23 = vrot.slane %v4483_v20, %v801_v13  ;;  %v818_v10 = vsub.f32 %v4876_v42, %v4957_v15 }
 0x183   : > { %4103 = vmatprep.subr.bf16.mxu0 %v4478_v14 }
 0x184   : > { %v828_v24 = vmul.f32 %v4978_v23, %v804_v16  ;;  %v829_v43 = vmul.f32 %v4978_v23, %v805_v17  ;;  %v830_v47 = vmul.f32 %v4978_v23, %v806_v18  ;;  %v831_v25 = vmul.f32 %v4978_v23, %v807_v19 }
 0x185   : > { %v832_v45 = vmul.f32 %v4978_v23, %v808_v22  ;;  %v833_v26 = vmul.f32 %v4978_v23, %v809_v35  ;;  %v834_v27 = vmul.f32 %v4978_v23, %v810_v39  ;;  %v835_v28 = vmul.f32 %v4978_v23, %v811_v33 }
 0x186   : > { %v851_v29 = vmul.f32 %v4983_v37, %v828_v24  ;;  %v852_v30 = vmul.f32 %v4983_v37, %v829_v43  ;;  %v853_v53 = vmul.f32 %v4983_v37, %v830_v47  ;;  %v854_v54 = vmul.f32 %v4983_v37, %v831_v25 }
 0x187   : > { %v855_v31 = vmul.f32 %v4983_v37, %v832_v45  ;;  %v856_v32 = vmul.f32 %v4983_v37, %v833_v26  ;;  %v857_v49 = vmul.f32 %v4983_v37, %v834_v27  ;;  %v858_v50 = vmul.f32 %v4983_v37, %v835_v28 }
 0x188   : > { %v874_v51 = vadd.f32 %v4992_v41, %v851_v29  ;;  %v875_v52 = vadd.f32 %v4992_v41, %v852_v30  ;;  %v876_v1 = vadd.f32 %v4992_v41, %v853_v53  ;;  %v877_v2 = vadd.f32 %v4992_v41, %v854_v54 }
 0x189   : > { %v878_v56 = vadd.f32 %v4992_v41, %v855_v31  ;;  %v879_v57 = vadd.f32 %v4992_v41, %v856_v32  ;;  %v880_v58 = vadd.f32 %v4992_v41, %v857_v49  ;;  %v881_v59 = vadd.f32 %v4992_v41, %v858_v50 }
 0x18a   : > { %4104 = vmatpush3.bf16.xpose.msra.mxu0 %v4478_v14  ;;  %vm890_vm0 = vcmp.gt.f32.partialorder %v874_v51, 0.0  ;;  %vm891_vm1 = vcmp.gt.f32.partialorder %v875_v52, 0.0  ;;  %v906_v60 = vmul.f32 0.01, %v874_v51  ;;  %v907_v61 = vmul.f32 0.01, %v875_v52 }
 0x18b   : > { %4105 = vmatprep.subr.bf16.mxu0 %v4479_v21  ;;  %v910_v4 = vmul.f32 0.01, %v878_v56  ;;  %v911_v5 = vmul.f32 0.01, %v879_v57  ;;  %vm896_vm2 = vcmp.gt.f32.partialorder %v880_v58, 0.0  ;;  %vm897_vm3 = vcmp.gt.f32.partialorder %v881_v59, 0.0 }
 0x18c   : > { %v922_v62 = vsel %vm890_vm0, %v874_v51, %v906_v60  ;;  %v923_v63 = vsel %vm891_vm1, %v875_v52, %v907_v61  ;;  %vm894_vm4 = vcmp.gt.f32.partialorder %v878_v56, 0.0  ;;  %vm895_vm5 = vcmp.gt.f32.partialorder %v879_v57, 0.0 }
 0x18d   : > { %v5015_v0 = vpack.c.bf16 %v923_v63, %v922_v62  ;;  %v912_v6 = vmul.f32 0.01, %v880_v58  ;;  %v913_v7 = vmul.f32 0.01, %v881_v59  ;;  %v908_v12 = vmul.f32 0.01, %v876_v1 }
 0x18e   : > { %v909_v16 = vmul.f32 0.01, %v877_v2  ;;  %v926_v17 = vsel %vm894_vm4, %v878_v56, %v910_v4  ;;  %v927_v18 = vsel %vm895_vm5, %v879_v57, %v911_v5  ;;  %v836_v40 = vmul.f32 %v4978_v23, %v812_v3 }
 0x18f   : > { %4111 = vmatprep.mubr.bf16.mxu0 %v5015_v0  ;;  %v5031_v13 = vsel %vm896_vm2, %v880_v58, %v912_v6  ;;  %v5033_v14 = vsel %vm897_vm3, %v881_v59, %v913_v7  ;;  %vm892_vm6 = vcmp.gt.f32.partialorder %v876_v1, 0.0  ;;  %vm893_vm7 = vcmp.gt.f32.partialorder %v877_v2, 0.0 }
 0x190   : > { %v5038_v42 = vpack.c.bf16 %v5033_v14, %v5031_v13  ;;  %v837_v46 = vmul.f32 %v4978_v23, %v813_v8  ;;  %v842_v19 = vmul.f32 %v4978_v23, %v818_v10  ;;  %v843_v20 = vmul.f32 %v4978_v23, %v819_v11 }
 0x191   : > { %v814_v22 = vsub.f32 %v4860_v34, %v4957_v15  ;;  %v924_v35 = vsel %vm892_vm6, %v876_v1, %v908_v12  ;;  %v925_v39 = vsel %vm893_vm7, %v877_v2, %v909_v16  ;;  %v859_v33 = vmul.f32 %v4983_v37, %v836_v40 }
 0x192   : > { %4106 = vmatpush3.bf16.xpose.msra.mxu0 %v4479_v21  ;;  %v940_v21 = vpack.c.bf16 %v927_v18, %v926_v17  ;;  %4127 = vmatprep.subr.bf16.mxu1 %v5038_v42  ;;  %v815_v24 = vsub.f32 %v4868_v38, %v4957_v15  ;;  %v816_v43 = vsub.f32 %v4880_v44, %v4957_v15  ;;  %vm1806_vm1 = vcmask 1041409  }
 0x193   : > { %4107 = vmatprep.subr.bf16.mxu0 %v4480_v55  ;;  %4128 = vmatpush3.bf16.msra.mxu1 %v5038_v42  ;;  %v860_v47 = vmul.f32 %v4983_v37, %v837_v46  ;;  %v817_v34 = vsub.f32 %v4888_v48, %v4957_v15  ;;  %v865_v25 = vmul.f32 %v4983_v37, %v842_v19  ;;  %vm1454_vm2 = vcmask 523264  }
 0x194   : > { %4129 = vmatprep.subr.bf16.mxu1 %v940_v21  ;;  %v866_v45 = vmul.f32 %v4983_v37, %v843_v20  ;;  %v939_v26 = vpack.c.bf16 %v925_v39, %v924_v35  ;;  %v882_v27 = vadd.f32 %v4992_v41, %v859_v33  ;;  %v838_v38 = vmul.f32 %v4978_v23, %v814_v22 }
 0x195   : > { %v839_v28 = vmul.f32 %v4978_v23, %v815_v24  ;;  %v888_v44 = vadd.f32 %v4992_v41, %v865_v25  ;;  %v947_v30 = vmul.f32 %v922_v62, %v922_v62  ;;  %v949_v31 = vmul.f32 %v924_v35, %v924_v35  ;;  %v5098_v25 = vld [vmem:[%s6297_s6] ss:$0 sm:$0xff] }
 0x196   : > { %v889_v29 = vadd.f32 %v4992_v41, %v866_v45  ;;  %v883_v48 = vadd.f32 %v4992_v41, %v860_v47  ;;  %v840_v15 = vmul.f32 %v4978_v23, %v816_v43  ;;  %v841_v32 = vmul.f32 %v4978_v23, %v817_v34 }
 0x197   : > { %4130 = vmatpush3.bf16.msra.mxu1 %v940_v21  ;;  %v948_v49 = vmul.f32 %v923_v63, %v923_v63  ;;  %vm904_vm8 = vcmp.gt.f32.partialorder %v888_v44, 0.0  ;;  %v920_v50 = vmul.f32 0.01, %v888_v44  ;;  %963 = vadd.xlane.f32.xlu0 %v947_v30  ;;  %v950_v51 = vmul.f32 %v925_v39, %v925_v39 }
 0x198   : > { %4131 = vmatprep.subr.bf16.mxu1 %v939_v26  ;;  %vm905_vm9 = vcmp.gt.f32.partialorder %v889_v29, 0.0  ;;  %967 = vadd.xlane.f32.xlu1 %v949_v31  ;;  %v861_v52 = vmul.f32 %v4983_v37, %v838_v38  ;;  %v921_v53 = vmul.f32 0.01, %v889_v29  ;;  %vm898_vm10 = vcmp.gt.f32.partialorder %v882_v27, 0.0 }
 0x199   : > { %v914_v54 = vmul.f32 0.01, %v882_v27  ;;  %v936_v56 = vsel %vm904_vm8, %v888_v44, %v920_v50  ;;  %v915_v57 = vmul.f32 0.01, %v883_v48  ;;  %v863_v23 = vmul.f32 %v4983_v37, %v840_v15 }
 0x19a   : > { %4108 = vmatpush3.bf16.xpose.msra.mxu0 %v4480_v55  ;;  %v862_v55 = vmul.f32 %v4983_v37, %v839_v28  ;;  %v864_v58 = vmul.f32 %v4983_v37, %v841_v32  ;;  %v937_v59 = vsel %vm905_vm9, %v889_v29, %v921_v53  ;;  %vm899_vm11 = vcmp.gt.f32.partialorder %v883_v48, 0.0  ;;  %v5106_v29 = vld [vmem:[%s6298_s7] ss:$0 sm:$0xff] }
 0x19b   : > { %4109 = vmatprep.subr.bf16.mxu0 %v4481_v36  ;;  %4132 = vmatpush3.bf16.msra.mxu1 %v939_v26  ;;  %v5071_v60 = vpack.c.bf16 %v937_v59, %v936_v56  ;;  %v951_v61 = vmul.f32 %v926_v17, %v926_v17  ;;  %v952_v62 = vmul.f32 %v927_v18, %v927_v18 }
 0x19c   : > { %4133 = vmatprep.subr.bf16.mxu1 %v5015_v0  ;;  %965 = vadd.xlane.f32.xlu0 %v948_v49  ;;  %v884_v63 = vadd.f32 %v4992_v41, %v861_v52  ;;  %v885_v1 = vadd.f32 %v4992_v41, %v862_v55  ;;  %v930_v37 = vsel %vm898_vm10, %v882_v27, %v914_v54 }
 0x19d   : > { %969 = vadd.xlane.f32.xlu1 %v950_v51  ;;  %v931_v2 = vsel %vm899_vm11, %v883_v48, %v915_v57  ;;  %v886_v3 = vadd.f32 %v4992_v41, %v863_v23  ;;  %v887_v4 = vadd.f32 %v4992_v41, %v864_v58  ;;  %v954_v5 = vmul.f32 %v5033_v14, %v5033_v14 }
 0x19e   : > { %vm900_vm12 = vcmp.gt.f32.partialorder %v884_v63, 0.0  ;;  %vm901_vm13 = vcmp.gt.f32.partialorder %v885_v1, 0.0  ;;  %v5084_v6 = vpack.c.bf16 %v931_v2, %v930_v37  ;;  %v916_v7 = vmul.f32 0.01, %v884_v63 }
 0x19f   : > { %4134 = vmatpush3.bf16.msra.mxu1 %v5015_v0  ;;  %v953_v0 = vmul.f32 %v5031_v13, %v5031_v13  ;;  %v917_v8 = vmul.f32 0.01, %v885_v1  ;;  %v918_v10 = vmul.f32 0.01, %v886_v3  ;;  %vm902_vm14 = vcmp.gt.f32.partialorder %v886_v3, 0.0 }
 0x1a0   : > { %4151 = vmatprep.subr.bf16.mxu1 %v5071_v60  ;;  %971 = vadd.xlane.f32.xlu0 %v951_v61  ;;  %v919_v11 = vmul.f32 0.01, %v887_v4  ;;  %v955_v41 = vmul.f32 %v930_v37, %v930_v37  ;;  %vm903_vm15 = vcmp.gt.f32.partialorder %v887_v4, 0.0  ;;  %v932_v12 = vsel %vm900_vm12, %v884_v63, %v916_v7 }
 0x1a1   : > { %973 = vadd.xlane.f32.xlu1 %v952_v62  ;;  %v933_v13 = vsel %vm901_vm13, %v885_v1, %v917_v8  ;;  %v934_v14 = vsel %vm902_vm14, %v886_v3, %v918_v10  ;;  %v957_v17 = vmul.f32 %v932_v12, %v932_v12 }
 0x1a2   : > { %4110 = vmatpush3.bf16.xpose.msra.mxu0 %v4481_v36  ;;  %v956_v36 = vmul.f32 %v931_v2, %v931_v2  ;;  %v935_v16 = vsel %vm903_vm15, %v887_v4, %v919_v11  ;;  %v958_v18 = vmul.f32 %v933_v13, %v933_v13  ;;  %v5088_v40 = vpack.c.bf16 %v933_v13, %v932_v12 }
 0x1a3   : > { %v5090_v46 = vpack.c.bf16 %v935_v16, %v934_v14  ;;  %v959_v19 = vmul.f32 %v934_v14, %v934_v14  ;;  %v960_v20 = vmul.f32 %v935_v16, %v935_v16 }
 0x1a4   : > { %975 = vadd.xlane.f32.xlu0 %v953_v0 }
 0x1a5   : > { %977 = vadd.xlane.f32.xlu1 %v954_v5 }
 0x1a8   : > { %979 = vadd.xlane.f32.xlu0 %v955_v41 }
 0x1a9   : > { %4112 = vmatmul.mubr.bf16.vlgmr.msra.gmra.mxu0 %v939_v26  ;;  %981 = vadd.xlane.f32.xlu1 %v956_v36  ;;  %v5101_v26 = vand.u32 127, %v799_v9 }
 0x1aa   : > { %4115 = vmatprep.mubr.bf16.mxu0 %v940_v21  ;;  %v962_v21 = vmul.f32 %v937_v59, %v937_v59 }
 0x1ab   : > { %vm1235_vm0 = vcmp.lt.s32.totalorder %v5101_v26, 32 }
 0x1ac   : > { %983 = vadd.xlane.f32.xlu0 %v957_v17 }
 0x1ad   : > { %985 = vadd.xlane.f32.xlu1 %v958_v18 }
 0x1b0   : > { %987 = vadd.xlane.f32.xlu0 %v959_v19 }
 0x1b1   : > { %4116 = vmatmul.mubr.bf16.gmra.mxu0 %v5038_v42  ;;  %989 = vadd.xlane.f32.xlu1 %v960_v20  ;;  %v961_v42 = vmul.f32 %v936_v56, %v936_v56 }
 0x1b2   : > { %4119 = vmatprep.mubr.bf16.mxu0 %v5084_v6 }
 0x1b4   : > { %991 = vadd.xlane.f32.xlu0 %v961_v42 }
 0x1b5   : > { %993 = vadd.xlane.f32.xlu1 %v962_v21 }
 0x1b9   : > { %4120 = vmatmul.mubr.bf16.gmra.mxu0 %v5088_v40 }
 0x1ba   : > { %4123 = vmatprep.mubr.bf16.mxu0 %v5090_v46 }
 0x1c1   : > { %4124 = vmatmul.mubr.bf16.gmra.mxu0 %v5071_v60 }
 0x220   : > { %v964_v22 = vpop.xlane.xlu0 %963 }
 0x221   : > { %v968_v35 = vpop.xlane.xlu1 %967 }
 0x225   : > { %v966_v39 = vpop.xlane.xlu0 %965 }
 0x226   : > { %v970_v33 = vpop.xlane.xlu1 %969 }
 0x229   : > { %v972_v24 = vpop.xlane.xlu0 %971 }
 0x22a   : > { %v974_v34 = vpop.xlane.xlu1 %973 }
 0x22d   : > { %v976_v27 = vpop.xlane.xlu0 %975 }
 0x22e   : > { %v978_v50 = vpop.xlane.xlu1 %977 }
 0x231   : > { %v980_v53 = vpop.xlane.xlu0 %979 }
 0x232   : > { %v982_v1 = vpop.xlane.xlu1 %981 }
 0x235   : > { %v984_v10 = vpop.xlane.xlu0 %983 }
 0x236   : > { %v986_v18 = vpop.xlane.xlu1 %985 }
 0x239   : > { %v988_v21 = vpop.xlane.xlu0 %987 }
 0x269   : > { %v4113_v43 = vpop.f32.mrf.mxu0 }
 0x26a   : > { %v1159_v47 = vmul.f32 2.0, %v4113_v43 }
 0x26b   : > { %v1094_v45 = vpop.f32.mrf.mxu0 }
 0x26c   : > { %v1175_v38 = vsub.f32 %v968_v35, %v1159_v47  ;;  %v1157_v28 = vmul.f32 2.0, %v1094_v45 }
 0x26d   : > { %v4114_v44 = vpop.f32.mrf.mxu0 }
 0x26e   : > { %v1197_v30 = vadd.f32 %v5098_v25, %v1175_v38  ;;  %v1173_v31 = vsub.f32 %v964_v22, %v1157_v28  ;;  %v1160_v48 = vmul.f32 2.0, %v4114_v44  ;;  %v990_v44 = vpop.xlane.xlu1 %989 }
 0x26f   : > { %v1097_v15 = vpop.f32.mrf.mxu0 }
 0x270   : > { %v1176_v32 = vsub.f32 %v970_v33, %v1160_v48  ;;  %v1158_v49 = vmul.f32 2.0, %v1097_v15  ;;  %v1219_v9 = vmul.f32 %v5106_v29, %v1197_v30  ;;  %v1195_v51 = vadd.f32 %v5098_v25, %v1173_v31 }
 0x271   : > { %v4117_v52 = vpop.f32.mrf.mxu0 }
 0x272   : > { %v1198_v54 = vadd.f32 %v5098_v25, %v1176_v32  ;;  %v1174_v55 = vsub.f32 %v966_v39, %v1158_v49  ;;  %v1163_v56 = vmul.f32 2.0, %v4117_v52  ;;  %v5115_v57 = vsel %vm1235_vm0, %v1219_v9, -1e+30  ;;  %v992_v49 = vpop.xlane.xlu0 %991 }
 0x273   : > { %1258 = vmax.xlane.f32.xlu0 %v5115_v57  ;;  %v1110_v23 = vpop.f32.mrf.mxu0  ;;  %v1217_v58 = vmul.f32 %v5106_v29, %v1195_v51 }
 0x274   : > { %v1161_v59 = vmul.f32 2.0, %v1110_v23  ;;  %v1179_v61 = vsub.f32 %v976_v27, %v1163_v56  ;;  %v1220_v62 = vmul.f32 %v5106_v29, %v1198_v54  ;;  %v1196_v63 = vadd.f32 %v5098_v25, %v1174_v55 }
 0x275   : > { %v4118_v37 = vpop.f32.mrf.mxu0  ;;  %v5123_v4 = vsel %vm1235_vm0, %v1217_v58, -1e+30 }
 0x276   : > { %v1177_v2 = vsub.f32 %v972_v24, %v1161_v59  ;;  %v1164_v3 = vmul.f32 2.0, %v4118_v37  ;;  %v5127_v0 = vsel %vm1235_vm0, %v1220_v62, -1e+30  ;;  %v1201_v5 = vadd.f32 %v5098_v25, %v1179_v61 }
 0x277   : > { %1254 = vmax.xlane.f32.xlu0 %v5123_v4  ;;  %1260 = vmax.xlane.f32.xlu1 %v5127_v0  ;;  %v1113_v7 = vpop.f32.mrf.mxu0  ;;  %v1218_v8 = vmul.f32 %v5106_v29, %v1196_v63 }
 0x278   : > { %v1180_v11 = vsub.f32 %v978_v50, %v1164_v3  ;;  %v1162_v41 = vmul.f32 2.0, %v1113_v7  ;;  %v1199_v36 = vadd.f32 %v5098_v25, %v1177_v2  ;;  %v1223_v42 = vmul.f32 %v5106_v29, %v1201_v5 }
 0x279   : > { %v4121_v12 = vpop.f32.mrf.mxu0  ;;  %v5136_v16 = vsel %vm1235_vm0, %v1218_v8, -1e+30 }
 0x27a   : > { %v1178_v13 = vsub.f32 %v974_v34, %v1162_v41  ;;  %v1167_v14 = vmul.f32 2.0, %v4121_v12  ;;  %v1221_v17 = vmul.f32 %v5106_v29, %v1199_v36  ;;  %v1202_v19 = vadd.f32 %v5098_v25, %v1180_v11 }
 0x27b   : > { %1256 = vmax.xlane.f32.xlu1 %v5136_v16  ;;  %v1126_v20 = vpop.f32.mrf.mxu0  ;;  %v5152_v38 = vsel %vm1235_vm0, %v1223_v42, -1e+30 }
 0x27c   : > { %v1165_v22 = vmul.f32 2.0, %v1126_v20  ;;  %v1183_v35 = vsub.f32 %v984_v10, %v1167_v14  ;;  %v5144_v39 = vsel %vm1235_vm0, %v1221_v17, -1e+30  ;;  %v1200_v33 = vadd.f32 %v5098_v25, %v1178_v13 }
 0x27d   : > { %1262 = vmax.xlane.f32.xlu0 %v5144_v39  ;;  %v4122_v24 = vpop.f32.mrf.mxu0  ;;  %v1224_v28 = vmul.f32 %v5106_v29, %v1202_v19 }
 0x27e   : > { %v1181_v43 = vsub.f32 %v980_v53, %v1165_v22  ;;  %v1205_v47 = vadd.f32 %v5098_v25, %v1183_v35  ;;  %v1168_v34 = vmul.f32 2.0, %v4122_v24  ;;  %v1222_v45 = vmul.f32 %v5106_v29, %v1200_v33 }
 0x27f   : > { %v1129_v27 = vpop.f32.mrf.mxu0  ;;  %v5170_v55 = vsel %vm1235_vm0, %v1224_v28, -1e+30 }
 0x280   : > { %v1166_v30 = vmul.f32 2.0, %v1129_v27  ;;  %v1184_v31 = vsub.f32 %v986_v18, %v1168_v34  ;;  %v5157_v48 = vsel %vm1235_vm0, %v1222_v45, -1e+30  ;;  %v1227_v15 = vmul.f32 %v5106_v29, %v1205_v47 }
 0x281   : > { %1266 = vmax.xlane.f32.xlu0 %v5152_v38  ;;  %1264 = vmax.xlane.f32.xlu1 %v5157_v48  ;;  %v4125_v32 = vpop.f32.mrf.mxu0  ;;  %v1203_v9 = vadd.f32 %v5098_v25, %v1181_v43 }
 0x282   : > { %v1182_v50 = vsub.f32 %v982_v1, %v1166_v30  ;;  %v1206_v51 = vadd.f32 %v5098_v25, %v1184_v31  ;;  %v1171_v52 = vmul.f32 2.0, %v4125_v32  ;;  %v5166_v53 = vsel %vm1235_vm0, %v1227_v15, -1e+30  ;;  %v994_v1 = vpop.xlane.xlu1 %993 }
 0x283   : > { %v1142_v54 = vpop.f32.mrf.mxu0  ;;  %v1225_v56 = vmul.f32 %v5106_v29, %v1203_v9 }
 0x284   : > { %v1169_v23 = vmul.f32 2.0, %v1142_v54  ;;  %v1187_v58 = vsub.f32 %v992_v49, %v1171_v52  ;;  %v1228_v59 = vmul.f32 %v5106_v29, %v1206_v51  ;;  %v1204_v61 = vadd.f32 %v5098_v25, %v1182_v50 }
 0x285   : > { %1268 = vmax.xlane.f32.xlu1 %v5170_v55  ;;  %1274 = vmax.xlane.f32.xlu0 %v5166_v53  ;;  %v4126_v62 = vpop.f32.mrf.mxu0  ;;  %v5179_v63 = vsel %vm1235_vm0, %v1225_v56, -1e+30 }
 0x286   : > { %v1185_v37 = vsub.f32 %v988_v21, %v1169_v23  ;;  %v1172_v2 = vmul.f32 2.0, %v4126_v62  ;;  %v1209_v3 = vadd.f32 %v5098_v25, %v1187_v58  ;;  %v5184_v5 = vsel %vm1235_vm0, %v1228_v59, -1e+30 }
 0x287   : > { %v1145_v7 = vpop.f32.mrf.mxu0  ;;  %v1226_v8 = vmul.f32 %v5106_v29, %v1204_v61 }
 0x288   : > { %v1207_v10 = vadd.f32 %v5098_v25, %v1185_v37  ;;  %v1170_v11 = vmul.f32 2.0, %v1145_v7  ;;  %v1188_v41 = vsub.f32 %v994_v1, %v1172_v2  ;;  %v1231_v36 = vmul.f32 %v5106_v29, %v1209_v3 }
 0x289   : > { %1270 = vmax.xlane.f32.xlu0 %v5179_v63  ;;  %1276 = vmax.xlane.f32.xlu1 %v5184_v5  ;;  %v5194_v14 = vsel %vm1235_vm0, %v1226_v8, -1e+30 }
 0x28a   : > { %v1186_v12 = vsub.f32 %v990_v44, %v1170_v11  ;;  %v1210_v13 = vadd.f32 %v5098_v25, %v1188_v41  ;;  %v1229_v17 = vmul.f32 %v5106_v29, %v1207_v10  ;;  %v5206_v20 = vsel %vm1235_vm0, %v1231_v36, -1e+30 }
 0x28c   : > { %v1208_v18 = vadd.f32 %v5098_v25, %v1186_v12  ;;  %v5200_v19 = vsel %vm1235_vm0, %v1229_v17, -1e+30  ;;  %v1232_v21 = vmul.f32 %v5106_v29, %v1210_v13 }
 0x28d   : > { %1272 = vmax.xlane.f32.xlu1 %v5194_v14  ;;  %1278 = vmax.xlane.f32.xlu0 %v5200_v19 }
 0x28e   : > { %v1230_v42 = vmul.f32 %v5106_v29, %v1208_v18  ;;  %v5218_v25 = vsel %vm1235_vm0, %v1232_v21, -1e+30 }
 0x290   : > { %v5212_v22 = vsel %vm1235_vm0, %v1230_v42, -1e+30 }
 0x291   : > { %1282 = vmax.xlane.f32.xlu0 %v5206_v20  ;;  %1280 = vmax.xlane.f32.xlu1 %v5212_v22 }
 0x295   : > { %1284 = vmax.xlane.f32.xlu1 %v5218_v25 }
 0x2fc   : > { %v1259_v35 = vpop.xlane.xlu0 %1258 }
 0x2fd   : > { %v1288_v33 = vsub.f32 %v5115_v57, %v1259_v35 }
 0x2ff   : > { %v1306_v24 = vmul.f32 1.442695, %v1288_v33 }
 0x300   : > { %v1255_v43 = vpop.xlane.xlu0 %1254  ;;  %v1261_v29 = vpop.xlane.xlu1 %1260 }
 0x301   : > { %4484 = vpow2.f32 %v1306_v24  ;;  %v1286_v47 = vsub.f32 %v5123_v4, %v1255_v43  ;;  %v1289_v34 = vsub.f32 %v5127_v0, %v1261_v29 }
 0x303   : > { %v1302_v45 = vmul.f32 1.442695, %v1286_v47  ;;  %v1308_v27 = vmul.f32 1.442695, %v1289_v34 }
 0x304   : > { %v1257_v28 = vpop.xlane.xlu1 %1256 }
 0x305   : > { %4486 = vpow2.f32 %v1302_v45  ;;  %v1287_v26 = vsub.f32 %v5136_v16, %v1257_v28 }
 0x306   : > { %4488 = vpow2.f32 %v1308_v27  ;;  %v1263_v44 = vpop.xlane.xlu0 %1262 }
 0x307   : > { %v1304_v30 = vmul.f32 1.442695, %v1287_v26  ;;  %v1290_v31 = vsub.f32 %v5144_v39, %v1263_v44 }
 0x309   : > { %4490 = vpow2.f32 %v1304_v30  ;;  %v1310_v57 = vmul.f32 1.442695, %v1290_v31 }
 0x30a   : > { %v1267_v15 = vpop.xlane.xlu0 %1266  ;;  %v1265_v32 = vpop.xlane.xlu1 %1264 }
 0x30b   : > { %4492 = vpow2.f32 %v1310_v57  ;;  %v1292_v4 = vsub.f32 %v5152_v38, %v1267_v15  ;;  %v1291_v0 = vsub.f32 %v5157_v48, %v1265_v32 }
 0x30d   : > { %v1314_v49 = vmul.f32 1.442695, %v1292_v4  ;;  %v1312_v9 = vmul.f32 1.442695, %v1291_v0 }
 0x30e   : > { %v5228_v50 = vpop.eup %4484  ;;  %v1269_v51 = vpop.xlane.xlu1 %1268 }
 0x30f   : > { %v1275_v16 = vpop.xlane.xlu0 %1274  ;;  %4494 = vpow2.f32 %v1314_v49  ;;  %v1293_v52 = vsub.f32 %v5170_v55, %v1269_v51  ;;  %1338 = vadd.xlane.f32.xlu0 %v5228_v50 }
 0x310   : > { %v1296_v39 = vsub.f32 %v5166_v53, %v1275_v16  ;;  %4496 = vpow2.f32 %v1312_v9 }
 0x311   : > { %v1316_v54 = vmul.f32 1.442695, %v1293_v52 }
 0x312   : > { %v1322_v56 = vmul.f32 1.442695, %v1296_v39  ;;  %v5233_v23 = vpop.eup %4486  ;;  %v1277_v48 = vpop.xlane.xlu1 %1276 }
 0x313   : > { %v1271_v38 = vpop.xlane.xlu0 %1270  ;;  %v5235_v58 = vpop.eup %4488  ;;  %4498 = vpow2.f32 %v1316_v54  ;;  %v1297_v61 = vsub.f32 %v5184_v5, %v1277_v48  ;;  %1334 = vadd.xlane.f32.xlu0 %v5233_v23 }
 0x314   : > { %v1294_v59 = vsub.f32 %v5179_v63, %v1271_v38  ;;  %4500 = vpow2.f32 %v1322_v56  ;;  %1340 = vadd.xlane.f32.xlu1 %v5235_v58 }
 0x315   : > { %v1324_v55 = vmul.f32 1.442695, %v1297_v61 }
 0x316   : > { %v1318_v53 = vmul.f32 1.442695, %v1294_v59  ;;  %v5241_v62 = vpop.eup %4490  ;;  %v1273_v1 = vpop.xlane.xlu1 %1272 }
 0x317   : > { %v1279_v37 = vpop.xlane.xlu0 %1278  ;;  %v1295_v2 = vsub.f32 %v5194_v14, %v1273_v1 }
 0x318   : > { %4502 = vpow2.f32 %v1318_v53  ;;  %v1298_v3 = vsub.f32 %v5200_v19, %v1279_v37  ;;  %v5245_v7 = vpop.eup %4492  ;;  %1336 = vadd.xlane.f32.xlu1 %v5241_v62 }
 0x319   : > { %4504 = vpow2.f32 %v1324_v55  ;;  %v1320_v63 = vmul.f32 1.442695, %v1295_v2  ;;  %1342 = vadd.xlane.f32.xlu0 %v5245_v7 }
 0x31a   : > { %v1326_v5 = vmul.f32 1.442695, %v1298_v3  ;;  %v1281_v10 = vpop.xlane.xlu1 %1280 }
 0x31b   : > { %v1283_v8 = vpop.xlane.xlu0 %1282  ;;  %4506 = vpow2.f32 %v1320_v63  ;;  %v1299_v41 = vsub.f32 %v5212_v22, %v1281_v10 }
 0x31c   : > { %v1300_v11 = vsub.f32 %v5206_v20, %v1283_v8  ;;  %v5251_v36 = vpop.eup %4494  ;;  %4508 = vpow2.f32 %v1326_v5 }
 0x31d   : > { %v5253_v12 = vpop.eup %4496  ;;  %v1328_v14 = vmul.f32 1.442695, %v1299_v41  ;;  %1346 = vadd.xlane.f32.xlu0 %v5251_v36 }
 0x31e   : > { %v1330_v13 = vmul.f32 1.442695, %v1300_v11  ;;  %1344 = vadd.xlane.f32.xlu1 %v5253_v12  ;;  %v1285_v17 = vpop.xlane.xlu1 %1284 }
 0x31f   : > { %v1301_v18 = vsub.f32 %v5218_v25, %v1285_v17 }
 0x320   : > { %4510 = vpow2.f32 %v1330_v13  ;;  %v5258_v19 = vpop.eup %4498 }
 0x321   : > { %4512 = vpow2.f32 %v1328_v14  ;;  %v5260_v20 = vpop.eup %4500  ;;  %v1332_v42 = vmul.f32 1.442695, %v1301_v18 }
 0x322   : > { %1354 = vadd.xlane.f32.xlu0 %v5260_v20  ;;  %1348 = vadd.xlane.f32.xlu1 %v5258_v19 }
 0x323   : > { %4514 = vpow2.f32 %v1332_v42 }
 0x325   : > { %v5264_v21 = vpop.eup %4502 }
 0x326   : > { %v5266_v22 = vpop.eup %4504  ;;  %1350 = vadd.xlane.f32.xlu0 %v5264_v21 }
 0x327   : > { %1356 = vadd.xlane.f32.xlu1 %v5266_v22 }
 0x328   : > { %v5270_v25 = vpop.eup %4506 }
 0x329   : > { %v5272_v35 = vpop.eup %4508 }
 0x32a   : > { %1358 = vadd.xlane.f32.xlu0 %v5272_v35 }
 0x32b   : > { %1352 = vadd.xlane.f32.xlu1 %v5270_v25 }
 0x32d   : > { %v5276_v33 = vpop.eup %4510 }
 0x32e   : > { %v5278_v24 = vpop.eup %4512  ;;  %1362 = vadd.xlane.f32.xlu0 %v5276_v33 }
 0x32f   : > { %1360 = vadd.xlane.f32.xlu1 %v5278_v24 }
 0x330   : > { %v5282_v43 = vpop.eup %4514 }
 0x333   : > { %1364 = vadd.xlane.f32.xlu1 %v5282_v43 }
 0x398   : > { %v1339_v29 = vpop.xlane.xlu0 %1338 }
 0x399   : > { %4516 = vrcp.f32 %v1339_v29 }
 0x39c   : > { %v1335_v47 = vpop.xlane.xlu0 %1334 }
 0x39d   : > { %v1341_v34 = vpop.xlane.xlu1 %1340  ;;  %4518 = vrcp.f32 %v1335_v47 }
 0x39e   : > { %4520 = vrcp.f32 %v1341_v34 }
 0x3a1   : > { %v1337_v45 = vpop.xlane.xlu1 %1336 }
 0x3a2   : > { %4522 = vrcp.f32 %v1337_v45  ;;  %v1343_v27 = vpop.xlane.xlu0 %1342 }
 0x3a3   : > { %4524 = vrcp.f32 %v1343_v27 }
 0x3a6   : > { %v1347_v28 = vpop.xlane.xlu0 %1346  ;;  %v4517_v31 = vpop.eup %4516 }
 0x3a7   : > { %v1345_v26 = vpop.xlane.xlu1 %1344  ;;  %v1384_v51 = vmul.f32 %v4517_v31, %v5228_v50 }
 0x3a8   : > { %4526 = vrcp.f32 %v1345_v26 }
 0x3a9   : > { %4528 = vrcp.f32 %v1347_v28 }
 0x3aa   : > { %v4519_v57 = vpop.eup %4518 }
 0x3ab   : > { %v1355_v44 = vpop.xlane.xlu0 %1354  ;;  %v1349_v30 = vpop.xlane.xlu1 %1348  ;;  %v1382_v49 = vmul.f32 %v4519_v57, %v5233_v23 }
 0x3ac   : > { %4530 = vrcp.f32 %v1349_v30  ;;  %v4521_v15 = vpop.eup %4520 }
 0x3ad   : > { %4532 = vrcp.f32 %v1355_v44  ;;  %v1385_v39 = vmul.f32 %v4521_v15, %v5235_v58 }
 0x3af   : > { %v4523_v32 = vpop.eup %4522  ;;  %v1351_v4 = vpop.xlane.xlu0 %1350  ;;  %v1431_v61 = vpack.c.bf16 %v1385_v39, %v1384_v51 }
 0x3b0   : > { %v1357_v0 = vpop.xlane.xlu1 %1356  ;;  %v1383_v9 = vmul.f32 %v4523_v32, %v5241_v62  ;;  %v4525_v54 = vpop.eup %4524  ;;  %4534 = vrcp.f32 %v1351_v4 }
 0x3b1   : > { %4536 = vrcp.f32 %v1357_v0  ;;  %v1386_v53 = vmul.f32 %v4525_v54, %v5245_v7 }
 0x3b2   : > { %v1430_v16 = vpack.c.bf16 %v1383_v9, %v1382_v49  ;;  %v1778_v52 = vadd.f32 %v1383_v9, %v1382_v49 }
 0x3b3   : > { %v1359_v56 = vpop.xlane.xlu0 %1358 }
 0x3b4   : > { %v1353_v38 = vpop.xlane.xlu1 %1352  ;;  %1438 = vxpose.xlu0.c.b16.start [1/4] (short) %v1430_v16, 128  ;;  %v1779_v48 = vadd.f32 %v1778_v52, %v1384_v51 }
 0x3b5   : > { %v4527_v59 = vpop.eup %4526  ;;  %4538 = vrcp.f32 %v1353_v38  ;;  %v1777_v38 = vld [vmem:[#allocation5] sm:$0x3] }
 0x3b6   : > { %v1780_v23 = vadd.f32 %v1779_v48, %v1385_v39  ;;  %v1387_v50 = vmul.f32 %v4527_v59, %v5253_v12  ;;  %4540 = vrcp.f32 %v1359_v56  ;;  %v4529_v58 = vpop.eup %4528 }
 0x3b7   : > { %v1363_v1 = vpop.xlane.xlu0 %1362  ;;  %v1388_v8 = vmul.f32 %v4529_v58, %v5251_v36 }
 0x3b8   : > { %v1361_v55 = vpop.xlane.xlu1 %1360  ;;  %1439 = vxpose.xlu0.c.b16.cont [2/4] (short) %v1431_v61, 128  ;;  %v1781_v62 = vadd.f32 %v1780_v23, %v1386_v53  ;;  %v1432_v2 = vpack.c.bf16 %v1387_v50, %v1386_v53 }
 0x3b9   : > { %4542 = vrcp.f32 %v1361_v55  ;;  %v4531_v37 = vpop.eup %4530 }
 0x3ba   : > { %v1389_v63 = vmul.f32 %v4531_v37, %v5258_v19  ;;  %4544 = vrcp.f32 %v1363_v1  ;;  %v1782_v5 = vadd.f32 %v1781_v62, %v1387_v50  ;;  %v4533_v10 = vpop.eup %4532 }
 0x3bb   : > { %v1392_v47 = vmul.f32 %v4533_v10, %v5260_v20 }
 0x3bc   : > { %v1365_v3 = vpop.xlane.xlu1 %1364  ;;  %1440 = vxpose.xlu0.c.b16.cont [3/4] (short) %v1432_v2, 128  ;;  %v1433_v7 = vpack.c.bf16 %v1389_v63, %v1388_v8  ;;  %v1783_v41 = vadd.f32 %v1782_v5, %v1388_v8  ;;  %v1398_v8 = vld [vmem:[#allocation4 + $0xb0] sm:$0xff] }
 0x3bd   : > { %4546 = vrcp.f32 %v1365_v3  ;;  %v4535_v11 = vpop.eup %4534 }
 0x3be   : > { %v4537_v12 = vpop.eup %4536  ;;  %v1390_v14 = vmul.f32 %v4535_v11, %v5264_v21  ;;  %v1784_v18 = vadd.f32 %v1783_v41, %v1389_v63  ;;  %v1400_v63 = vld [vmem:[#allocation4 + $0xd8] sm:$0xff] }
 0x3bf   : > { %v1393_v36 = vmul.f32 %v4537_v12, %v5266_v22  ;;  %v1401_v11 = vld [vmem:[#allocation4 + $0x18] sm:$0xff] }
 0x3c0   : > { %1441 = vxpose.xlu0.c.b16.end [4/4] (short) %v1433_v7, 128  ;;  %v1785_v27 = vrot.slane %v1784_v18, 4 }
 0x3c1   : > { %v1435_v26 = vpack.c.bf16 %v1393_v36, %v1392_v47 }
 0x3c2   : > { %v4539_v13 = vpop.eup %4538  ;;  %v1786_v57 = vadd.f32 %v1785_v27, %v1784_v18  ;;  %v1404_v18 = vld [vmem:[#allocation4 + $0x30] sm:$0xff] }
 0x3c3   : > { %v1391_v17 = vmul.f32 %v4539_v13, %v5270_v25  ;;  %v4541_v42 = vpop.eup %4540  ;;  %v1399_v13 = vld [vmem:[#allocation4] sm:$0xff] }
 0x3c4   : > { %v1394_v30 = vmul.f32 %v4541_v42, %v5272_v35  ;;  %v1787_v0 = vrot.slane %v1786_v57, 2 }
 0x3c5   : > { %v1434_v19 = vpack.c.bf16 %v1391_v17, %v1390_v14  ;;  %v1791_v29 = vadd.f32 %v1391_v17, %v1390_v14 }
 0x3c6   : > { %v4543_v34 = vpop.eup %4542  ;;  %v1788_v35 = vadd.f32 %v1787_v0, %v1786_v57 }
 0x3c7   : > { %1576 = vxpose.xlu1.c.b16.start [1/4] (short) %v1434_v19, 128  ;;  %v1792_v45 = vadd.f32 %v1791_v29, %v1392_v47  ;;  %v4545_v28 = vpop.eup %4544  ;;  %v1395_v21 = vmul.f32 %v4543_v34, %v5278_v24  ;;  %v1402_v29 = vld [vmem:[#allocation4 + $0x50] sm:$0xff]  ;;  %v1405_v34 = vld [vmem:[#allocation4 + $0x48] sm:$0xff] }
 0x3c8   : > { %v1396_v20 = vmul.f32 %v4545_v28, %v5276_v33  ;;  %v1789_v52 = vrot.slane %v1788_v35, 1  ;;  %v1403_v28 = vld [vmem:[#allocation4 + $0x68] sm:$0xff] }
 0x3c9   : > { %v1793_v44 = vadd.f32 %v1792_v45, %v1393_v36  ;;  %v1436_v15 = vpack.c.bf16 %v1395_v21, %v1394_v30 }
 0x3ca   : > { %v4547_v25 = vpop.eup %4546  ;;  %v1790_v56 = vadd.f32 %v1789_v52, %v1788_v35 }
 0x3cb   : > { %1577 = vxpose.xlu1.c.b16.cont [2/4] (short) %v1435_v26, 128  ;;  %v1794_v31 = vadd.f32 %v1793_v44, %v1394_v30  ;;  %v1397_v22 = vmul.f32 %v4547_v25, %v5282_v43  ;;  %v1408_v30 = vld [vmem:[#allocation4 + $0xe8] sm:$0xff] }
 0x3cd   : > { %v1795_v32 = vadd.f32 %v1794_v31, %v1395_v21  ;;  %v1437_v49 = vpack.c.bf16 %v1397_v22, %v1396_v20  ;;  %v1406_v31 = vld [vmem:[#allocation4 + $0x80] sm:$0xff] }
 0x3cf   : > { %1578 = vxpose.xlu1.c.b16.cont [3/4] (short) %v1436_v15, 128  ;;  %v1796_v4 = vadd.f32 %v1795_v32, %v1396_v20  ;;  %v1409_v32 = vld [vmem:[#allocation4 + $0xb8] sm:$0xff] }
 0x3d1   : > { %v1797_v9 = vadd.f32 %v1796_v4, %v1397_v22  ;;  %v1407_v4 = vld [vmem:[#allocation4 + $0x88] sm:$0xff] }
 0x3d3   : > { %v1798_v51 = vrot.slane %v1797_v9, 4  ;;  %1579 = vxpose.xlu1.c.b16.end [4/4] (short) %v1437_v49, 128 }
 0x3d5   : > { %v1799_v16 = vadd.f32 %v1798_v51, %v1797_v9  ;;  %v1412_v9 = vld [vmem:[#allocation4 + $0x8] sm:$0xff] }
 0x3d7   : > { %v1800_v24 = vrot.slane %v1799_v16, 2 }
 0x3d9   : > { %v1801_v39 = vadd.f32 %v1800_v24, %v1799_v16  ;;  %v1410_v16 = vld [vmem:[#allocation4 + $0x60] sm:$0xff] }
 0x3db   : > { %v1802_v54 = vrot.slane %v1801_v39, 1 }
 0x3dd   : > { %v1803_v48 = vadd.f32 %v1802_v54, %v1801_v39  ;;  %v1413_v39 = vld [vmem:[#allocation4 + $0x78] sm:$0xff] }
 0x3df   : > { %v1807_v33 = vsel %vm1806_vm1, %v1803_v48, %v1790_v56 }
 0x3e0   : > { %v1809_v59 = vadd.f32 %v1807_v33, %v1777_v38  ;;  %v1411_v38 = vld [vmem:[#allocation4 + $0xf0] sm:$0xff] }
 0x3e2   : > { %1810 = vst [vmem:[#allocation5] sm:$0x3] %v1809_v59  ;;  %v1416_v59 = vld [vmem:[#allocation4 + $0x40] sm:$0xff] }
 0x416   : > { %v1446_v43 = vpop.trf.xlu0 }
 0x417   : > { %4135 = vmatprep.mubr.msk.bf16.mxu1 %vm1454_vm2, %v1446_v43 }
 0x41a   : > { %v1447_v61 = vpop.trf.xlu0 }
 0x41b   : > { %4136 = vmatmul.mubr.msk.bf16.vlgmr.msra.gmra.mxu1 %vm1454_vm2, %v1447_v61 }
 0x41c   : > { %4152 = vmatpush3.bf16.msra.mxu1 %v5071_v60 }
 0x41d   : > { %4153 = vmatprep.subr.bf16.mxu1 %v5090_v46 }
 0x41e   : > { %v1448_v23 = vpop.trf.xlu0 }
 0x41f   : > { %4139 = vmatprep.mubr.msk.bf16.mxu1 %vm1454_vm2, %v1448_v23  ;;  %v1414_v23 = vld [vmem:[#allocation4 + $0x38] sm:$0xff] }
 0x420   : > { %4154 = vmatpush3.bf16.msra.mxu1 %v5090_v46 }
 0x421   : > { %4155 = vmatprep.subr.bf16.mxu1 %v5088_v40 }
 0x422   : > { %v1449_v53 = vpop.trf.xlu0 }
 0x423   : > { %4140 = vmatmul.mubr.msk.bf16.gmra.mxu1 %vm1454_vm2, %v1449_v53 }
 0x424   : > { %4156 = vmatpush3.bf16.msra.mxu1 %v5088_v40 }
 0x425   : > { %4157 = vmatprep.subr.bf16.mxu1 %v5084_v6 }
 0x426   : > { %v1450_v50 = vpop.trf.xlu0 }
 0x427   : > { %4143 = vmatprep.mubr.msk.bf16.mxu1 %vm1454_vm2, %v1450_v50 }
 0x428   : > { %4158 = vmatpush3.bf16.msra.mxu1 %v5084_v6 }
 0x429   : > { %v1584_v60 = vpop.trf.xlu1 }
 0x42a   : > { %v1451_v55 = vpop.trf.xlu0 }
 0x42b   : > { %4144 = vmatmul.mubr.msk.bf16.gmra.mxu1 %vm1454_vm2, %v1451_v55 }
 0x42d   : > { %v1585_v62 = vpop.trf.xlu1 }
 0x42e   : > { %v1452_v46 = vpop.trf.xlu0 }
 0x42f   : > { %4147 = vmatprep.mubr.msk.bf16.mxu1 %vm1454_vm2, %v1452_v46  ;;  %v1415_v46 = vld [vmem:[#allocation4 + $0x58] sm:$0xff] }
 0x431   : > { %v1586_v58 = vpop.trf.xlu1 }
 0x432   : > { %v1453_v1 = vpop.trf.xlu0 }
 0x433   : > { %4148 = vmatmul.mubr.msk.bf16.gmra.mxu1 %vm1454_vm2, %v1453_v1 }
 0x434   : > { %4159 = vmatprep.mubr.msk.bf16.mxu1 %vm1454_vm2, %v1584_v60  ;;  %v1417_v60 = vld [vmem:[#allocation4 + $0xc8] sm:$0xff] }
 0x435   : > { %v1587_v40 = vpop.trf.xlu1 }
 0x439   : > { %v1588_v6 = vpop.trf.xlu1 }
 0x43b   : > { %4160 = vmatmul.mubr.msk.bf16.vlgmr.msra.gmra.mxu1 %vm1454_vm2, %v1585_v62 }
 0x43c   : > { %4163 = vmatprep.mubr.msk.bf16.mxu1 %vm1454_vm2, %v1586_v58 }
 0x43d   : > { %v1589_v37 = vpop.trf.xlu1 }
 0x441   : > { %v1590_v2 = vpop.trf.xlu1 }
 0x443   : > { %4164 = vmatmul.mubr.msk.bf16.gmra.mxu1 %vm1454_vm2, %v1587_v40  ;;  %v1420_v40 = vld [vmem:[#allocation4 + $0x70] sm:$0xff] }
 0x444   : > { %4167 = vmatprep.mubr.msk.bf16.mxu1 %vm1454_vm2, %v1588_v6 }
 0x445   : > { %v1591_v3 = vpop.trf.xlu1 }
 0x44b   : > { %4168 = vmatmul.mubr.msk.bf16.gmra.mxu1 %vm1454_vm2, %v1589_v37 }
 0x44c   : > { %4171 = vmatprep.mubr.msk.bf16.mxu1 %vm1454_vm2, %v1590_v2  ;;  %v1418_v2 = vld [vmem:[#allocation4 + $0xe0] sm:$0xff] }
 0x453   : > { %4172 = vmatmul.mubr.msk.bf16.gmra.mxu1 %vm1454_vm2, %v1591_v3 }
 0x4db   : > { %v4137_v5 = vpop.f32.mrf.mxu1 }
 0x4dc   : > { %v1715_v7 = vadd.f32 %v4137_v5, %v1400_v63  ;;  %v1421_v5 = vld [vmem:[#allocation4 + $0xc0] sm:$0xff] }
 0x4dd   : > { %v1513_v10 = vpop.f32.mrf.mxu1 }
 0x4de   : > { %1747 = vst [vmem:[#allocation4 + $0xd8] sm:$0xff] %v1715_v7  ;;  %v1713_v41 = vadd.f32 %v1513_v10, %v1398_v8  ;;  %v1419_v10 = vld [vmem:[#allocation4 + $0x90] sm:$0xff] }
 0x4df   : > { %v4138_v12 = vpop.f32.mrf.mxu1 }
 0x4e0   : > { %1745 = vst [vmem:[#allocation4 + $0xb0] sm:$0xff] %v1713_v41  ;;  %v1716_v14 = vadd.f32 %v4138_v12, %v1401_v11  ;;  %v1424_v12 = vld [vmem:[#allocation4 + $0x10] sm:$0xff] }
 0x4e1   : > { %v1516_v17 = vpop.f32.mrf.mxu1 }
 0x4e2   : > { %1748 = vst [vmem:[#allocation4 + $0x18] sm:$0xff] %v1716_v14  ;;  %v1714_v42 = vadd.f32 %v1516_v17, %v1399_v13  ;;  %v1422_v17 = vld [vmem:[#allocation4 + $0xa8] sm:$0xff] }
 0x4e3   : > { %v4141_v19 = vpop.f32.mrf.mxu1 }
 0x4e4   : > { %1746 = vst [vmem:[#allocation4] sm:$0xff] %v1714_v42  ;;  %v1719_v47 = vadd.f32 %v4141_v19, %v1404_v18  ;;  %v1425_v19 = vld [vmem:[#allocation4 + $0x28] sm:$0xff] }
 0x4e5   : > { %v1529_v36 = vpop.f32.mrf.mxu1 }
 0x4e6   : > { %1751 = vst [vmem:[#allocation4 + $0x30] sm:$0xff] %v1719_v47  ;;  %v1717_v45 = vadd.f32 %v1529_v36, %v1402_v29  ;;  %v1423_v36 = vld [vmem:[#allocation4 + $0xd0] sm:$0xff] }
 0x4e7   : > { %v4142_v27 = vpop.f32.mrf.mxu1 }
 0x4e8   : > { %1749 = vst [vmem:[#allocation4 + $0x50] sm:$0xff] %v1717_v45  ;;  %v1720_v26 = vadd.f32 %v4142_v27, %v1405_v34  ;;  %v1428_v27 = vld [vmem:[#allocation4 + $0x20] sm:$0xff] }
 0x4e9   : > { %v1532_v44 = vpop.f32.mrf.mxu1 }
 0x4ea   : > { %1752 = vst [vmem:[#allocation4 + $0x48] sm:$0xff] %v1720_v26  ;;  %v1718_v21 = vadd.f32 %v1532_v44, %v1403_v28  ;;  %v1426_v44 = vld [vmem:[#allocation4 + $0xa0] sm:$0xff] }
 0x4eb   : > { %v4145_v25 = vpop.f32.mrf.mxu1 }
 0x4ec   : > { %1750 = vst [vmem:[#allocation4 + $0x68] sm:$0xff] %v1718_v21  ;;  %v1723_v57 = vadd.f32 %v4145_v25, %v1408_v30  ;;  %v1429_v25 = vld [vmem:[#allocation4 + $0x98] sm:$0xff] }
 0x4ed   : > { %v1545_v15 = vpop.f32.mrf.mxu1 }
 0x4ee   : > { %1755 = vst [vmem:[#allocation4 + $0xe8] sm:$0xff] %v1723_v57  ;;  %v1721_v20 = vadd.f32 %v1545_v15, %v1406_v31  ;;  %v1427_v15 = vld [vmem:[#allocation4 + $0xf8] sm:$0xff] }
 0x4ef   : > { %v4146_v22 = vpop.f32.mrf.mxu1 }
 0x4f0   : > { %1753 = vst [vmem:[#allocation4 + $0x80] sm:$0xff] %v1721_v20  ;;  %v1724_v0 = vadd.f32 %v4146_v22, %v1409_v32 }
 0x4f1   : > { %v1548_v49 = vpop.f32.mrf.mxu1 }
 0x4f2   : > { %1756 = vst [vmem:[#allocation4 + $0xb8] sm:$0xff] %v1724_v0  ;;  %v1722_v51 = vadd.f32 %v1548_v49, %v1407_v4 }
 0x4f3   : > { %v4149_v35 = vpop.f32.mrf.mxu1 }
 0x4f4   : > { %1754 = vst [vmem:[#allocation4 + $0x88] sm:$0xff] %v1722_v51  ;;  %v1727_v24 = vadd.f32 %v4149_v35, %v1412_v9 }
 0x4f5   : > { %v1561_v52 = vpop.f32.mrf.mxu1 }
 0x4f6   : > { %1759 = vst [vmem:[#allocation4 + $0x8] sm:$0xff] %v1727_v24  ;;  %v1725_v54 = vadd.f32 %v1561_v52, %v1410_v16 }
 0x4f7   : > { %v4150_v56 = vpop.f32.mrf.mxu1 }
 0x4f8   : > { %1757 = vst [vmem:[#allocation4 + $0x60] sm:$0xff] %v1725_v54  ;;  %v1728_v48 = vadd.f32 %v4150_v56, %v1413_v39 }
 0x4f9   : > { %v1564_v33 = vpop.f32.mrf.mxu1 }
 0x4fa   : > { %1760 = vst [vmem:[#allocation4 + $0x78] sm:$0xff] %v1728_v48  ;;  %v1726_v43 = vadd.f32 %v1564_v33, %v1411_v38 }
 0x4fb   : > { %v4161_v61 = vpop.f32.mrf.mxu1 }
 0x4fc   : > { %1758 = vst [vmem:[#allocation4 + $0xf0] sm:$0xff] %v1726_v43  ;;  %v1731_v53 = vadd.f32 %v4161_v61, %v1416_v59 }
 0x4fd   : > { %v1650_v50 = vpop.f32.mrf.mxu1 }
 0x4fe   : > { %1763 = vst [vmem:[#allocation4 + $0x40] sm:$0xff] %v1731_v53  ;;  %v1729_v55 = vadd.f32 %v1650_v50, %v1414_v23 }
 0x4ff   : > { %v4162_v62 = vpop.f32.mrf.mxu1 }
 0x500   : > { %1761 = vst [vmem:[#allocation4 + $0x38] sm:$0xff] %v1729_v55  ;;  %v1732_v58 = vadd.f32 %v4162_v62, %v1417_v60 }
 0x501   : > { %v1653_v1 = vpop.f32.mrf.mxu1 }
 0x502   : > { %1764 = vst [vmem:[#allocation4 + $0xc8] sm:$0xff] %v1732_v58  ;;  %v1730_v6 = vadd.f32 %v1653_v1, %v1415_v46 }
 0x503   : > { %v4165_v37 = vpop.f32.mrf.mxu1 }
 0x504   : > { %1762 = vst [vmem:[#allocation4 + $0x58] sm:$0xff] %v1730_v6  ;;  %v1735_v3 = vadd.f32 %v4165_v37, %v1420_v40 }
 0x505   : > { %v1666_v63 = vpop.f32.mrf.mxu1 }
 0x506   : > { %1767 = vst [vmem:[#allocation4 + $0x70] sm:$0xff] %v1735_v3  ;;  %v1733_v8 = vadd.f32 %v1666_v63, %v1418_v2 }
 0x507   : > { %v4166_v7 = vpop.f32.mrf.mxu1 }
 0x508   : > { %1765 = vst [vmem:[#allocation4 + $0xe0] sm:$0xff] %v1733_v8  ;;  %v1736_v11 = vadd.f32 %v4166_v7, %v1421_v5 }
 0x509   : > { %v1669_v41 = vpop.f32.mrf.mxu1 }
 0x50a   : > { %1768 = vst [vmem:[#allocation4 + $0xc0] sm:$0xff] %v1736_v11  ;;  %v1734_v13 = vadd.f32 %v1669_v41, %v1419_v10 }
 0x50b   : > { %v4169_v14 = vpop.f32.mrf.mxu1 }
 0x50c   : > { %1766 = vst [vmem:[#allocation4 + $0x90] sm:$0xff] %v1734_v13  ;;  %v1739_v18 = vadd.f32 %v4169_v14, %v1424_v12 }
 0x50d   : > { %v1682_v42 = vpop.f32.mrf.mxu1 }
 0x50e   : > { %1771 = vst [vmem:[#allocation4 + $0x10] sm:$0xff] %v1739_v18  ;;  %v1737_v29 = vadd.f32 %v1682_v42, %v1422_v17 }
 0x50f   : > { %v4170_v47 = vpop.f32.mrf.mxu1 }
 0x510   : > { %1769 = vst [vmem:[#allocation4 + $0xa8] sm:$0xff] %v1737_v29  ;;  %v1740_v34 = vadd.f32 %v4170_v47, %v1425_v19 }
 0x511   : > { %v1685_v45 = vpop.f32.mrf.mxu1 }
 0x512   : > { %1772 = vst [vmem:[#allocation4 + $0x28] sm:$0xff] %v1740_v34  ;;  %v1738_v28 = vadd.f32 %v1685_v45, %v1423_v36 }
 0x513   : > { %v4173_v26 = vpop.f32.mrf.mxu1 }
 0x514   : > { %1770 = vst [vmem:[#allocation4 + $0xd0] sm:$0xff] %v1738_v28  ;;  %v1743_v30 = vadd.f32 %v4173_v26, %v1428_v27 }
 0x515   : > { %v1698_v21 = vpop.f32.mrf.mxu1 }
 0x516   : > { %1775 = vst [vmem:[#allocation4 + $0x20] sm:$0xff] %v1743_v30  ;;  %v1741_v31 = vadd.f32 %v1698_v21, %v1426_v44 }
 0x517   : > { %v4174_v57 = vpop.f32.mrf.mxu1 }
 0x518   : > { %1773 = vst [vmem:[#allocation4 + $0xa0] sm:$0xff] %v1741_v31  ;;  %v1744_v32 = vadd.f32 %v4174_v57, %v1429_v25 }
 0x519   : > { %v1701_v20 = vpop.f32.mrf.mxu1 }
 0x51a   : > { %1776 = vst [vmem:[#allocation4 + $0x98] sm:$0xff] %v1744_v32  ;;  %v1742_v22 = vadd.f32 %v1701_v20, %v1427_v15 }
 0x51c   : > { %1774 = vst [vmem:[#allocation4 + $0xf8] sm:$0xff] %v1742_v22 }
 0x51d PF: > { %1814 = sbr.rel (!%p787_p6) target bundleno = 2104 (0x838), region = 92 }
 0x522   : > { %v1864_v4 = vlaneseq  ;;  %v1863_v49 = vld [vmem:[#allocation5] sm:$0x3]  ;;  %v1847_v39 = vld [vmem:[#allocation4 + $0x38] sm:$0xff]  ;;  %v1831_v56 = vld [vmem:[#allocation4 + $0xb0] sm:$0xff]  ;;  %vm4638_vm3 = vmmov 0   ;;  %vm2667_vm4 = vcmask 1041409  }
 0x523   : > { %v1815_v24 = vld [vmem:[%s6295_s4] sm:$0xff]  ;;  %v1816_v33 = vld [vmem:[%s6295_s4 + $0x8] sm:$0xff]  ;;  %v1817_v46 = vld [vmem:[%s6295_s4 + $0x10] sm:$0xff]  ;;  %vm3773_vm5 = vcmask 41984  }
 0x524   : > { %v1865_v0 = vshrl.u32 %v1864_v4, 7  ;;  %v1848_v23 = vld [vmem:[#allocation4 + $0x58] sm:$0xff]  ;;  %v1832_v50 = vld [vmem:[#allocation4] sm:$0xff]  ;;  %v1850_v13 = vld [vmem:[#allocation4 + $0xc8] sm:$0xff] }
 0x525   : > { %v1849_v6 = vld [vmem:[#allocation4 + $0x40] sm:$0xff]  ;;  %v1833_v2 = vld [vmem:[#allocation4 + $0xd8] sm:$0xff]  ;;  %v1835_v30 = vld [vmem:[#allocation4 + $0x50] sm:$0xff] }
 0x526   : > { %v1933_v9 = vsub.s32 1, %v1865_v0  ;;  %v1866_v51 = vsub.s32 0, %v1865_v0  ;;  %v1818_v7 = vld [vmem:[%s6295_s4 + $0x18] sm:$0xff]  ;;  %v1819_v36 = vld [vmem:[%s6295_s4 + $0x20] sm:$0xff]  ;;  %v1820_v32 = vld [vmem:[%s6295_s4 + $0x28] sm:$0xff] }
 0x527   : > { %v1834_v17 = vld [vmem:[#allocation4 + $0x18] sm:$0xff]  ;;  %v1851_v26 = vld [vmem:[#allocation4 + $0xe0] sm:$0xff] }
 0x528   : > { %v1934_v35 = vrot.slane %v1863_v49, %v1933_v9  ;;  %v1867_v16 = vrot.slane %v1863_v49, %v1866_v51  ;;  %v1852_v49 = vld [vmem:[#allocation4 + $0x90] sm:$0xff]  ;;  %v1836_v51 = vld [vmem:[#allocation4 + $0x68] sm:$0xff] }
 0x52a   : > { %1936 = vbcast.lane.b32.xlu1 %v1934_v35, 256  ;;  %1869 = vbcast.lane.b32.xlu0 %v1867_v16, 256 }
 0x52e   : > { %1940 = vbcast.lane.b32.xlu1 %v1934_v35, 264  ;;  %1873 = vbcast.lane.b32.xlu0 %v1867_v16, 264 }
 0x532   : > { %1944 = vbcast.lane.b32.xlu1 %v1934_v35, 272  ;;  %1877 = vbcast.lane.b32.xlu0 %v1867_v16, 272 }
 0x536   : > { %1948 = vbcast.lane.b32.xlu1 %v1934_v35, 280  ;;  %1881 = vbcast.lane.b32.xlu0 %v1867_v16, 280 }
 0x53a   : > { %1952 = vbcast.lane.b32.xlu1 %v1934_v35, 288  ;;  %1885 = vbcast.lane.b32.xlu0 %v1867_v16, 288 }
 0x53e   : > { %1956 = vbcast.lane.b32.xlu1 %v1934_v35, 296  ;;  %1889 = vbcast.lane.b32.xlu0 %v1867_v16, 296 }
 0x542   : > { %1960 = vbcast.lane.b32.xlu1 %v1934_v35, 304  ;;  %1893 = vbcast.lane.b32.xlu0 %v1867_v16, 304 }
 0x546   : > { %1964 = vbcast.lane.b32.xlu1 %v1934_v35, 312  ;;  %1897 = vbcast.lane.b32.xlu0 %v1867_v16, 312 }
 0x54a   : > { %1968 = vbcast.lane.b32.xlu1 %v1934_v35, 320  ;;  %1901 = vbcast.lane.b32.xlu0 %v1867_v16, 320 }
 0x54e   : > { %1972 = vbcast.lane.b32.xlu1 %v1934_v35, 328  ;;  %1905 = vbcast.lane.b32.xlu0 %v1867_v16, 328 }
 0x552   : > { %1976 = vbcast.lane.b32.xlu1 %v1934_v35, 336  ;;  %1909 = vbcast.lane.b32.xlu0 %v1867_v16, 336 }
 0x556   : > { %1980 = vbcast.lane.b32.xlu1 %v1934_v35, 344  ;;  %1913 = vbcast.lane.b32.xlu0 %v1867_v16, 344 }
 0x55a   : > { %1984 = vbcast.lane.b32.xlu1 %v1934_v35, 352  ;;  %1917 = vbcast.lane.b32.xlu0 %v1867_v16, 352 }
 0x55e   : > { %1988 = vbcast.lane.b32.xlu1 %v1934_v35, 360  ;;  %1921 = vbcast.lane.b32.xlu0 %v1867_v16, 360 }
 0x562   : > { %1992 = vbcast.lane.b32.xlu1 %v1934_v35, 368  ;;  %1925 = vbcast.lane.b32.xlu0 %v1867_v16, 368 }
 0x566   : > { %1996 = vbcast.lane.b32.xlu1 %v1934_v35, 376  ;;  %1929 = vbcast.lane.b32.xlu0 %v1867_v16, 376 }
 0x59c   : > { %v1937_v52 = vpop.permute.xlu1 %1936  ;;  %v1870_v54 = vpop.permute.xlu0 %1869 }
 0x59d   : > { %v2014_v38 = vmul.f32 %v1937_v52, %v1815_v24  ;;  %v1998_v48 = vmul.f32 %v1870_v54, %v1815_v24  ;;  %v1821_v54 = vld [vmem:[%s6295_s4 + $0x30] sm:$0xff] }
 0x59f   : > { %v5332_v59 = vsub.f32 %v1847_v39, %v2014_v38  ;;  %v5334_v43 = vsub.f32 %v1831_v56, %v1998_v48 }
 0x5a0   : > { %v1941_v61 = vpop.permute.xlu1 %1940  ;;  %v1874_v53 = vpop.permute.xlu0 %1873 }
 0x5a1   : > { %v2015_v60 = vmul.f32 %v1941_v61, %v1816_v33  ;;  %v1999_v55 = vmul.f32 %v1874_v53, %v1816_v33  ;;  %v2062_v62 = vadd.f32 %v5332_v59, %v5334_v43  ;;  %v1853_v61 = vld [vmem:[#allocation4 + $0x70] sm:$0xff] }
 0x5a2   : > { %v1837_v53 = vld [vmem:[#allocation4 + $0x30] sm:$0xff] }
 0x5a3   : > { %v5341_v58 = vsub.f32 %v1848_v23, %v2015_v60  ;;  %v5343_v1 = vsub.f32 %v1832_v50, %v1999_v55  ;;  %2063 = vadd.xlane.f32.xlu0 %v2062_v62 }
 0x5a4   : > { %v1945_v40 = vpop.permute.xlu1 %1944  ;;  %v1878_v37 = vpop.permute.xlu0 %1877 }
 0x5a5   : > { %v2016_v3 = vmul.f32 %v1945_v40, %v1817_v46  ;;  %v2000_v63 = vmul.f32 %v1878_v37, %v1817_v46  ;;  %v2065_v5 = vadd.f32 %v5341_v58, %v5343_v1  ;;  %v2127_v8 = vmul.f32 %v5343_v1, %v5343_v1  ;;  %v1822_v40 = vld [vmem:[%s6295_s4 + $0x38] sm:$0xff] }
 0x5a6   : > { %v2143_v10 = vmul.f32 %v5341_v58, %v5341_v58 }
 0x5a7   : > { %v5354_v11 = vsub.f32 %v1849_v6, %v2016_v3  ;;  %v5356_v41 = vsub.f32 %v1833_v2, %v2000_v63  ;;  %2066 = vadd.xlane.f32.xlu1 %v2065_v5  ;;  %v1854_v63 = vld [vmem:[#allocation4 + $0xc0] sm:$0xff] }
 0x5a8   : > { %v1949_v12 = vpop.permute.xlu1 %1948  ;;  %v1882_v14 = vpop.permute.xlu0 %1881  ;;  %v2161_v18 = vadd.f32 %v2143_v10, %v2127_v8  ;;  %v1838_v8 = vld [vmem:[#allocation4 + $0x48] sm:$0xff] }
 0x5a9   : > { %v2017_v42 = vmul.f32 %v1949_v12, %v1818_v7  ;;  %v2001_v19 = vmul.f32 %v1882_v14, %v1818_v7  ;;  %v2068_v29 = vadd.f32 %v5354_v11, %v5356_v41  ;;  %v2128_v47 = vmul.f32 %v5356_v41, %v5356_v41 }
 0x5aa   : > { %v2144_v34 = vmul.f32 %v5354_v11, %v5354_v11 }
 0x5ab   : > { %v5367_v45 = vsub.f32 %v1850_v13, %v2017_v42  ;;  %v5369_v27 = vsub.f32 %v1834_v17, %v2001_v19  ;;  %2162 = vadd.xlane.f32.xlu1 %v2161_v18  ;;  %2069 = vadd.xlane.f32.xlu0 %v2068_v29  ;;  %v1823_v17 = vld [vmem:[%s6295_s4 + $0x40] sm:$0xff] }
 0x5ac   : > { %v1953_v28 = vpop.permute.xlu1 %1952  ;;  %v1886_v44 = vpop.permute.xlu0 %1885  ;;  %v2164_v21 = vadd.f32 %v2144_v34, %v2128_v47  ;;  %v1855_v47 = vld [vmem:[#allocation4 + $0xa8] sm:$0xff]  ;;  %v1839_v34 = vld [vmem:[#allocation4 + $0x80] sm:$0xff] }
 0x5ad   : > { %v2018_v25 = vmul.f32 %v1953_v28, %v1819_v36  ;;  %v2002_v31 = vmul.f32 %v1886_v44, %v1819_v36  ;;  %v2071_v57 = vadd.f32 %v5367_v45, %v5369_v27  ;;  %v2129_v15 = vmul.f32 %v5369_v27, %v5369_v27 }
 0x5ae   : > { %v2145_v20 = vmul.f32 %v5367_v45, %v5367_v45 }
 0x5af   : > { %v5380_v22 = vsub.f32 %v1851_v26, %v2018_v25  ;;  %v5382_v4 = vsub.f32 %v1835_v30, %v2002_v31  ;;  %2165 = vadd.xlane.f32.xlu1 %v2164_v21  ;;  %2072 = vadd.xlane.f32.xlu0 %v2071_v57  ;;  %v1824_v25 = vld [vmem:[%s6295_s4 + $0x48] sm:$0xff] }
 0x5b0   : > { %v1957_v0 = vpop.permute.xlu1 %1956  ;;  %v1890_v9 = vpop.permute.xlu0 %1889  ;;  %v2167_v35 = vadd.f32 %v2145_v20, %v2129_v15  ;;  %v1856_v20 = vld [vmem:[#allocation4 + $0xd0] sm:$0xff] }
 0x5b1   : > { %v2019_v16 = vmul.f32 %v1957_v0, %v1820_v32  ;;  %v2003_v24 = vmul.f32 %v1890_v9, %v1820_v32  ;;  %v2074_v52 = vadd.f32 %v5380_v22, %v5382_v4  ;;  %v2130_v39 = vmul.f32 %v5382_v4, %v5382_v4 }
 0x5b2   : > { %v2146_v56 = vmul.f32 %v5380_v22, %v5380_v22 }
 0x5b3   : > { %v5393_v38 = vsub.f32 %v1852_v49, %v2019_v16  ;;  %v5395_v48 = vsub.f32 %v1836_v51, %v2003_v24  ;;  %2168 = vadd.xlane.f32.xlu1 %v2167_v35  ;;  %2075 = vadd.xlane.f32.xlu0 %v2074_v52  ;;  %v1840_v49 = vld [vmem:[#allocation4 + $0x88] sm:$0xff] }
 0x5b4   : > { %v1961_v33 = vpop.permute.xlu1 %1960  ;;  %v1894_v23 = vpop.permute.xlu0 %1893  ;;  %v2170_v50 = vadd.f32 %v2146_v56, %v2130_v39  ;;  %v1825_v52 = vld [vmem:[%s6295_s4 + $0x50] sm:$0xff] }
 0x5b5   : > { %v2020_v60 = vmul.f32 %v1961_v33, %v1821_v54  ;;  %v2004_v55 = vmul.f32 %v1894_v23, %v1821_v54  ;;  %v2077_v62 = vadd.f32 %v5393_v38, %v5395_v48  ;;  %v2131_v46 = vmul.f32 %v5395_v48, %v5395_v48 }
 0x5b6   : > { %v2147_v6 = vmul.f32 %v5393_v38, %v5393_v38 }
 0x5b7   : > { %v5406_v37 = vsub.f32 %v1853_v61, %v2020_v60  ;;  %v5408_v2 = vsub.f32 %v1837_v53, %v2004_v55  ;;  %2171 = vadd.xlane.f32.xlu1 %v2170_v50  ;;  %2078 = vadd.xlane.f32.xlu0 %v2077_v62  ;;  %v1857_v61 = vld [vmem:[#allocation4 + $0x10] sm:$0xff]  ;;  %v1841_v53 = vld [vmem:[#allocation4 + $0xe8] sm:$0xff] }
 0x5b8   : > { %v1965_v3 = vpop.permute.xlu1 %1964  ;;  %v1898_v5 = vpop.permute.xlu0 %1897  ;;  %v2173_v7 = vadd.f32 %v2147_v6, %v2131_v46 }
 0x5b9   : > { %v2021_v10 = vmul.f32 %v1965_v3, %v1822_v40  ;;  %v2005_v12 = vmul.f32 %v1898_v5, %v1822_v40  ;;  %v2080_v13 = vadd.f32 %v5406_v37, %v5408_v2  ;;  %v2132_v14 = vmul.f32 %v5408_v2, %v5408_v2  ;;  %v1826_v40 = vld [vmem:[%s6295_s4 + $0x58] sm:$0xff] }
 0x5ba   : > { %v2148_v18 = vmul.f32 %v5406_v37, %v5406_v37 }
 0x5bb   : > { %v5419_v42 = vsub.f32 %v1854_v63, %v2021_v10  ;;  %v5421_v19 = vsub.f32 %v1838_v8, %v2005_v12  ;;  %2174 = vadd.xlane.f32.xlu1 %v2173_v7  ;;  %2081 = vadd.xlane.f32.xlu0 %v2080_v13  ;;  %v1858_v8 = vld [vmem:[#allocation4 + $0x28] sm:$0xff]  ;;  %v1842_v10 = vld [vmem:[#allocation4 + $0xb8] sm:$0xff]  ;;  %v2126_v13 = vmul.f32 %v5334_v43, %v5334_v43 }
 0x5bc   : > { %v1969_v29 = vpop.permute.xlu1 %1968  ;;  %v1902_v36 = vpop.permute.xlu0 %1901  ;;  %v2176_v28 = vadd.f32 %v2148_v18, %v2132_v14  ;;  %v2142_v14 = vmul.f32 %v5332_v59, %v5332_v59 }
 0x5bd   : > { %v2022_v26 = vmul.f32 %v1969_v29, %v1823_v17  ;;  %v2006_v44 = vmul.f32 %v1902_v36, %v1823_v17  ;;  %v2083_v30 = vadd.f32 %v5419_v42, %v5421_v19  ;;  %v2133_v21 = vmul.f32 %v5421_v19, %v5421_v19  ;;  %v1827_v36 = vld [vmem:[%s6295_s4 + $0x60] sm:$0xff] }
 0x5be   : > { %v2149_v31 = vmul.f32 %v5419_v42, %v5419_v42 }
 0x5bf   : > { %v5432_v57 = vsub.f32 %v1855_v47, %v2022_v26  ;;  %v5434_v15 = vsub.f32 %v1839_v34, %v2006_v44  ;;  %2177 = vadd.xlane.f32.xlu1 %v2176_v28  ;;  %2084 = vadd.xlane.f32.xlu0 %v2083_v30  ;;  %v1859_v30 = vld [vmem:[#allocation4 + $0xa0] sm:$0xff] }
 0x5c0   : > { %v1973_v32 = vpop.permute.xlu1 %1972  ;;  %v1906_v0 = vpop.permute.xlu0 %1905  ;;  %v2179_v9 = vadd.f32 %v2149_v31, %v2133_v21 }
 0x5c1   : > { %v2023_v51 = vmul.f32 %v1973_v32, %v1824_v25  ;;  %v2007_v35 = vmul.f32 %v1906_v0, %v1824_v25  ;;  %v2086_v16 = vadd.f32 %v5432_v57, %v5434_v15  ;;  %v2134_v24 = vmul.f32 %v5434_v15, %v5434_v15  ;;  %v1843_v25 = vld [vmem:[#allocation4 + $0x60] sm:$0xff] }
 0x5c2   : > { %v2150_v39 = vmul.f32 %v5432_v57, %v5432_v57  ;;  %v2158_v32 = vadd.f32 %v2142_v14, %v2126_v13 }
 0x5c3   : > { %v5445_v54 = vsub.f32 %v1856_v20, %v2023_v51  ;;  %v5447_v56 = vsub.f32 %v1840_v49, %v2007_v35  ;;  %2180 = vadd.xlane.f32.xlu1 %v2179_v9  ;;  %2087 = vadd.xlane.f32.xlu0 %v2086_v16  ;;  %v1828_v51 = vld [vmem:[%s6295_s4 + $0x68] sm:$0xff] }
 0x5c4   : > { %v1977_v33 = vpop.permute.xlu1 %1976  ;;  %v1910_v23 = vpop.permute.xlu0 %1909  ;;  %v2182_v50 = vadd.f32 %v2150_v39, %v2134_v24 }
 0x5c5   : > { %v2024_v60 = vmul.f32 %v1977_v33, %v1825_v52  ;;  %v2008_v55 = vmul.f32 %v1910_v23, %v1825_v52  ;;  %v2089_v62 = vadd.f32 %v5445_v54, %v5447_v56  ;;  %v2135_v46 = vmul.f32 %v5447_v56, %v5447_v56  ;;  %v1860_v33 = vld [vmem:[#allocation4 + $0xf8] sm:$0xff]  ;;  %v1844_v23 = vld [vmem:[#allocation4 + $0xf0] sm:$0xff] }
 0x5c6   : > { %v2151_v6 = vmul.f32 %v5445_v54, %v5445_v54 }
 0x5c7   : > { %v5458_v3 = vsub.f32 %v1857_v61, %v2024_v60  ;;  %v5460_v63 = vsub.f32 %v1841_v53, %v2008_v55  ;;  %2183 = vadd.xlane.f32.xlu1 %v2182_v50  ;;  %2090 = vadd.xlane.f32.xlu0 %v2089_v62  ;;  %v1829_v62 = vld [vmem:[%s6295_s4 + $0x70] sm:$0xff] }
 0x5c8   : > { %v1981_v5 = vpop.permute.xlu1 %1980  ;;  %v1914_v7 = vpop.permute.xlu0 %1913  ;;  %v2185_v12 = vadd.f32 %v2151_v6, %v2135_v46 }
 0x5c9   : > { %v2025_v17 = vmul.f32 %v1981_v5, %v1826_v40  ;;  %v2009_v18 = vmul.f32 %v1914_v7, %v1826_v40  ;;  %v2092_v29 = vadd.f32 %v5458_v3, %v5460_v63  ;;  %v2136_v47 = vmul.f32 %v5460_v63, %v5460_v63  ;;  %v1861_v7 = vld [vmem:[#allocation4 + $0x20] sm:$0xff] }
 0x5ca   : > { %v2152_v34 = vmul.f32 %v5458_v3, %v5458_v3 }
 0x5cb   : > { %v5475_v28 = vsub.f32 %v1858_v8, %v2025_v17  ;;  %v5477_v26 = vsub.f32 %v1842_v10, %v2009_v18  ;;  %2186 = vadd.xlane.f32.xlu1 %v2185_v12  ;;  %2093 = vadd.xlane.f32.xlu0 %v2092_v29  ;;  %v1845_v12 = vld [vmem:[#allocation4 + $0x8] sm:$0xff] }
 0x5cc   : > { %v1985_v44 = vpop.permute.xlu1 %1984  ;;  %v1918_v21 = vpop.permute.xlu0 %1917  ;;  %v2188_v31 = vadd.f32 %v2152_v34, %v2136_v47  ;;  %v1830_v47 = vld [vmem:[%s6295_s4 + $0x78] sm:$0xff] }
 0x5cd   : > { %6410 = vst [vmem:[#allocation9_spill] sm:$0xff] %v5475_v28  ;;  %6411 = vst [vmem:[#allocation10_spill] sm:$0xff] %v5477_v26  ;;  %v2026_v20 = vmul.f32 %v1985_v44, %v1827_v36  ;;  %v2010_v0 = vmul.f32 %v1918_v21, %v1827_v36  ;;  %v2137_v49 = vmul.f32 %v5477_v26, %v5477_v26  ;;  %v1862_v21 = vld [vmem:[#allocation4 + $0x98] sm:$0xff] }
 0x5ce   : > { %v2153_v9 = vmul.f32 %v5475_v28, %v5475_v28  ;;  %v2095_v35 = vadd.f32 %v5475_v28, %v5477_v26 }
 0x5cf   : > { %v5488_v16 = vsub.f32 %v1859_v30, %v2026_v20  ;;  %v5490_v24 = vsub.f32 %v1843_v25, %v2010_v0  ;;  %2189 = vadd.xlane.f32.xlu1 %v2188_v31  ;;  %2159 = vadd.xlane.f32.xlu0 %v2158_v32  ;;  %v1846_v31 = vld [vmem:[#allocation4 + $0x78] sm:$0xff] }
 0x5d0   : > { %v2191_v52 = vadd.f32 %v2153_v9, %v2137_v49  ;;  %v1989_v39 = vpop.permute.xlu1 %1988  ;;  %v1922_v61 = vpop.permute.xlu0 %1921 }
 0x5d1   : > { %6412 = vst [vmem:[#allocation11_spill] sm:$0xff] %v5488_v16  ;;  %6413 = vst [vmem:[#allocation12_spill] sm:$0xff] %v5490_v24  ;;  %v2027_v53 = vmul.f32 %v1989_v39, %v1828_v51  ;;  %v2011_v50 = vmul.f32 %v1922_v61, %v1828_v51  ;;  %v2138_v60 = vmul.f32 %v5490_v24, %v5490_v24 }
 0x5d2   : > { %v2154_v55 = vmul.f32 %v5488_v16, %v5488_v16  ;;  %v2098_v46 = vadd.f32 %v5488_v16, %v5490_v24 }
 0x5d3   : > { %v5501_v40 = vsub.f32 %v1860_v33, %v2027_v53  ;;  %v5503_v6 = vsub.f32 %v1844_v23, %v2011_v50  ;;  %2192 = vadd.xlane.f32.xlu1 %v2191_v52  ;;  %2096 = vadd.xlane.f32.xlu0 %v2095_v35  ;;  %v5537_v53 = vld [vmem:[%s6299_s8] ss:$0 sm:$0xff] }
 0x5d4   : > { %v2194_v5 = vadd.f32 %v2154_v55, %v2138_v60  ;;  %v1993_v8 = vpop.permute.xlu1 %1992  ;;  %v1926_v10 = vpop.permute.xlu0 %1925  ;;  %v5544_v50 = vld [vmem:[%s6300_s9] ss:$0 sm:$0xff]  ;;  %v2657_v60 = vld [vmem:[%s6301_s10 + $0x78] sm:$0xff] }
 0x5d5   : > { %6414 = vst [vmem:[#allocation13_spill] sm:$0xff] %v5501_v40  ;;  %6415 = vst [vmem:[#allocation14_spill] sm:$0xff] %v5503_v6  ;;  %v2028_v13 = vmul.f32 %v1993_v8, %v1829_v62  ;;  %v2012_v14 = vmul.f32 %v1926_v10, %v1829_v62  ;;  %v2139_v17 = vmul.f32 %v5503_v6, %v5503_v6  ;;  %v5552_v55 = vand.u32 4294901760, %v2657_v60 }
 0x5d6   : > { %v2155_v18 = vmul.f32 %v5501_v40, %v5501_v40  ;;  %v2101_v29 = vadd.f32 %v5501_v40, %v5503_v6 }
 0x5d7   : > { %v5514_v36 = vsub.f32 %v1861_v7, %v2028_v13  ;;  %v5516_v34 = vsub.f32 %v1845_v12, %v2012_v14  ;;  %2195 = vadd.xlane.f32.xlu1 %v2194_v5  ;;  %2099 = vadd.xlane.f32.xlu0 %v2098_v46  ;;  %6420 = vst [vmem:[#allocation19_spill] sm:$0xff] %v5552_v55  ;;  %v2656_v46 = vld [vmem:[%s6301_s10 + $0x70] sm:$0xff]  ;;  %v2655_v12 = vld [vmem:[%s6301_s10 + $0x68] sm:$0xff] }
 0x5d8   : > { %v2197_v44 = vadd.f32 %v2155_v18, %v2139_v17  ;;  %v1997_v30 = vpop.permute.xlu1 %1996  ;;  %v1930_v25 = vpop.permute.xlu0 %1929  ;;  %v5555_v62 = vsub.f32 %v2657_v60, %v5552_v55  ;;  %v5563_v8 = vand.u32 4294901760, %v2656_v46  ;;  %v5577_v17 = vand.u32 4294901760, %v2655_v12 }
 0x5d9   : > { %6416 = vst [vmem:[#allocation15_spill] sm:$0xff] %v5514_v36  ;;  %6417 = vst [vmem:[#allocation16_spill] sm:$0xff] %v5516_v34  ;;  %v2029_v32 = vmul.f32 %v1997_v30, %v1830_v47  ;;  %v2013_v20 = vmul.f32 %v1930_v25, %v1830_v47  ;;  %v2140_v0 = vmul.f32 %v5516_v34, %v5516_v34  ;;  %v6337_v18 = vmov 0.0  }
 0x5da   : > { %v2156_v49 = vmul.f32 %v5514_v36, %v5514_v36  ;;  %v2104_v9 = vadd.f32 %v5514_v36, %v5516_v34  ;;  %6421 = vst [vmem:[#allocation20_spill] sm:$0xff] %v5555_v62  ;;  %v6315_v5 = vand.u32 4294901760, %v5555_v62  ;;  %6422 = vst [vmem:[#allocation21_spill] sm:$0xff] %v5563_v8  ;;  %v5569_v10 = vsub.f32 %v2656_v46, %v5563_v8 }
 0x5db   : > { %2198 = vadd.xlane.f32.xlu1 %v2197_v44  ;;  %2102 = vadd.xlane.f32.xlu0 %v2101_v29  ;;  %v5524_v51 = vsub.f32 %v1862_v21, %v2029_v32  ;;  %v5526_v35 = vsub.f32 %v1846_v31, %v2013_v20  ;;  %6424 = vst [vmem:[#allocation23_spill] sm:$0xff] %v5577_v17  ;;  %v2654_v44 = vld [vmem:[%s6301_s10 + $0x60] sm:$0xff] }
 0x5dc   : > { %v2200_v52 = vadd.f32 %v2156_v49, %v2140_v0  ;;  %v2765_v7 = vsub.f32 %v5555_v62, %v6315_v5  ;;  %6423 = vst [vmem:[#allocation22_spill] sm:$0xff] %v5569_v10  ;;  %v6313_v14 = vand.u32 4294901760, %v5569_v10  ;;  %4210 = vmatprep.subr.mxu1 %v6337_v18  ;;  %4175 = vmatprep.subr.mxu0 %v6337_v18  ;;  %v5596_v25 = vand.u32 4294901760, %v2654_v44  ;;  %v2653_v49 = vld [vmem:[%s6301_s10 + $0x58] sm:$0xff] }
 0x5dd   : > { %6418 = vst [vmem:[#allocation17_spill] sm:$0xff] %v5524_v51  ;;  %6419 = vst [vmem:[#allocation18_spill] sm:$0xff] %v5526_v35  ;;  %v2107_v39 = vadd.f32 %v5524_v51, %v5526_v35  ;;  %v2141_v33 = vmul.f32 %v5526_v35, %v5526_v35  ;;  %v2157_v61 = vmul.f32 %v5524_v51, %v5524_v51  ;;  %4176 = vmatpush3.xpose.msra.mxu0 %v5552_v55 }
 0x5de   : > { %v2766_v13 = vand.u32 4294901760, %v2765_v7  ;;  %v2772_v29 = vsub.f32 %v5569_v10, %v6313_v14  ;;  %v5586_v47 = vsub.f32 %v2655_v12, %v5577_v17  ;;  %4177 = vmatprep.subr.mxu0 %v6337_v18  ;;  %6426 = vst [vmem:[#allocation25_spill] sm:$0xff] %v5596_v25  ;;  %v5603_v32 = vsub.f32 %v2654_v44, %v5596_v25  ;;  %v2651_v12 = vld [vmem:[%s6301_s10 + $0x48] sm:$0xff] }
 0x5df   : > { %2201 = vadd.xlane.f32.xlu1 %v2200_v52  ;;  %2105 = vadd.xlane.f32.xlu0 %v2104_v9  ;;  %v2203_v23 = vadd.f32 %v2157_v61, %v2141_v33  ;;  %v5617_v52 = vand.u32 4294901760, %v2653_v49  ;;  %v2652_v61 = vld [vmem:[%s6301_s10 + $0x50] sm:$0xff]  ;;  %v5648_v44 = vand.u32 4294901760, %v2651_v12 }
 0x5e0   : > { %4211 = vmatpush3.xpose.msra.mxu1 %v2766_v13  ;;  %6425 = vst [vmem:[#allocation24_spill] sm:$0xff] %v5586_v47  ;;  %v2773_v30 = vand.u32 4294901760, %v2772_v29  ;;  %v6312_v21 = vand.u32 4294901760, %v5586_v47  ;;  %6427 = vst [vmem:[#allocation26_spill] sm:$0xff] %v5603_v32  ;;  %v6310_v0 = vand.u32 4294901760, %v5603_v32  ;;  %v5631_v60 = vand.u32 4294901760, %v2652_v61 }
 0x5e1   : > { %4212 = vmatprep.subr.mxu1 %v6337_v18  ;;  %4178 = vmatpush3.xpose.msra.mxu0 %v5563_v8  ;;  %6428 = vst [vmem:[#allocation27_spill] sm:$0xff] %v5617_v52  ;;  %v5623_v33 = vsub.f32 %v2653_v49, %v5617_v52  ;;  %6432 = vst [vmem:[#allocation31_spill] sm:$0xff] %v5648_v44 }
 0x5e2   : > { %v2779_v31 = vsub.f32 %v5586_v47, %v6312_v21  ;;  %4179 = vmatprep.subr.mxu0 %v6337_v18  ;;  %v2786_v9 = vsub.f32 %v5603_v32, %v6310_v0  ;;  %6430 = vst [vmem:[#allocation29_spill] sm:$0xff] %v5631_v60  ;;  %v5640_v7 = vsub.f32 %v2652_v61, %v5631_v60 }
 0x5e3   : > { %2108 = vadd.xlane.f32.xlu0 %v2107_v39  ;;  %6429 = vst [vmem:[#allocation28_spill] sm:$0xff] %v5623_v33 }
 0x5e4   : > { %4213 = vmatpush3.xpose.msra.mxu1 %v2773_v30  ;;  %v2780_v20 = vand.u32 4294901760, %v2779_v31  ;;  %v2787_v39 = vand.u32 4294901760, %v2786_v9  ;;  %6431 = vst [vmem:[#allocation30_spill] sm:$0xff] %v5640_v7  ;;  %v6307_v29 = vand.u32 4294901760, %v5640_v7  ;;  %v5657_v31 = vsub.f32 %v2651_v12, %v5648_v44  ;;  %v2649_v12 = vld [vmem:[%s6301_s10 + $0x38] sm:$0xff] }
 0x5e5   : > { %4214 = vmatprep.subr.mxu1 %v6337_v18  ;;  %4180 = vmatpush3.xpose.msra.mxu0 %v5577_v17 }
 0x5e6   : > { %4181 = vmatprep.subr.mxu0 %v6337_v18  ;;  %v2800_v30 = vsub.f32 %v5640_v7, %v6307_v29  ;;  %6433 = vst [vmem:[#allocation32_spill] sm:$0xff] %v5657_v31  ;;  %v6308_v9 = vand.u32 4294901760, %v5657_v31  ;;  %v5682_v29 = vand.u32 4294901760, %v2649_v12 }
 0x5e7   : > { %2204 = vadd.xlane.f32.xlu0 %v2203_v23  ;;  %v6309_v23 = vand.u32 4294901760, %v5623_v33 }
 0x5e8   : > { %4215 = vmatpush3.xpose.msra.mxu1 %v2780_v20  ;;  %v2650_v20 = vld [vmem:[%s6301_s10 + $0x40] sm:$0xff]  ;;  %v2801_v49 = vand.u32 4294901760, %v2800_v30  ;;  %v2807_v61 = vsub.f32 %v5657_v31, %v6308_v9  ;;  %6436 = vst [vmem:[#allocation35_spill] sm:$0xff] %v5682_v29 }
 0x5e9   : > { %4216 = vmatprep.subr.mxu1 %v6337_v18  ;;  %4182 = vmatpush3.xpose.msra.mxu0 %v5596_v25  ;;  %v2793_v46 = vsub.f32 %v5623_v33, %v6309_v23 }
 0x5ea   : > { %4183 = vmatprep.subr.mxu0 %v6337_v18 }
 0x5eb   : > { %v2794_v13 = vand.u32 4294901760, %v2793_v46 }
 0x5ec   : > { %4217 = vmatpush3.xpose.msra.mxu1 %v2787_v39  ;;  %v5665_v39 = vand.u32 4294901760, %v2650_v20 }
 0x5ed   : > { %4218 = vmatprep.subr.mxu1 %v6337_v18  ;;  %4184 = vmatpush3.xpose.msra.mxu0 %v5617_v52 }
 0x5ee   : > { %4185 = vmatprep.subr.mxu0 %v6337_v18  ;;  %6434 = vst [vmem:[#allocation33_spill] sm:$0xff] %v5665_v39  ;;  %v5674_v46 = vsub.f32 %v2650_v20, %v5665_v39 }
 0x5f0   : > { %2372 = vbcast.lane.b32.xlu1 %v5537_v53, 256  ;;  %4219 = vmatpush3.xpose.msra.mxu1 %v2794_v13  ;;  %6435 = vst [vmem:[#allocation34_spill] sm:$0xff] %v5674_v46  ;;  %v2808_v13 = vand.u32 4294901760, %v2807_v61  ;;  %v6311_v30 = vand.u32 4294901760, %v5674_v46  ;;  %v2648_v61 = vld [vmem:[%s6301_s10 + $0x30] sm:$0xff] }
 0x5f1   : > { %4220 = vmatprep.subr.mxu1 %v6337_v18  ;;  %4186 = vmatpush3.xpose.msra.mxu0 %v5631_v60  ;;  %v5699_v0 = vand.u32 4294901760, %v2648_v61 }
 0x5f2   : > { %4187 = vmatprep.subr.mxu0 %v6337_v18  ;;  %v2814_v20 = vsub.f32 %v5674_v46, %v6311_v30 }
 0x5f3   : > { %6438 = vst [vmem:[#allocation37_spill] sm:$0xff] %v5699_v0 }
 0x5f4   : > { %2380 = vbcast.lane.b32.xlu1 %v5537_v53, 272  ;;  %4221 = vmatpush3.xpose.msra.mxu1 %v2801_v49  ;;  %v5691_v49 = vsub.f32 %v2649_v12, %v5682_v29  ;;  %v2815_v9 = vand.u32 4294901760, %v2814_v20  ;;  %v2647_v20 = vld [vmem:[%s6301_s10 + $0x28] sm:$0xff] }
 0x5f5   : > { %4222 = vmatprep.subr.mxu1 %v6337_v18  ;;  %4188 = vmatpush3.xpose.msra.mxu0 %v5648_v44  ;;  %v5716_v14 = vand.u32 4294901760, %v2647_v20 }
 0x5f6   : > { %4189 = vmatprep.subr.mxu0 %v6337_v18  ;;  %6437 = vst [vmem:[#allocation36_spill] sm:$0xff] %v5691_v49  ;;  %v6314_v23 = vand.u32 4294901760, %v5691_v49 }
 0x5f7   : > { %6440 = vst [vmem:[#allocation39_spill] sm:$0xff] %v5716_v14 }
 0x5f8   : > { %2472 = vbcast.lane.b32.xlu1 %v5544_v50, 256  ;;  %4223 = vmatpush3.xpose.msra.mxu1 %v2808_v13  ;;  %v2821_v12 = vsub.f32 %v5691_v49, %v6314_v23  ;;  %v5708_v13 = vsub.f32 %v2648_v61, %v5699_v0  ;;  %v5725_v61 = vsub.f32 %v2647_v20, %v5716_v14 }
 0x5f9   : > { %4224 = vmatprep.subr.mxu1 %v6337_v18  ;;  %4190 = vmatpush3.xpose.msra.mxu0 %v5665_v39  ;;  %v6448_v39 = vmov 0.0  }
 0x5fa   : > { %4191 = vmatprep.subr.mxu0 %v6337_v18  ;;  %6439 = vst [vmem:[#allocation38_spill] sm:$0xff] %v5708_v13  ;;  %v2822_v30 = vand.u32 4294901760, %v2821_v12  ;;  %v6318_v21 = vand.u32 4294901760, %v5708_v13  ;;  %6441 = vst [vmem:[#allocation40_spill] sm:$0xff] %v5725_v61  ;;  %v2646_v12 = vld [vmem:[%s6301_s10 + $0x20] sm:$0xff]  ;;  %v6321_v5 = vand.u32 4294901760, %v5725_v61  ;;  %4242 = vmatprep.mubr.msk.f32.mxu1 %vm4638_vm3, %v6448_v39 }
 0x5fb   : > { %v5733_v49 = vand.u32 4294901760, %v2646_v12  ;;  %4207 = vmatprep.mubr.msk.f32.mxu0 %vm4638_vm3, %v6448_v39 }
 0x5fc   : > { %2384 = vbcast.lane.b32.xlu1 %v5537_v53, 280  ;;  %4225 = vmatpush3.xpose.msra.mxu1 %v2815_v9  ;;  %v2828_v9 = vsub.f32 %v5708_v13, %v6318_v21 }
 0x5fd   : > { %2376 = vbcast.lane.b32.xlu0 %v5537_v53, 264  ;;  %4226 = vmatprep.subr.mxu1 %v6337_v18  ;;  %6442 = vst [vmem:[#allocation41_spill] sm:$0xff] %v5733_v49  ;;  %v5742_v20 = vsub.f32 %v2646_v12, %v5733_v49 }
 0x5fe   : > { %4192 = vmatpush3.xpose.msra.mxu0 %v5682_v29  ;;  %v2829_v23 = vand.u32 4294901760, %v2828_v9  ;;  %v2645_v9 = vld [vmem:[%s6301_s10 + $0x18] sm:$0xff] }
 0x5ff   : > { %4193 = vmatprep.subr.mxu0 %v6337_v18  ;;  %6443 = vst [vmem:[#allocation42_spill] sm:$0xff] %v5742_v20  ;;  %v6332_v13 = vand.u32 4294901760, %v5742_v20 }
 0x600   : > { %2388 = vbcast.lane.b32.xlu1 %v5537_v53, 288  ;;  %4227 = vmatpush3.xpose.msra.mxu1 %v2822_v30  ;;  %v2835_v30 = vsub.f32 %v5725_v61, %v6321_v5  ;;  %v5753_v5 = vand.u32 4294901760, %v2645_v9 }
 0x601   : > { %2476 = vbcast.lane.b32.xlu0 %v5544_v50, 264  ;;  %4228 = vmatprep.subr.mxu1 %v6337_v18  ;;  %v2842_v61 = vsub.f32 %v5742_v20, %v6332_v13 }
 0x602   : > { %4194 = vmatpush3.xpose.msra.mxu0 %v5699_v0  ;;  %6444 = vst [vmem:[#allocation43_spill] sm:$0xff] %v5753_v5 }
 0x603   : > { %4195 = vmatprep.subr.mxu0 %v6337_v18 }
 0x604   : > { %2392 = vbcast.lane.b32.xlu1 %v5537_v53, 296  ;;  %4229 = vmatpush3.xpose.msra.mxu1 %v2829_v23  ;;  %v2836_v23 = vand.u32 4294901760, %v2835_v30  ;;  %v2644_v30 = vld [vmem:[%s6301_s10 + $0x10] sm:$0xff] }
 0x605   : > { %2480 = vbcast.lane.b32.xlu0 %v5544_v50, 272  ;;  %4230 = vmatprep.subr.mxu1 %v6337_v18 }
 0x606   : > { %4196 = vmatpush3.xpose.msra.mxu0 %v5716_v14  ;;  %v5763_v14 = vsub.f32 %v2645_v9, %v5753_v5 }
 0x607   : > { %4197 = vmatprep.subr.mxu0 %v6337_v18 }
 0x608   : > { %2396 = vbcast.lane.b32.xlu1 %v5537_v53, 304  ;;  %4231 = vmatpush3.xpose.msra.mxu1 %v2836_v23  ;;  %6445 = vst [vmem:[#allocation44_spill] sm:$0xff] %v5763_v14  ;;  %v2843_v23 = vand.u32 4294901760, %v2842_v61  ;;  %v6347_v29 = vand.u32 4294901760, %v5763_v14 }
 0x609   : > { %2484 = vbcast.lane.b32.xlu0 %v5544_v50, 280  ;;  %4232 = vmatprep.subr.mxu1 %v6337_v18 }
 0x60a   : > { %4198 = vmatpush3.xpose.msra.mxu0 %v5733_v49  ;;  %v2849_v61 = vsub.f32 %v5763_v14, %v6347_v29 }
 0x60b   : > { %4199 = vmatprep.subr.mxu0 %v6337_v18  ;;  %v2643_v18 = vld [vmem:[%s6301_s10 + $0x8] sm:$0xff] }
 0x60c   : > { %2400 = vbcast.lane.b32.xlu1 %v5537_v53, 312  ;;  %4233 = vmatpush3.xpose.msra.mxu1 %v2843_v23  ;;  %v2850_v7 = vand.u32 4294901760, %v2849_v61  ;;  %v2642_v61 = vld [vmem:[%s6301_s10] sm:$0xff] }
 0x60d   : > { %2488 = vbcast.lane.b32.xlu0 %v5544_v50, 288  ;;  %4234 = vmatprep.subr.mxu1 %v6448_v39  ;;  %v5810_v60 = vand.u32 4294901760, %v2642_v61 }
 0x60e   : > { %4200 = vmatpush3.xpose.msra.mxu0 %v5753_v5 }
 0x60f   : > { %4201 = vmatprep.subr.mxu0 %v6448_v39  ;;  %6451 = vst [vmem:[#allocation49_spill] sm:$0xff] %v5810_v60 }
 0x610   : > { %2404 = vbcast.lane.b32.xlu1 %v5537_v53, 320  ;;  %4235 = vmatpush3.xpose.msra.mxu1 %v2850_v7 }
 0x611   : > { %2492 = vbcast.lane.b32.xlu0 %v5544_v50, 296  ;;  %4236 = vmatprep.subr.mxu1 %v6448_v39 }
 0x614   : > { %2408 = vbcast.lane.b32.xlu1 %v5537_v53, 328 }
 0x615   : > { %2496 = vbcast.lane.b32.xlu0 %v5544_v50, 304 }
 0x618   : > { %2412 = vbcast.lane.b32.xlu1 %v5537_v53, 336 }
 0x619   : > { %2500 = vbcast.lane.b32.xlu0 %v5544_v50, 312 }
 0x61c   : > { %2416 = vbcast.lane.b32.xlu1 %v5537_v53, 344 }
 0x61d   : > { %2504 = vbcast.lane.b32.xlu0 %v5544_v50, 320 }
 0x620   : > { %2420 = vbcast.lane.b32.xlu1 %v5537_v53, 352 }
 0x621   : > { %2508 = vbcast.lane.b32.xlu0 %v5544_v50, 328 }
 0x624   : > { %2424 = vbcast.lane.b32.xlu1 %v5537_v53, 360 }
 0x625   : > { %2512 = vbcast.lane.b32.xlu0 %v5544_v50, 336 }
 0x628   : > { %2428 = vbcast.lane.b32.xlu1 %v5537_v53, 368 }
 0x629   : > { %2516 = vbcast.lane.b32.xlu0 %v5544_v50, 344 }
 0x62c   : > { %2432 = vbcast.lane.b32.xlu1 %v5537_v53, 376  ;;  %v5749_v53 = vpop.xlane.xlu0 %2063 }
 0x62d   : > { %2520 = vbcast.lane.b32.xlu0 %v5544_v50, 352 }
 0x630   : > { %v2067_v21 = vpop.xlane.xlu1 %2066  ;;  %2532 = vbcast.lane.b32.xlu1 %v5544_v50, 376 }
 0x631   : > { %v5756_v12 = vmul.f32 0.015625, %v2067_v21  ;;  %2524 = vbcast.lane.b32.xlu0 %v5544_v50, 360  ;;  %v5770_v21 = vand.u32 4294901760, %v2644_v30 }
 0x633   : > { %6446 = vst [vmem:[#allocation45_spill] sm:$0xff] %v5770_v21  ;;  %v2223_v9 = vmul.f32 %v5756_v12, %v5756_v12  ;;  %v5780_v31 = vsub.f32 %v2644_v30, %v5770_v21  ;;  %v5793_v30 = vand.u32 4294901760, %v2643_v18  ;;  %4202 = vmatpush3.xpose.msra.mxu0 %v5770_v21 }
 0x634   : > { %v2163_v0 = vpop.xlane.xlu1 %2162  ;;  %v2070_v46 = vpop.xlane.xlu0 %2069  ;;  %4203 = vmatprep.subr.mxu0 %v6448_v39 }
 0x635   : > { %v2207_v13 = vmul.f32 0.015625, %v2163_v0  ;;  %v5776_v20 = vmul.f32 0.015625, %v2070_v46  ;;  %2528 = vbcast.lane.b32.xlu0 %v5544_v50, 368  ;;  %6447 = vst [vmem:[#allocation46_spill] sm:$0xff] %v5780_v31  ;;  %v6356_v50 = vand.u32 4294901760, %v5780_v31  ;;  %6449 = vst [vmem:[#allocation47_spill] sm:$0xff] %v5793_v30 }
 0x637   : > { %v2239_v49 = vsub.f32 %v2207_v13, %v2223_v9  ;;  %v2224_v29 = vmul.f32 %v5776_v20, %v5776_v20  ;;  %v2856_v13 = vsub.f32 %v5780_v31, %v6356_v50  ;;  %v5802_v9 = vsub.f32 %v2643_v18, %v5793_v30  ;;  %4204 = vmatpush3.xpose.msra.mxu0 %v5793_v30 }
 0x638   : > { %v2166_v0 = vpop.xlane.xlu1 %2165  ;;  %v5789_v46 = vpop.xlane.xlu0 %2072  ;;  %4205 = vmatprep.subr.mxu0 %v6448_v39  ;;  %v2288_v30 = vsub.f32 %v5354_v11, %v5776_v20 }
 0x639   : > { %v2255_v23 = vmax.f32 %v2239_v49, 0.0  ;;  %v2208_v44 = vmul.f32 0.015625, %v2166_v0  ;;  %6450 = vst [vmem:[#allocation48_spill] sm:$0xff] %v5802_v9  ;;  %v2857_v33 = vand.u32 4294901760, %v2856_v13  ;;  %v6362_v7 = vand.u32 4294901760, %v5802_v9 }
 0x63b   : > { %v2303_v14 = vadd.f32 1e-05, %v2255_v23  ;;  %v2240_v49 = vsub.f32 %v2208_v44, %v2224_v29  ;;  %4237 = vmatpush3.xpose.msra.mxu1 %v2857_v33  ;;  %v2863_v29 = vsub.f32 %v5802_v9, %v6362_v7  ;;  %v5817_v44 = vsub.f32 %v2642_v61, %v5810_v60  ;;  %4206 = vmatpush3.xpose.msra.mxu0 %v5810_v60 }
 0x63c   : > { %v2169_v0 = vpop.xlane.xlu1 %2168  ;;  %v2076_v5 = vpop.xlane.xlu0 %2075  ;;  %4238 = vmatprep.subr.mxu1 %v6448_v39  ;;  %4245 = vmatprep.subr.mxu0 %v6448_v39  ;;  %v2272_v60 = vsub.f32 %v5356_v41, %v5776_v20 }
 0x63d   : > { %4548 = vrsqrt.f32 %v2303_v14  ;;  %v2256_v18 = vmax.f32 %v2240_v49, 0.0  ;;  %6452 = vst [vmem:[#allocation50_spill] sm:$0xff] %v5817_v44  ;;  %v2864_v31 = vand.u32 4294901760, %v2863_v29  ;;  %v6361_v21 = vand.u32 4294901760, %v5817_v44 }
 0x63e   : > { %v5866_v62 = vmul.f32 0.015625, %v2076_v5 }
 0x63f   : > { %v2304_v23 = vadd.f32 1e-05, %v2256_v18  ;;  %4239 = vmatpush3.xpose.msra.mxu1 %v2864_v31  ;;  %v2870_v14 = vsub.f32 %v5817_v44, %v6361_v21 }
 0x640   : > { %v2172_v13 = vpop.xlane.xlu1 %2171  ;;  %v2079_v50 = vpop.xlane.xlu0 %2078  ;;  %4240 = vmatprep.subr.mxu1 %v6448_v39  ;;  %v2226_v51 = vmul.f32 %v5866_v62, %v5866_v62 }
 0x641   : > { %4550 = vrsqrt.f32 %v2304_v23  ;;  %v2871_v49 = vand.u32 4294901760, %v2870_v14  ;;  %v2271_v23 = vsub.f32 %v5343_v1, %v5756_v12  ;;  %v2287_v14 = vsub.f32 %v5341_v58, %v5756_v12 }
 0x642   : > { %v2210_v8 = vmul.f32 0.015625, %v2172_v13 }
 0x643   : > { %4241 = vmatpush3.xpose.msra.mxu1 %v2871_v49 }
 0x644   : > { %v2175_v33 = vpop.xlane.xlu1 %2174  ;;  %v2082_v61 = vpop.xlane.xlu0 %2081  ;;  %4280 = vmatprep.subr.mxu1 %v6448_v39 }
 0x645   : > { %v2211_v13 = vmul.f32 0.015625, %v2175_v33 }
 0x648   : > { %v2178_v31 = vpop.xlane.xlu1 %2177  ;;  %v2085_v18 = vpop.xlane.xlu0 %2084 }
 0x649   : > { %v5884_v35 = vmul.f32 0.015625, %v2085_v18 }
 0x64a   : > { %v4549_v29 = vpop.eup %4548 }
 0x64b   : > { %v5838_v7 = vmul.f32 %v4549_v29, %v2271_v23  ;;  %v5840_v44 = vmul.f32 %v4549_v29, %v2287_v14  ;;  %v2110_v29 = vmul.f32 0.015625, %v5749_v53  ;;  %v5856_v23 = vmul.f32 0.015625, %v5789_v46 }
 0x64c   : > { %v2181_v21 = vpop.xlane.xlu1 %2180  ;;  %v2088_v49 = vpop.xlane.xlu0 %2087  ;;  %v2209_v14 = vmul.f32 0.015625, %v2169_v0  ;;  %v2229_v33 = vmul.f32 %v5884_v35, %v5884_v35 }
 0x64d   : > { %v2225_v11 = vmul.f32 %v5856_v23, %v5856_v23  ;;  %v2270_v6 = vsub.f32 %v5334_v43, %v2110_v29  ;;  %v5897_v16 = vmul.f32 0.015625, %v2088_v49  ;;  %v2274_v49 = vsub.f32 %v5382_v4, %v5866_v62 }
 0x64e   : > { %v4551_v9 = vpop.eup %4550 }
 0x64f   : > { %v5846_v47 = vmul.f32 %v4551_v9, %v2272_v60  ;;  %v5848_v1 = vmul.f32 %v4551_v9, %v2288_v30  ;;  %v2222_v60 = vmul.f32 %v2110_v29, %v2110_v29  ;;  %v2241_v30 = vsub.f32 %v2209_v14, %v2225_v11 }
 0x650   : > { %v2184_v32 = vpop.xlane.xlu1 %2183  ;;  %v2091_v52 = vpop.xlane.xlu0 %2090  ;;  %v2242_v14 = vsub.f32 %v2210_v8, %v2226_v51  ;;  %v5874_v11 = vmul.f32 0.015625, %v2079_v50  ;;  %v2230_v43 = vmul.f32 %v5897_v16, %v5897_v16 }
 0x651   : > { %v2257_v46 = vmax.f32 %v2241_v30, 0.0  ;;  %v2212_v30 = vmul.f32 0.015625, %v2178_v31  ;;  %v5902_v26 = vmul.f32 0.015625, %v2091_v52 }
 0x654   : > { %v5850_v58 = vpop.xlane.xlu1 %2186  ;;  %v5852_v12 = vpop.xlane.xlu0 %2093 }
 0x655   : > { %v5921_v4 = vmul.f32 0.015625, %v5852_v12 }
 0x658   : > { %v5858_v41 = vpop.xlane.xlu1 %2189  ;;  %v2160_v25 = vpop.xlane.xlu0 %2159 }
 0x659   : > { %v2206_v20 = vmul.f32 0.015625, %v2160_v25  ;;  %v2305_v25 = vadd.f32 1e-05, %v2257_v46  ;;  %v2213_v46 = vmul.f32 0.015625, %v2181_v21  ;;  %v2216_v12 = vmul.f32 0.015625, %v5858_v41 }
 0x65b   : > { %v2238_v9 = vsub.f32 %v2206_v20, %v2222_v60  ;;  %v5876_v60 = vmul.f32 0.015625, %v2082_v61  ;;  %v2245_v18 = vsub.f32 %v2213_v46, %v2229_v33  ;;  %v2273_v46 = vsub.f32 %v5369_v27, %v5856_v23 }
 0x65c   : > { %v5862_v10 = vpop.xlane.xlu1 %2192  ;;  %v5864_v17 = vpop.xlane.xlu0 %2096 }
 0x65d   : > { %v2254_v53 = vmax.f32 %v2238_v9, 0.0  ;;  %v2258_v9 = vmax.f32 %v2242_v14, 0.0  ;;  %v2228_v51 = vmul.f32 %v5876_v60, %v5876_v60 }
 0x65f   : > { %v2302_v0 = vadd.f32 1e-05, %v2254_v53  ;;  %v2227_v53 = vmul.f32 %v5874_v11, %v5874_v11  ;;  %v2306_v36 = vadd.f32 1e-05, %v2258_v9 }
 0x660   : > { %v5868_v39 = vpop.xlane.xlu1 %2195  ;;  %v5870_v55 = vpop.xlane.xlu0 %2099 }
 0x661   : > { %4552 = vrsqrt.f32 %v2302_v0  ;;  %v2243_v61 = vsub.f32 %v2211_v13, %v2227_v53  ;;  %v2244_v0 = vsub.f32 %v2212_v30, %v2228_v51  ;;  %v2286_v13 = vsub.f32 %v5332_v59, %v2110_v29 }
 0x662   : > { %4554 = vrsqrt.f32 %v2305_v25  ;;  %v2261_v53 = vmax.f32 %v2245_v18, 0.0  ;;  %v2214_v51 = vmul.f32 0.015625, %v2184_v32  ;;  %v2289_v59 = vsub.f32 %v5367_v45, %v5856_v23 }
 0x663   : > { %v2259_v14 = vmax.f32 %v2243_v61, 0.0  ;;  %v2260_v34 = vmax.f32 %v2244_v0, 0.0  ;;  %4556 = vrsqrt.f32 %v2306_v36  ;;  %v2231_v0 = vmul.f32 %v5902_v26, %v5902_v26 }
 0x664   : > { %v5878_v5 = vpop.xlane.xlu1 %2198  ;;  %v5880_v20 = vpop.xlane.xlu0 %2102  ;;  %v2309_v52 = vadd.f32 1e-05, %v2261_v53  ;;  %v2246_v27 = vsub.f32 %v2214_v51, %v2230_v43  ;;  %v5918_v45 = vmul.f32 0.015625, %v5864_v17  ;;  %v5926_v17 = vmul.f32 0.015625, %v5870_v55 }
 0x665   : > { %v2307_v9 = vadd.f32 1e-05, %v2259_v14  ;;  %v2308_v28 = vadd.f32 1e-05, %v2260_v34  ;;  %v2215_v34 = vmul.f32 0.015625, %v5850_v58  ;;  %v2217_v53 = vmul.f32 0.015625, %v5862_v10 }
 0x666   : > { %6453 = vst [vmem:[#allocation51_spill] sm:$0xff] %v5918_v45  ;;  %6454 = vst [vmem:[#allocation52_spill] sm:$0xff] %v5926_v17  ;;  %v2218_v10 = vmul.f32 0.015625, %v5868_v39 }
 0x667   : > { %4558 = vrsqrt.f32 %v2307_v9  ;;  %v2247_v33 = vsub.f32 %v2215_v34, %v2231_v0  ;;  %v2262_v9 = vmax.f32 %v2246_v27, 0.0 }
 0x668   : > { %v5888_v8 = vpop.xlane.xlu1 %2201  ;;  %v5890_v50 = vpop.xlane.xlu0 %2105  ;;  %4560 = vrsqrt.f32 %v2308_v28 }
 0x669   : > { %4562 = vrsqrt.f32 %v2309_v52  ;;  %v2234_v52 = vmul.f32 %v5926_v17, %v5926_v17  ;;  %v5942_v17 = vmul.f32 0.015625, %v5880_v20  ;;  %v2219_v20 = vmul.f32 0.015625, %v5878_v5 }
 0x66c   : > { %v2373_v31 = vpop.permute.xlu1 %2372  ;;  %v5894_v25 = vpop.xlane.xlu0 %2108 }
 0x66e   : > { %v4553_v40 = vpop.eup %4552 }
 0x66f   : > { %v2334_v24 = vmul.f32 %v4553_v40, %v2270_v6  ;;  %v2350_v61 = vmul.f32 %v4553_v40, %v2286_v13  ;;  %v4555_v36 = vpop.eup %4554  ;;  %v2290_v6 = vsub.f32 %v5380_v22, %v5866_v62 }
 0x670   : > { %v2381_v21 = vpop.permute.xlu1 %2380  ;;  %v5900_v30 = vpop.xlane.xlu0 %2204  ;;  %v2337_v58 = vmul.f32 %v4555_v36, %v2273_v46  ;;  %v2353_v28 = vmul.f32 %v4555_v36, %v2289_v59  ;;  %v2263_v59 = vmax.f32 %v2247_v33, 0.0 }
 0x671   : > { %v2434_v29 = vmul.f32 %v2373_v31, %v2334_v24  ;;  %v2450_v23 = vmul.f32 %v2373_v31, %v2350_v61  ;;  %v2436_v61 = vmul.f32 %v2381_v21, %v5846_v47  ;;  %v4557_v36 = vpop.eup %4556  ;;  %v2452_v55 = vmul.f32 %v2381_v21, %v5848_v1 }
 0x672   : > { %v2338_v33 = vmul.f32 %v4557_v36, %v2274_v49  ;;  %v2311_v1 = vadd.f32 1e-05, %v2263_v59 }
 0x674   : > { %v2473_v32 = vpop.permute.xlu1 %2472  ;;  %v2377_v40 = vpop.permute.xlu0 %2376 }
 0x675   : > { %v2534_v22 = vadd.f32 %v2473_v32, %v2434_v29  ;;  %v2435_v62 = vmul.f32 %v2377_v40, %v5838_v7  ;;  %v2550_v14 = vadd.f32 %v2473_v32, %v2450_v23  ;;  %v2451_v18 = vmul.f32 %v2377_v40, %v5840_v44 }
 0x676   : > { %v2233_v7 = vmul.f32 %v5918_v45, %v5918_v45  ;;  %v2232_v44 = vmul.f32 %v5921_v4, %v5921_v4  ;;  %v2250_v45 = vsub.f32 %v2218_v10, %v2234_v52 }
 0x677   : > { %v2566_v46 = vmax.f32 %v2534_v22, 0.0  ;;  %v2582_v34 = vmax.f32 %v2550_v14, 0.0  ;;  %v2354_v14 = vmul.f32 %v4557_v36, %v2290_v6  ;;  %v5949_v6 = vmul.f32 0.015625, %v5890_v50 }
 0x678   : > { %v2385_v24 = vpop.permute.xlu1 %2384  ;;  %v2477_v13 = vpop.permute.xlu0 %2476  ;;  %v2248_v0 = vsub.f32 %v2216_v12, %v2232_v44  ;;  %v2249_v23 = vsub.f32 %v2217_v53, %v2233_v7 }
 0x679   : > { %v2535_v31 = vadd.f32 %v2477_v13, %v2435_v62  ;;  %v2551_v51 = vadd.f32 %v2477_v13, %v2451_v18  ;;  %v2310_v62 = vadd.f32 1e-05, %v2262_v9  ;;  %v2437_v18 = vmul.f32 %v2385_v24, %v2337_v58  ;;  %v5944_v53 = vpop.eup %4558 }
 0x67a   : > { %v2453_v21 = vmul.f32 %v2385_v24, %v2353_v28  ;;  %v2264_v7 = vmax.f32 %v2248_v0, 0.0  ;;  %v2265_v9 = vmax.f32 %v2249_v23, 0.0  ;;  %v5946_v44 = vpop.eup %4560  ;;  %v2220_v0 = vmul.f32 0.015625, %v5888_v8 }
 0x67b   : > { %v2567_v43 = vmax.f32 %v2535_v31, 0.0  ;;  %v2583_v32 = vmax.f32 %v2551_v51, 0.0  ;;  %4564 = vrsqrt.f32 %v2310_v62  ;;  %v4563_v10 = vpop.eup %4562  ;;  %v2236_v5 = vmul.f32 %v5949_v6, %v5949_v6 }
 0x67c   : > { %v2389_v41 = vpop.permute.xlu1 %2388  ;;  %v2481_v40 = vpop.permute.xlu0 %2480  ;;  %4566 = vrsqrt.f32 %v2311_v1  ;;  %v2312_v52 = vadd.f32 1e-05, %v2264_v7  ;;  %v2313_v50 = vadd.f32 1e-05, %v2265_v9  ;;  %v2292_v7 = vsub.f32 %v5406_v37, %v5876_v60 }
 0x67d   : > { %v2598_v27 = vadd.f32 %v2567_v43, %v2566_v46  ;;  %v2536_v29 = vadd.f32 %v2481_v40, %v2436_v61  ;;  %v2619_v47 = vadd.f32 %v2583_v32, %v2582_v34  ;;  %v2552_v22 = vadd.f32 %v2481_v40, %v2452_v55 }
 0x67e   : > { %v2438_v24 = vmul.f32 %v2389_v41, %v2338_v33  ;;  %v2454_v46 = vmul.f32 %v2389_v41, %v2354_v14  ;;  %v2266_v55 = vmax.f32 %v2250_v45, 0.0  ;;  %v2235_v34 = vmul.f32 %v5942_v17, %v5942_v17 }
 0x67f   : > { %v2568_v13 = vmax.f32 %v2536_v29, 0.0  ;;  %v2584_v31 = vmax.f32 %v2552_v22, 0.0  ;;  %v5960_v41 = vmul.f32 0.015625, %v5894_v25  ;;  %v2221_v33 = vmul.f32 0.015625, %v5900_v30 }
 0x680   : > { %v5939_v51 = vpop.permute.xlu1 %2392  ;;  %v2485_v39 = vpop.permute.xlu0 %2484  ;;  %v2314_v62 = vadd.f32 1e-05, %v2266_v55  ;;  %4568 = vrsqrt.f32 %v2312_v52  ;;  %v2252_v1 = vsub.f32 %v2220_v0, %v2236_v5  ;;  %v2275_v30 = vsub.f32 %v5395_v48, %v5874_v11  ;;  %v6459_v55 = vld [vmem:[#allocation12_spill] sm:$0xff] }
 0x681   : > { %v2599_v61 = vadd.f32 %v2598_v27, %v2568_v13  ;;  %v2537_v12 = vadd.f32 %v2485_v39, %v2437_v18  ;;  %v2620_v58 = vadd.f32 %v2619_v47, %v2584_v31  ;;  %v2553_v49 = vadd.f32 %v2485_v39, %v2453_v21 }
 0x682   : > { %v2251_v18 = vsub.f32 %v2219_v20, %v2235_v34  ;;  %4570 = vrsqrt.f32 %v2313_v50  ;;  %v2237_v25 = vmul.f32 %v5960_v41, %v5960_v41  ;;  %v2277_v9 = vsub.f32 %v5421_v19, %v5884_v35  ;;  %v6456_v20 = vld [vmem:[#allocation10_spill] sm:$0xff]  ;;  %v6462_v50 = vld [vmem:[#allocation13_spill] sm:$0xff] }
 0x683   : > { %v2569_v28 = vmax.f32 %v2537_v12, 0.0  ;;  %v2585_v43 = vmax.f32 %v2553_v49, 0.0  ;;  %4572 = vrsqrt.f32 %v2314_v62  ;;  %v2276_v12 = vsub.f32 %v5408_v2, %v5876_v60  ;;  %v6463_v62 = vld [vmem:[#allocation16_spill] sm:$0xff] }
 0x684   : > { %v5952_v36 = vpop.permute.xlu1 %2396  ;;  %v2489_v59 = vpop.permute.xlu0 %2488  ;;  %v2267_v31 = vmax.f32 %v2251_v18, 0.0  ;;  %v2253_v39 = vsub.f32 %v2221_v33, %v2237_v25  ;;  %v2278_v49 = vsub.f32 %v5434_v15, %v5897_v16  ;;  %v2279_v2 = vsub.f32 %v5447_v56, %v5902_v26  ;;  %v6464_v33 = vld [vmem:[#allocation15_spill] sm:$0xff] }
 0x685   : > { %v2600_v32 = vadd.f32 %v2599_v61, %v2569_v28  ;;  %v2538_v40 = vadd.f32 %v2489_v59, %v2438_v24  ;;  %v2621_v27 = vadd.f32 %v2620_v58, %v2585_v43  ;;  %v2554_v29 = vadd.f32 %v2489_v59, %v2454_v46  ;;  %v6458_v59 = vld [vmem:[#allocation52_spill] sm:$0xff] }
 0x686   : > { %v2291_v61 = vsub.f32 %v5393_v38, %v5874_v11  ;;  %v2293_v58 = vsub.f32 %v5419_v42, %v5884_v35  ;;  %v2268_v24 = vmax.f32 %v2252_v1, 0.0  ;;  %v2294_v38 = vsub.f32 %v5432_v57, %v5897_v16  ;;  %v6455_v16 = vld [vmem:[#allocation51_spill] sm:$0xff] }
 0x687   : > { %v2570_v23 = vmax.f32 %v2538_v40, 0.0  ;;  %v2586_v45 = vmax.f32 %v2554_v29, 0.0  ;;  %v2295_v37 = vsub.f32 %v5445_v54, %v5902_v26  ;;  %v2280_v19 = vsub.f32 %v5460_v63, %v5921_v4  ;;  %v6457_v26 = vld [vmem:[#allocation9_spill] sm:$0xff]  ;;  %v6461_v40 = vld [vmem:[#allocation14_spill] sm:$0xff] }
 0x688   : > { %v5962_v47 = vpop.permute.xlu1 %2400  ;;  %v5964_v22 = vpop.permute.xlu0 %2492  ;;  %v2296_v15 = vsub.f32 %v5458_v3, %v5921_v4  ;;  %v2315_v60 = vadd.f32 1e-05, %v2267_v31  ;;  %v2269_v28 = vmax.f32 %v2253_v39, 0.0  ;;  %v2339_v57 = vmul.f32 %v5944_v53, %v2275_v30  ;;  %v6460_v3 = vld [vmem:[#allocation11_spill] sm:$0xff] }
 0x689   : > { %v5967_v13 = vadd.f32 %v2600_v32, %v2570_v23  ;;  %v5969_v8 = vadd.f32 %v2621_v27, %v2586_v45  ;;  %v4565_v48 = vpop.eup %4564  ;;  %v2281_v56 = vsub.f32 %v6456_v20, %v6455_v16  ;;  %v2355_v46 = vmul.f32 %v5944_v53, %v2291_v61 }
 0x68a   : > { %v4567_v35 = vpop.eup %4566  ;;  %v2340_v54 = vmul.f32 %v5946_v44, %v2276_v12  ;;  %v2356_v63 = vmul.f32 %v5946_v44, %v2292_v7  ;;  %v2297_v43 = vsub.f32 %v6457_v26, %v6455_v16  ;;  %v2282_v34 = vsub.f32 %v6459_v55, %v6458_v59  ;;  %v6465_v7 = vld [vmem:[#allocation18_spill] sm:$0xff] }
 0x68b   : > { %v2298_v4 = vsub.f32 %v6460_v3, %v6458_v59  ;;  %v2316_v32 = vadd.f32 1e-05, %v2268_v24  ;;  %v2283_v52 = vsub.f32 %v6461_v40, %v5942_v17  ;;  %v2299_v53 = vsub.f32 %v6462_v50, %v5942_v17 }
 0x68c   : > { %v5973_v21 = vpop.permute.xlu1 %2404  ;;  %v5975_v14 = vpop.permute.xlu0 %2496  ;;  %v2341_v27 = vmul.f32 %v4563_v10, %v2277_v9  ;;  %v2357_v29 = vmul.f32 %v4563_v10, %v2293_v58  ;;  %4574 = vrsqrt.f32 %v2315_v60  ;;  %v2317_v5 = vadd.f32 1e-05, %v2269_v28 }
 0x68d   : > { %v2439_v23 = vmul.f32 %v5939_v51, %v2339_v57  ;;  %v2342_v45 = vmul.f32 %v4565_v48, %v2278_v49  ;;  %v2284_v18 = vsub.f32 %v6463_v62, %v5949_v6  ;;  %v2300_v1 = vsub.f32 %v6464_v33, %v5949_v6  ;;  %v4569_v39 = vpop.eup %4568 }
 0x68e   : > { %v2455_v25 = vmul.f32 %v5939_v51, %v2355_v46  ;;  %v2358_v31 = vmul.f32 %v4565_v48, %v2294_v38  ;;  %4576 = vrsqrt.f32 %v2316_v32  ;;  %v2440_v10 = vmul.f32 %v5952_v36, %v2340_v54  ;;  %v6466_v51 = vld [vmem:[#allocation17_spill] sm:$0xff] }
 0x68f   : > { %v2539_v30 = vadd.f32 %v5964_v22, %v2439_v23  ;;  %v2343_v61 = vmul.f32 %v4567_v35, %v2279_v2  ;;  %v4571_v12 = vpop.eup %4570  ;;  %v2285_v9 = vsub.f32 %v6465_v7, %v5960_v41  ;;  %v2456_v58 = vmul.f32 %v5952_v36, %v2356_v63 }
 0x690   : > { %v5999_v11 = vpop.permute.xlu1 %2408  ;;  %v2501_v42 = vpop.permute.xlu0 %2500  ;;  %v2555_v49 = vadd.f32 %v5964_v22, %v2455_v25  ;;  %v2359_v24 = vmul.f32 %v4567_v35, %v2295_v37  ;;  %v2301_v48 = vsub.f32 %v6466_v51, %v5960_v41  ;;  %4578 = vrsqrt.f32 %v2317_v5 }
 0x691   : > { %v2441_v38 = vmul.f32 %v5962_v47, %v2341_v27  ;;  %v2540_v57 = vadd.f32 %v5975_v14, %v2440_v10  ;;  %v4573_v2 = vpop.eup %4572  ;;  %v2457_v16 = vmul.f32 %v5962_v47, %v2357_v29  ;;  %v2556_v20 = vadd.f32 %v5975_v14, %v2456_v58 }
 0x692   : > { %v2344_v46 = vmul.f32 %v4569_v39, %v2280_v19  ;;  %v2360_v36 = vmul.f32 %v4569_v39, %v2296_v15  ;;  %v2571_v54 = vmax.f32 %v2539_v30, 0.0  ;;  %v2442_v22 = vmul.f32 %v5973_v21, %v2342_v45 }
 0x693   : > { %v2541_v37 = vadd.f32 %v2501_v42, %v2441_v38  ;;  %v2345_v35 = vmul.f32 %v4571_v12, %v2281_v56  ;;  %v2587_v63 = vmax.f32 %v2555_v49, 0.0  ;;  %v2458_v26 = vmul.f32 %v5973_v21, %v2358_v31 }
 0x694   : > { %v2413_v0 = vpop.permute.xlu1 %2412  ;;  %v2505_v44 = vpop.permute.xlu0 %2504  ;;  %v2557_v59 = vadd.f32 %v2501_v42, %v2457_v16  ;;  %v2361_v55 = vmul.f32 %v4571_v12, %v2297_v43  ;;  %v2572_v27 = vmax.f32 %v2540_v57, 0.0  ;;  %v2443_v5 = vmul.f32 %v5999_v11, %v2343_v61 }
 0x695   : > { %v2542_v47 = vadd.f32 %v2505_v44, %v2442_v22  ;;  %v2346_v29 = vmul.f32 %v4573_v2, %v2282_v34  ;;  %v2588_v14 = vmax.f32 %v2556_v20, 0.0  ;;  %v2459_v19 = vmul.f32 %v5999_v11, %v2359_v24 }
 0x696   : > { %v2558_v15 = vadd.f32 %v2505_v44, %v2458_v26  ;;  %v2362_v23 = vmul.f32 %v4573_v2, %v2298_v4  ;;  %v2602_v45 = vadd.f32 %v5967_v13, %v2571_v54  ;;  %v2573_v56 = vmax.f32 %v2541_v37, 0.0 }
 0x697   : > { %v2444_v25 = vmul.f32 %v2413_v0, %v2344_v46  ;;  %v2623_v21 = vadd.f32 %v5969_v8, %v2587_v63  ;;  %v2589_v42 = vmax.f32 %v2557_v59, 0.0  ;;  %v2460_v43 = vmul.f32 %v2413_v0, %v2360_v36 }
 0x698   : > { %v2417_v60 = vpop.permute.xlu1 %2416  ;;  %v2509_v28 = vpop.permute.xlu0 %2508  ;;  %v2603_v61 = vadd.f32 %v2602_v45, %v2572_v27  ;;  %v2574_v12 = vmax.f32 %v2542_v47, 0.0  ;;  %v2590_v44 = vmax.f32 %v2558_v15, 0.0 }
 0x699   : > { %v2543_v39 = vadd.f32 %v2509_v28, %v2443_v5  ;;  %v2559_v31 = vadd.f32 %v2509_v28, %v2459_v19  ;;  %v2445_v34 = vmul.f32 %v2417_v60, %v2345_v35  ;;  %v4575_v49 = vpop.eup %4574  ;;  %v2624_v11 = vadd.f32 %v2623_v21, %v2588_v14 }
 0x69a   : > { %v2461_v4 = vmul.f32 %v2417_v60, %v2361_v55  ;;  %v2604_v13 = vadd.f32 %v2603_v61, %v2573_v56  ;;  %v2347_v37 = vmul.f32 %v4575_v49, %v2283_v52  ;;  %v2363_v59 = vmul.f32 %v4575_v49, %v2299_v53 }
 0x69b   : > { %v2575_v38 = vmax.f32 %v2543_v39, 0.0  ;;  %v4577_v16 = vpop.eup %4576  ;;  %v2625_v8 = vadd.f32 %v2624_v11, %v2589_v42  ;;  %v2591_v20 = vmax.f32 %v2559_v31, 0.0 }
 0x69c   : > { %v2421_v3 = vpop.permute.xlu1 %2420  ;;  %v2513_v32 = vpop.permute.xlu0 %2512  ;;  %v2605_v54 = vadd.f32 %v2604_v13, %v2574_v12  ;;  %v2348_v5 = vmul.f32 %v4577_v16, %v2284_v18  ;;  %v2364_v52 = vmul.f32 %v4577_v16, %v2300_v1 }
 0x69d   : > { %v2544_v58 = vadd.f32 %v2513_v32, %v2444_v25  ;;  %v2560_v24 = vadd.f32 %v2513_v32, %v2460_v43  ;;  %v2446_v57 = vmul.f32 %v2421_v3, %v2346_v29  ;;  %v2462_v0 = vmul.f32 %v2421_v3, %v2362_v23  ;;  %v4579_v60 = vpop.eup %4578 }
 0x69e   : > { %v2626_v63 = vadd.f32 %v2625_v8, %v2590_v44  ;;  %v2606_v32 = vadd.f32 %v2605_v54, %v2575_v38  ;;  %v2349_v50 = vmul.f32 %v4579_v60, %v2285_v9  ;;  %v2365_v62 = vmul.f32 %v4579_v60, %v2301_v48 }
 0x69f   : > { %v2576_v22 = vmax.f32 %v2544_v58, 0.0  ;;  %v2592_v26 = vmax.f32 %v2560_v24, 0.0 }
 0x6a0   : > { %v2425_v10 = vpop.permute.xlu1 %2424  ;;  %v2517_v30 = vpop.permute.xlu0 %2516  ;;  %v2627_v47 = vadd.f32 %v2626_v63, %v2591_v20 }
 0x6a1   : > { %v2545_v2 = vadd.f32 %v2517_v30, %v2445_v34  ;;  %v2561_v28 = vadd.f32 %v2517_v30, %v2461_v4  ;;  %v2447_v3 = vmul.f32 %v2425_v10, %v2347_v37  ;;  %v2463_v29 = vmul.f32 %v2425_v10, %v2363_v59 }
 0x6a2   : > { %v2607_v15 = vadd.f32 %v2606_v32, %v2576_v22  ;;  %v2628_v23 = vadd.f32 %v2627_v47, %v2592_v26  ;;  %v6467_v26 = vld [vmem:[#allocation19_spill] sm:$0xff]  ;;  %v6468_v59 = vmov 0.0  }
 0x6a3   : > { %v2577_v27 = vmax.f32 %v2545_v2, 0.0  ;;  %v2593_v40 = vmax.f32 %v2561_v28, 0.0  ;;  %v6471_v47 = vld [vmem:[#allocation23_spill] sm:$0xff] }
 0x6a4   : > { %v2429_v46 = vpop.permute.xlu1 %2428  ;;  %v2521_v36 = vpop.permute.xlu0 %2520 }
 0x6a5   : > { %v2546_v35 = vadd.f32 %v2521_v36, %v2446_v57  ;;  %v2562_v55 = vadd.f32 %v2521_v36, %v2462_v0  ;;  %v2608_v56 = vadd.f32 %v2607_v15, %v2577_v27  ;;  %v2448_v25 = vmul.f32 %v2429_v46, %v2348_v5  ;;  %v6470_v5 = vld [vmem:[#allocation20_spill] sm:$0xff]  ;;  %v6477_v15 = vld [vmem:[#allocation29_spill] sm:$0xff] }
 0x6a6   : > { %v2629_v1 = vadd.f32 %v2628_v23, %v2593_v40  ;;  %v2464_v39 = vmul.f32 %v2429_v46, %v2364_v52  ;;  %v6473_v40 = vld [vmem:[#allocation25_spill] sm:$0xff]  ;;  %v6474_v52 = vld [vmem:[#allocation24_spill] sm:$0xff] }
 0x6a7   : > { %v2578_v17 = vmax.f32 %v2546_v35, 0.0  ;;  %v2594_v45 = vmax.f32 %v2562_v55, 0.0  ;;  %v6481_v23 = vld [vmem:[#allocation33_spill] sm:$0xff] }
 0x6a8   : > { %v2433_v14 = vpop.permute.xlu1 %2432  ;;  %v2525_v19 = vpop.permute.xlu0 %2524 }
 0x6a9   : > { %v2547_v53 = vadd.f32 %v2525_v19, %v2447_v3  ;;  %v2563_v18 = vadd.f32 %v2525_v19, %v2463_v29  ;;  %v2449_v6 = vmul.f32 %v2433_v14, %v2349_v50  ;;  %v2465_v21 = vmul.f32 %v2433_v14, %v2365_v62  ;;  %v6469_v3 = vld [vmem:[#allocation21_spill] sm:$0xff]  ;;  %v6472_v29 = vld [vmem:[#allocation22_spill] sm:$0xff]  ;;  %v6475_v14 = vld [vmem:[#allocation27_spill] sm:$0xff] }
 0x6aa   : > { %v2609_v7 = vadd.f32 %v2608_v56, %v2578_v17  ;;  %v2630_v30 = vadd.f32 %v2629_v1, %v2594_v45  ;;  %v6476_v19 = vld [vmem:[#allocation26_spill] sm:$0xff]  ;;  %v6478_v17 = vld [vmem:[#allocation28_spill] sm:$0xff]  ;;  %v6479_v50 = vld [vmem:[#allocation31_spill] sm:$0xff] }
 0x6ab   : > { %v2579_v33 = vmax.f32 %v2547_v53, 0.0  ;;  %v2595_v42 = vmax.f32 %v2563_v18, 0.0  ;;  %v6480_v53 = vld [vmem:[#allocation30_spill] sm:$0xff]  ;;  %v6482_v45 = vld [vmem:[#allocation32_spill] sm:$0xff]  ;;  %v6483_v62 = vld [vmem:[#allocation35_spill] sm:$0xff] }
 0x6ac   : > { %v2533_v43 = vpop.permute.xlu1 %2532  ;;  %v2529_v31 = vpop.permute.xlu0 %2528  ;;  %v6484_v18 = vld [vmem:[#allocation34_spill] sm:$0xff]  ;;  %v6485_v56 = vld [vmem:[#allocation37_spill] sm:$0xff] }
 0x6ad   : > { %v2549_v9 = vadd.f32 %v2533_v43, %v2449_v6  ;;  %v2548_v10 = vadd.f32 %v2529_v31, %v2448_v25  ;;  %v2565_v61 = vadd.f32 %v2533_v43, %v2465_v21  ;;  %v2564_v12 = vadd.f32 %v2529_v31, %v2464_v39  ;;  %v6486_v25 = vld [vmem:[#allocation36_spill] sm:$0xff]  ;;  %v6487_v6 = vld [vmem:[#allocation39_spill] sm:$0xff]  ;;  %v6489_v1 = vld [vmem:[#allocation41_spill] sm:$0xff] }
 0x6ae   : > { %v2610_v34 = vadd.f32 %v2609_v7, %v2579_v33  ;;  %v2631_v51 = vadd.f32 %v2630_v30, %v2595_v42  ;;  %v6488_v33 = vld [vmem:[#allocation38_spill] sm:$0xff]  ;;  %v6490_v39 = vld [vmem:[#allocation40_spill] sm:$0xff]  ;;  %v6491_v21 = vld [vmem:[#allocation43_spill] sm:$0xff] }
 0x6af   : > { %v2580_v41 = vmax.f32 %v2548_v10, 0.0  ;;  %v2596_v48 = vmax.f32 %v2564_v12, 0.0  ;;  %v2581_v58 = vmax.f32 %v2549_v9, 0.0  ;;  %v2597_v11 = vmax.f32 %v2565_v61, 0.0  ;;  %v6492_v42 = vld [vmem:[#allocation42_spill] sm:$0xff]  ;;  %v6493_v43 = vld [vmem:[#allocation45_spill] sm:$0xff] }
 0x6b0   : > { %v6494_v31 = vld [vmem:[#allocation44_spill] sm:$0xff]  ;;  %v6495_v7 = vld [vmem:[#allocation47_spill] sm:$0xff]  ;;  %v6496_v9 = vld [vmem:[#allocation46_spill] sm:$0xff]  ;;  %v6500_v12 = vand.u32 4294901760, %v6470_v5 }
 0x6b1   : > { %v2611_v49 = vadd.f32 %v2610_v34, %v2580_v41  ;;  %v2632_v44 = vadd.f32 %v2631_v51, %v2596_v48  ;;  %v6497_v10 = vld [vmem:[#allocation49_spill] sm:$0xff]  ;;  %v6498_v30 = vld [vmem:[#allocation48_spill] sm:$0xff]  ;;  %v6499_v61 = vld [vmem:[#allocation50_spill] sm:$0xff]  ;;  %v6501_v34 = vand.u32 4294901760, %v6472_v29  ;;  %v6502_v41 = vand.u32 4294901760, %v6474_v52 }
 0x6b2   : > { %v6503_v51 = vand.u32 4294901760, %v6476_v19  ;;  %v6504_v48 = vand.u32 4294901760, %v6478_v17 }
 0x6b3   : > { %v2612_v4 = vadd.f32 %v2611_v49, %v2581_v58  ;;  %v2633_v24 = vadd.f32 %v2632_v44, %v2597_v11  ;;  %v6505_v58 = vand.u32 4294901760, %v6480_v53  ;;  %v6506_v49 = vand.u32 4294901760, %v6482_v45 }
 0x6b4   : > { %v6507_v11 = vand.u32 4294901760, %v6484_v18  ;;  %v6508_v44 = vand.u32 4294901760, %v6486_v25 }
 0x6b5   : > { %v2613_v13 = vrot.slane %v2612_v4, 4  ;;  %v2634_v38 = vrot.slane %v2633_v24, 4 }
 0x6b7   : > { %v2614_v57 = vadd.f32 %v2613_v13, %v2612_v4  ;;  %v2635_v2 = vadd.f32 %v2634_v38, %v2633_v24  ;;  %v3319_v4 = vld [vmem:[%s6303_s12] sm:$0x3f]  ;;  %v6509_v24 = vand.u32 4294901760, %v6488_v33  ;;  %v6510_v38 = vand.u32 4294901760, %v6490_v39 }
 0x6b8   : > { %v3358_v13 = vand.u32 4294901760, %v3319_v4 }
 0x6b9   : > { %v2615_v16 = vrot.slane %v2614_v57, 2  ;;  %v2636_v8 = vrot.slane %v2635_v2, 2 }
 0x6bb   : > { %v2616_v20 = vadd.f32 %v2615_v16, %v2614_v57  ;;  %v2637_v0 = vadd.f32 %v2636_v8, %v2635_v2  ;;  %v3435_v57 = vsub.f32 %v3319_v4, %v3358_v13  ;;  %v6511_v2 = vand.u32 4294901760, %v6492_v42 }
 0x6bc   : > { %v6512_v8 = vand.u32 4294901760, %v6494_v31 }
 0x6bd   : > { %v2617_v28 = vrot.slane %v2616_v20, 1  ;;  %v2638_v46 = vrot.slane %v2637_v0, 1  ;;  %v3436_v16 = vand.u32 4294901760, %v3435_v57 }
 0x6bf   : > { %v2618_v36 = vadd.f32 %v2617_v28, %v2616_v20  ;;  %v2639_v54 = vadd.f32 %v2638_v46, %v2637_v0  ;;  %v3437_v20 = vsub.f32 %v3435_v57, %v3436_v16  ;;  %v6513_v0 = vand.u32 4294901760, %v6496_v9 }
 0x6c0   : > { %v6514_v46 = vand.u32 4294901760, %v6498_v30 }
 0x6c1   : > { %v2640_v22 = vmul.f32 0.03125, %v2618_v36  ;;  %v2641_v37 = vmul.f32 0.03125, %v2639_v54  ;;  %v3438_v28 = vand.u32 4294901760, %v3437_v20  ;;  %v6515_v36 = vand.u32 4294901760, %v6499_v61 }
 0x6c3   : > { %v2668_v35 = vsel %vm2667_vm4, %v2641_v37, %v2640_v22  ;;  %v3885_v37 = vld [vmem:[%s6302_s11] ss:$0 sm:$0xff] }
 0x6c4   : > { %v6061_v60 = vand.u32 4294901760, %v2668_v35 }
 0x6c6   : > { %4243 = vmatmul.mubr.f32.vlgmr.msra.gmra.mxu1 %v6061_v60  ;;  %v6065_v63 = vsub.f32 %v2668_v35, %v6061_v60 }
 0x6c7   : > { %4281 = vmatpush3.xpose.msra.mxu1 %v6467_v26  ;;  %4312 = vmatprep.mubr.msk.f32.mxu1 %vm4638_vm3, %v6468_v59 }
 0x6c8   : > { %4282 = vmatprep.subr.mxu1 %v6468_v59  ;;  %v6072_v55 = vand.u32 4294901760, %v6065_v63 }
 0x6ca   : > { %v2754_v32 = vsub.f32 %v6065_v63, %v6072_v55 }
 0x6cb   : > { %4283 = vmatpush3.xpose.msra.mxu1 %v6469_v3 }
 0x6cc   : > { %4284 = vmatprep.subr.mxu1 %v6468_v59  ;;  %v6078_v27 = vand.u32 4294901760, %v2754_v32 }
 0x6ce   : > { %4208 = vmatmul.mubr.f32.vlgmr.msra.gmra.mxu0 %v6078_v27 }
 0x6cf   : > { %4246 = vmatpush3.xpose.msra.mxu0 %v6470_v5  ;;  %4285 = vmatpush3.xpose.msra.mxu1 %v6471_v47 }
 0x6d0   : > { %4247 = vmatprep.subr.mxu0 %v6468_v59  ;;  %4286 = vmatprep.subr.mxu1 %v6468_v59 }
 0x6d1   : > { %4277 = vmatprep.mubr.msk.f32.mxu0 %vm4638_vm3, %v6468_v59 }
 0x6d3   : > { %4248 = vmatpush3.xpose.msra.mxu0 %v6472_v29  ;;  %4287 = vmatpush3.xpose.msra.mxu1 %v6473_v40 }
 0x6d4   : > { %4249 = vmatprep.subr.mxu0 %v6468_v59  ;;  %4288 = vmatprep.subr.mxu1 %v6468_v59 }
 0x6d7   : > { %4250 = vmatpush3.xpose.msra.mxu0 %v6474_v52  ;;  %4289 = vmatpush3.xpose.msra.mxu1 %v6475_v14 }
 0x6d8   : > { %4251 = vmatprep.subr.mxu0 %v6468_v59  ;;  %4290 = vmatprep.subr.mxu1 %v6468_v59 }
 0x6db   : > { %4252 = vmatpush3.xpose.msra.mxu0 %v6476_v19  ;;  %4291 = vmatpush3.xpose.msra.mxu1 %v6477_v15 }
 0x6dc   : > { %4253 = vmatprep.subr.mxu0 %v6468_v59  ;;  %4292 = vmatprep.subr.mxu1 %v6468_v59 }
 0x6df   : > { %4254 = vmatpush3.xpose.msra.mxu0 %v6478_v17  ;;  %4293 = vmatpush3.xpose.msra.mxu1 %v6479_v50 }
 0x6e0   : > { %4255 = vmatprep.subr.mxu0 %v6468_v59  ;;  %4294 = vmatprep.subr.mxu1 %v6468_v59 }
 0x6e3   : > { %4256 = vmatpush3.xpose.msra.mxu0 %v6480_v53  ;;  %4295 = vmatpush3.xpose.msra.mxu1 %v6481_v23  ;;  %v3886_v53 = vld [vmem:[%s6304_s13] ss:$0 sm:$0xff] }
 0x6e4   : > { %4257 = vmatprep.subr.mxu0 %v6468_v59  ;;  %4296 = vmatprep.subr.mxu1 %v6468_v59 }
 0x6e7   : > { %4258 = vmatpush3.xpose.msra.mxu0 %v6482_v45  ;;  %4297 = vmatpush3.xpose.msra.mxu1 %v6483_v62 }
 0x6e8   : > { %4259 = vmatprep.subr.mxu0 %v6468_v59  ;;  %4298 = vmatprep.subr.mxu1 %v6468_v59 }
 0x6eb   : > { %4260 = vmatpush3.xpose.msra.mxu0 %v6484_v18  ;;  %4299 = vmatpush3.xpose.msra.mxu1 %v6485_v56 }
 0x6ec   : > { %4261 = vmatprep.subr.mxu0 %v6468_v59  ;;  %4300 = vmatprep.subr.mxu1 %v6468_v59 }
 0x6ef   : > { %4262 = vmatpush3.xpose.msra.mxu0 %v6486_v25  ;;  %4301 = vmatpush3.xpose.msra.mxu1 %v6487_v6 }
 0x6f0   : > { %4263 = vmatprep.subr.mxu0 %v6468_v59  ;;  %4302 = vmatprep.subr.mxu1 %v6468_v59 }
 0x6f3   : > { %4264 = vmatpush3.xpose.msra.mxu0 %v6488_v33  ;;  %4303 = vmatpush3.xpose.msra.mxu1 %v6489_v1 }
 0x6f4   : > { %4265 = vmatprep.subr.mxu0 %v6468_v59  ;;  %4304 = vmatprep.subr.mxu1 %v6468_v59 }
 0x6f7   : > { %4266 = vmatpush3.xpose.msra.mxu0 %v6490_v39  ;;  %4305 = vmatpush3.xpose.msra.mxu1 %v6491_v21 }
 0x6f8   : > { %4267 = vmatprep.subr.mxu0 %v6468_v59  ;;  %4306 = vmatprep.subr.mxu1 %v6468_v59 }
 0x6fb   : > { %4268 = vmatpush3.xpose.msra.mxu0 %v6492_v42  ;;  %4307 = vmatpush3.xpose.msra.mxu1 %v6493_v43 }
 0x6fc   : > { %4269 = vmatprep.subr.mxu0 %v6468_v59  ;;  %4308 = vmatprep.subr.mxu1 %v6468_v59 }
 0x6ff   : > { %4270 = vmatpush3.xpose.msra.mxu0 %v6494_v31  ;;  %4309 = vmatpush3.xpose.msra.mxu1 %v6495_v7 }
 0x700   : > { %4271 = vmatprep.subr.mxu0 %v6468_v59  ;;  %4310 = vmatprep.subr.mxu1 %v6468_v59 }
 0x703   : > { %4272 = vmatpush3.xpose.msra.mxu0 %v6496_v9  ;;  %4311 = vmatpush3.xpose.msra.mxu1 %v6497_v10 }
 0x704   : > { %4273 = vmatprep.subr.mxu0 %v6468_v59  ;;  %4350 = vmatprep.subr.mxu1 %v6468_v59 }
 0x706   : > { %4313 = vmatmul.mubr.f32.vlgmr.msra.gmra.mxu1 %v6072_v55 }
 0x707   : > { %4274 = vmatpush3.xpose.msra.mxu0 %v6498_v30  ;;  %4351 = vmatpush3.xpose.msra.mxu1 %v6467_v26 }
 0x708   : > { %4275 = vmatprep.subr.mxu0 %v6468_v59  ;;  %4352 = vmatprep.subr.mxu1 %v6468_v59 }
 0x709   : > { %4382 = vmatprep.mubr.msk.f32.mxu1 %vm4638_vm3, %v6468_v59 }
 0x70b   : > { %4276 = vmatpush3.xpose.msra.mxu0 %v6499_v61  ;;  %4353 = vmatpush3.xpose.msra.mxu1 %v6469_v3 }
 0x70c   : > { %4315 = vmatprep.subr.mxu0 %v6468_v59  ;;  %4354 = vmatprep.subr.mxu1 %v6468_v59 }
 0x70e   : > { %4278 = vmatmul.mubr.f32.vlgmr.msra.gmra.mxu0 %v6065_v63 }
 0x70f   : > { %4316 = vmatpush3.xpose.msra.mxu0 %v6500_v12  ;;  %4355 = vmatpush3.xpose.msra.mxu1 %v6471_v47 }
 0x710   : > { %4317 = vmatprep.subr.mxu0 %v6468_v59  ;;  %4356 = vmatprep.subr.mxu1 %v6468_v59 }
 0x711   : > { %4347 = vmatprep.mubr.msk.f32.mxu0 %vm4638_vm3, %v6468_v59 }
 0x713   : > { %4318 = vmatpush3.xpose.msra.mxu0 %v6501_v34  ;;  %4357 = vmatpush3.xpose.msra.mxu1 %v6473_v40 }
 0x714   : > { %4319 = vmatprep.subr.mxu0 %v6468_v59  ;;  %4358 = vmatprep.subr.mxu1 %v6468_v59 }
 0x717   : > { %4320 = vmatpush3.xpose.msra.mxu0 %v6502_v41  ;;  %4359 = vmatpush3.xpose.msra.mxu1 %v6475_v14 }
 0x718   : > { %4321 = vmatprep.subr.mxu0 %v6468_v59  ;;  %4360 = vmatprep.subr.mxu1 %v6468_v59 }
 0x71b   : > { %4322 = vmatpush3.xpose.msra.mxu0 %v6503_v51  ;;  %4361 = vmatpush3.xpose.msra.mxu1 %v6477_v15 }
 0x71c   : > { %4323 = vmatprep.subr.mxu0 %v6468_v59  ;;  %4362 = vmatprep.subr.mxu1 %v6468_v59 }
 0x71f   : > { %4324 = vmatpush3.xpose.msra.mxu0 %v6504_v48  ;;  %4363 = vmatpush3.xpose.msra.mxu1 %v6479_v50 }
 0x720   : > { %4325 = vmatprep.subr.mxu0 %v6468_v59  ;;  %4364 = vmatprep.subr.mxu1 %v6468_v59 }
 0x723   : > { %4326 = vmatpush3.xpose.msra.mxu0 %v6505_v58  ;;  %4365 = vmatpush3.xpose.msra.mxu1 %v6481_v23 }
 0x724   : > { %4327 = vmatprep.subr.mxu0 %v6468_v59  ;;  %4366 = vmatprep.subr.mxu1 %v6468_v59 }
 0x727   : > { %4328 = vmatpush3.xpose.msra.mxu0 %v6506_v49  ;;  %4367 = vmatpush3.xpose.msra.mxu1 %v6483_v62 }
 0x728   : > { %4329 = vmatprep.subr.mxu0 %v6468_v59  ;;  %4368 = vmatprep.subr.mxu1 %v6468_v59 }
 0x72b   : > { %4330 = vmatpush3.xpose.msra.mxu0 %v6507_v11  ;;  %4369 = vmatpush3.xpose.msra.mxu1 %v6485_v56 }
 0x72c   : > { %4331 = vmatprep.subr.mxu0 %v6468_v59  ;;  %4370 = vmatprep.subr.mxu1 %v6468_v59 }
 0x72f   : > { %4332 = vmatpush3.xpose.msra.mxu0 %v6508_v44  ;;  %4371 = vmatpush3.xpose.msra.mxu1 %v6487_v6 }
 0x730   : > { %4333 = vmatprep.subr.mxu0 %v6468_v59  ;;  %4372 = vmatprep.subr.mxu1 %v6468_v59 }
 0x733   : > { %4334 = vmatpush3.xpose.msra.mxu0 %v6509_v24  ;;  %4373 = vmatpush3.xpose.msra.mxu1 %v6489_v1 }
 0x734   : > { %4335 = vmatprep.subr.mxu0 %v6468_v59  ;;  %4374 = vmatprep.subr.mxu1 %v6468_v59 }
 0x737   : > { %4336 = vmatpush3.xpose.msra.mxu0 %v6510_v38  ;;  %4375 = vmatpush3.xpose.msra.mxu1 %v6491_v21 }
 0x738   : > { %4337 = vmatprep.subr.mxu0 %v6468_v59  ;;  %4376 = vmatprep.subr.mxu1 %v6468_v59 }
 0x73b   : > { %4338 = vmatpush3.xpose.msra.mxu0 %v6511_v2  ;;  %4377 = vmatpush3.xpose.msra.mxu1 %v6493_v43 }
 0x73c   : > { %4339 = vmatprep.subr.mxu0 %v6468_v59  ;;  %4378 = vmatprep.subr.mxu1 %v6468_v59 }
 0x73f   : > { %4340 = vmatpush3.xpose.msra.mxu0 %v6512_v8  ;;  %4379 = vmatpush3.xpose.msra.mxu1 %v6495_v7 }
 0x740   : > { %4341 = vmatprep.subr.mxu0 %v6468_v59  ;;  %4380 = vmatprep.subr.mxu1 %v6468_v59 }
 0x743   : > { %4342 = vmatpush3.xpose.msra.mxu0 %v6513_v0  ;;  %4381 = vmatpush3.xpose.msra.mxu1 %v6497_v10 }
 0x744   : > { %4343 = vmatprep.subr.mxu0 %v6468_v59  ;;  %4390 = vmatprep.subr.mxu1 %v6468_v59 }
 0x746   : > { %4383 = vmatmul.mubr.f32.vlgmr.msra.gmra.mxu1 %v6061_v60 }
 0x747   : > { %4344 = vmatpush3.xpose.msra.mxu0 %v6514_v46  ;;  %4391 = vmatpush3.xpose.msra.mxu1 %v3438_v28 }
 0x748   : > { %4392 = vmatprep.mubr.msk.f32.mxu1 %vm4638_vm3, %v6468_v59  ;;  %4345 = vmatprep.subr.mxu0 %v6468_v59 }
 0x749   : > { %4400 = vmatprep.subr.mxu1 %v6468_v59 }
 0x74a   : > { %4393 = vmatmul.mubr.f32.vlgmr.msra.gmra.mxu1 %v6061_v60 }
 0x74b   : > { %4346 = vmatpush3.xpose.msra.mxu0 %v6515_v36  ;;  %4401 = vmatpush3.xpose.msra.mxu1 %v3358_v13 }
 0x74c   : > { %4402 = vmatprep.mubr.msk.f32.mxu1 %vm4638_vm3, %v6468_v59  ;;  %4385 = vmatprep.subr.mxu0 %v6468_v59 }
 0x74d   : > { %4410 = vmatprep.subr.mxu1 %v6468_v59 }
 0x74e   : > { %4348 = vmatmul.mubr.f32.vlgmr.msra.gmra.mxu0 %v6061_v60  ;;  %4403 = vmatmul.mubr.f32.vlgmr.msra.gmra.mxu1 %v6072_v55 }
 0x74f   : > { %4386 = vmatpush3.xpose.msra.mxu0 %v3358_v13  ;;  %4411 = vmatpush3.xpose.msra.mxu1 %v3358_v13 }
 0x750   : > { %4387 = vmatprep.mubr.msk.f32.mxu0 %vm4638_vm3, %v6468_v59  ;;  %4412 = vmatprep.mubr.msk.f32.mxu1 %vm4638_vm3, %v6468_v59 }
 0x751   : > { %4395 = vmatprep.subr.mxu0 %v6468_v59 }
 0x752   : > { %4388 = vmatmul.mubr.f32.vlgmr.msra.gmra.mxu0 %v6078_v27  ;;  %4413 = vmatmul.mubr.f32.vlgmr.msra.gmra.mxu1 %v6061_v60 }
 0x753   : > { %4396 = vmatpush3.xpose.msra.mxu0 %v3435_v57  ;;  %4397 = vmatprep.mubr.msk.f32.mxu0 %vm4638_vm3, %v6468_v59 }
 0x754   : > { %4405 = vmatprep.subr.mxu0 %v6468_v59 }
 0x756   : > { %4398 = vmatmul.mubr.f32.vlgmr.msra.gmra.mxu0 %v6065_v63 }
 0x757   : > { %4406 = vmatpush3.xpose.msra.mxu0 %v3436_v16  ;;  %4407 = vmatprep.mubr.msk.f32.mxu0 %vm4638_vm3, %v6468_v59 }
 0x75a   : > { %4408 = vmatmul.mubr.f32.vlgmr.msra.gmra.mxu0 %v6061_v60 }
 0x786   : > { %v2908_v54 = vpop.f32.mrf.mxu1 }
 0x788   : > { %v4244_v22 = vpop.f32.mrf.mxu1 }
 0x78e   : > { %v2757_v35 = vpop.f32.mrf.mxu0 }
 0x78f   : > { %v2758_v26 = vadd.f32 %v3885_v37, %v2757_v35 }
 0x790   : > { %v4209_v55 = vpop.f32.mrf.mxu0 }
 0x791   : > { %v2909_v32 = vadd.f32 %v2908_v54, %v2758_v26 }
 0x7c6   : > { %v3101_v3 = vpop.f32.mrf.mxu1 }
 0x7c8   : > { %v4314_v27 = vpop.f32.mrf.mxu1 }
 0x7ce   : > { %v3012_v5 = vpop.f32.mrf.mxu0 }
 0x7cf   : > { %v3013_v63 = vadd.f32 %v3012_v5, %v2909_v32 }
 0x7d0   : > { %v4279_v47 = vpop.f32.mrf.mxu0 }
 0x7d1   : > { %v3102_v29 = vadd.f32 %v3101_v3, %v3013_v63 }
 0x806   : > { %v3307_v40 = vpop.f32.mrf.mxu1 }
 0x808   : > { %v4384_v59 = vpop.f32.mrf.mxu1 }
 0x80a   : > { %v3475_v52 = vpop.f32.mrf.mxu1 }
 0x80c   : > { %v4394_v60 = vpop.f32.mrf.mxu1 }
 0x80e   : > { %v3220_v14 = vpop.f32.mrf.mxu0  ;;  %v3623_v19 = vpop.f32.mrf.mxu1 }
 0x80f   : > { %v3221_v15 = vadd.f32 %v3220_v14, %v3102_v29 }
 0x810   : > { %v4349_v17 = vpop.f32.mrf.mxu0  ;;  %v4404_v50 = vpop.f32.mrf.mxu1 }
 0x811   : > { %v3308_v23 = vadd.f32 %v3307_v40, %v3221_v15 }
 0x812   : > { %v3399_v45 = vpop.f32.mrf.mxu0  ;;  %v3769_v62 = vpop.f32.mrf.mxu1 }
 0x813   : > { %v3311_v18 = vsub.f32 0.0, %v3308_v23  ;;  %v3400_v56 = vadd.f32 %v3886_v53, %v3399_v45 }
 0x814   : > { %v4389_v25 = vpop.f32.mrf.mxu0  ;;  %v4414_v6 = vpop.f32.mrf.mxu1 }
 0x815   : > { %v3312_v33 = vmul.f32 1.442695, %v3311_v18  ;;  %v3476_v1 = vadd.f32 %v3475_v52, %v3400_v56 }
 0x816   : > { %v3549_v39 = vpop.f32.mrf.mxu0 }
 0x817   : > { %4580 = vpow2.f32 %v3312_v33  ;;  %v3550_v21 = vadd.f32 %v3549_v39, %v3476_v1 }
 0x818   : > { %v4399_v42 = vpop.f32.mrf.mxu0 }
 0x819   : > { %v3624_v43 = vadd.f32 %v3623_v19, %v3550_v21 }
 0x81a   : > { %v3697_v31 = vpop.f32.mrf.mxu0 }
 0x81b   : > { %v3698_v7 = vadd.f32 %v3697_v31, %v3624_v43 }
 0x81c   : > { %v4409_v9 = vpop.f32.mrf.mxu0 }
 0x81d   : > { %v3770_v10 = vadd.f32 %v3769_v62, %v3698_v7 }
 0x81f   : > { %3774 = vst.msk [vmem:[#allocation6] sm:$0x3] %vm3773_vm5, %v3770_v10 }
 0x824   : > { %v4581_v30 = vpop.eup %4580 }
 0x825   : > { %v3314_v61 = vadd.f32 1.0, %v4581_v30 }
 0x827   : > { %4582 = vrcp.f32 %v3314_v61 }
 0x834   : > { %v4583_v12 = vpop.eup %4582 }
 0x835   : > { %v3317_v34 = vadd.f32 1.0, %v4583_v12 }
 0x837   : > { %3318 = vst [vmem:[%s6305_s14] sm:$0x3] %v3317_v34 }
 0x838 PF: > { %p6267_p8 = scmp.eq.s32.totalorder %s3839_s21, 1  ;;  %s4639_s18 = smov [#allocation6]  }
 0x839   : > { %s3785_s25 = sshll.u32 %s4639_s18, 4  ;;  %s3786_s25 = int_to_ptr.vmem [resolvable:$true] %s3785_s25 }
 0x83a   : > { %s4584_s26 = scalar_lea.vmem %s3786_s25, 32  ;;  %p4591_p12 = scmp.lt.s32.totalorder %s3786_s25, %s3786_s25 }
 0x83b   : > { %p4585_p9 = scmp.ne.s32.totalorder %s3786_s25, %s4584_s26  ;;  %p4592_p13 = scmp.lt.s32.totalorder %s4584_s26, %s4584_s26 }
 0x83d   : > { %p4586_p10 = pnand %p4585_p9, %p6267_p8  ;;  %p4593_p0 = por %p4592_p13, %p4591_p12 }
 0x83f   : > { %p4587_p11 = pneg %p4586_p10 }
 0x841   : > { %p4594_p1 = pnand %p4593_p0, %p4587_p11 }
 0x843   : > { %4597 = shalt.err (!%p4594_p1)
}
 0x844   : > { %4432 = dma.vmem_to_hbm [thread:$0]  (%p6267_p8), %s3786_s25, 32, %s6306_s15, [#allocation7]  }
 0x845   : > { %4621 = dma.done.wait (%p6267_p8), [#allocation7], 32  }
 0x846   : > { %4623 = vsyncadd (%p6267_p8), [#allocation7], 4294967264 }
 0x847 PF: > { %s27_s20 = sadd.s32 1, %s4634_s20   ;;  %s6517_s18 = smov %s4630_s19 }
 0x848   : > { %p24_p2 = scmp.ge.s32.totalorder %s27_s20, 4   ;;  %s6518_s19 = smov %s6520_s22 }
 0x84a   :  { %26 = sbr.rel (!%p24_p2) target bundleno = 2 (0x2), region = 127 }
 0x84f   :  { %3801 = vsyncpa [#allocation7], 1 }
 0x850   :  { %3803 = vsyncpa [#allocation7 + $0x1], 1 }

</bundles_post_ra>
